<compile_context>
chip_gen: v6e
topology: v6e:2x2x1
jax: 0.10.0
libtpu: 0.0.40
codegen_flags: <defaults>
</compile_context>

<pallas_src>
import functools

import jax
import jax.numpy as jnp
from jax.experimental import pallas as pl
from jax.experimental.pallas import tpu as pltpu


# ----------------------------------------------------------------------------
# Fused per-batch kernel (everything lane-dense: channels x N)
# ----------------------------------------------------------------------------
def _cross_transformer_kernel(
    fv_ref, bev_ref, mask_ref,               # (1,cin,N), (1,cin,N), (9,N)
    wcomb_ref, bcomb_ref,                     # combined embed|query weights
    wkv_ref, bkv_ref,                         # packed key|value weights
    wf_ref, bf_ref,                           # f_conv weights (transposed)
    o_ref,                                    # (1, cin, N) output (lane dense)
    kv_sc, m_sc, t_sc,                        # VMEM scratch (lane dense)
    *, h, w, c8, kv_tile):
  f32 = jnp.float32
  n = h * w
  in_dim = wcomb_ref.shape[0] - c8

  def shifted(src, ky, kx):
    """src[:, y*w+x] -> src[:, (y+dy)*w+(x+dx)] (dy=ky-1, dx=kx-1), 0 outside."""
    d = (ky - 1) * w + (kx - 1)
    if d == 0:
      return src                              # centre tap: no shift, no mask
    rolled = pltpu.roll(src, shift=(-d) % n, axis=1)
    tap = ky * 3 + kx
    return rolled * mask_ref[pl.ds(tap, 1), :]          # (C, N) * (1, N)

  # ---- in-kernel 3x3 im2col, fv & bev stacked per tap -----------------------
  fv = fv_ref[0]                                        # (cin, N)
  bev = bev_ref[0]                                      # (cin, N)
  fb = jnp.concatenate([fv, bev], axis=0)               # (2*cin, N)
  pcomb = jnp.concatenate(
      [shifted(fb, ky, kx) for ky in range(3) for kx in range(3)],
      axis=0)                                           # (18*cin, N)

  # x_embed(FV) and (x_embed folded into query_conv)(BEV) in ONE MXU push.
  embq = (jnp.dot(wcomb_ref[...], pcomb, preferred_element_type=f32)
          + bcomb_ref[...])                             # (in_dim + c8, N)
  fv_emb = embq[:in_dim]                                # (in_dim, N)
  q = embq[in_dim:]                                     # (c8, N)

  # packed key|value 1x1 projections, staged lane-dense in scratch.
  kv_sc[...] = (jnp.dot(wkv_ref[...], fv_emb, preferred_element_type=f32)
                + bkv_ref[...])                         # (2*c8, N)

  # ---- streaming hard-max attention over kv lane tiles (no NxN tensors) -----
  m_sc[...] = jnp.full((1, n), -jnp.inf, f32)
  t_sc[...] = jnp.zeros((c8, n), f32)

  def attend(off, tk):
    kvt = kv_sc[:, pl.ds(off, tk)]                      # (2*c8, tk)
    kt = kvt[:c8]
    vt = kvt[c8:]
    # st[i, j] = key[:, off+i] . query[:, j]
    st = jax.lax.dot_general(kt, q, (((0,), (0,)), ((), ())),
                             preferred_element_type=f32)          # (tk, N)
    tmax = jnp.max(st, axis=0, keepdims=True)                     # (1, N)
    iota = jax.lax.broadcasted_iota(jnp.int32, st.shape, 0)
    larg = jnp.min(jnp.where(st == tmax, iota, tk),
                   axis=0, keepdims=True)               # first in-tile argmax
    onehot = (iota == larg).astype(f32)                           # (tk, N)
    tt = jnp.dot(vt, onehot, preferred_element_type=f32)          # (c8, N)
    upd = tmax > m_sc[...]        # strict '>' keeps first occurrence overall
    m_sc[...] = jnp.where(upd, tmax, m_sc[...])
    t_sc[...] = jnp.where(upd, tt, t_sc[...])

  num_full = n // kv_tile
  rem = n - num_full * kv_tile
  if num_full > 0:
    unroll = num_full if num_full <= 8 else max(
        u for u in (4, 2, 1) if num_full % u == 0)

    def kv_step(ti, carry):
      attend(pl.multiple_of(ti * kv_tile, kv_tile), kv_tile)
      return carry

    jax.lax.fori_loop(0, num_full, kv_step, 0, unroll=unroll)
  if rem > 0:
    attend(num_full * kv_tile, rem)        # static remainder tile (no padding)

  s_row = m_sc[...]                                     # (1, N) == S

  # ---- f_conv (3x3, 72 -> cin): ONE batched K=648 contraction ---------------
  cat = jnp.concatenate([fv_emb, t_sc[...]], axis=0)    # (72, N)
  window = jnp.concatenate(
      [shifted(cat, ky, kx) for ky in range(3) for kx in range(3)],
      axis=0)                                           # (648, N)
  res = (jnp.dot(wf_ref[...], window, preferred_element_type=f32)
         + bf_ref[...])                                 # (cin, N)

  # output = BEV_x + f_conv(cat) * S   ('* S' hoisted to a single row scale)
  o_ref[0] = res * s_row + bev_ref[0]


# ----------------------------------------------------------------------------
# Wrapper helpers
# ----------------------------------------------------------------------------
def _default_kv_tile():
  try:
    kind = jax.devices()[0].device_kind.lower()
  except Exception:
    kind = ""
  # 128-wide MXUs (v2-v5) -> 128; 256-wide (v6e/v7x) -> 256.
  if any(s in kind for s in ("v2", "v3", "v4", "v5")):
    return 128
  return 256


def _vmem_limit_bytes():
  cap = 64 * 1024 * 1024                     # conservative fallback
  try:
    cap = int(pltpu.get_tpu_info().vmem_capacity_bytes)
  except Exception:
    pass
  # leave headroom for Mosaic internal scratch / double buffers, cap at 96 MiB.
  return int(max(32 * 1024 * 1024, min(96 * 1024 * 1024,
                                       cap - 16 * 1024 * 1024)))


def _tap_masks(h, w):
  """(9, N) f32: row t=(ky*3+kx) is 1 where the shifted-by-(ky-1,kx-1) read
  stays inside the image (zero padding of the 3x3 convs)."""
  n = h * w
  ys, xs = jnp.meshgrid(jnp.arange(h), jnp.arange(w), indexing="ij")
  xs = xs.reshape(1, n)
  ys = ys.reshape(1, n)
  rows = []
  for ky in range(3):
    for kx in range(3):
      dy, dx = ky - 1, kx - 1
      ok = ((xs + dx >= 0) & (xs + dx < w) & (ys + dy >= 0) & (ys + dy < h))
      rows.append(ok.astype(jnp.float32))
  return jnp.concatenate(rows, axis=0)


# ----------------------------------------------------------------------------
# Wrapper
# ----------------------------------------------------------------------------
def cross_transformer_forward(FV_x, BEV_x, params, *, kv_tile=None):
  """FV_x, BEV_x: NCHW (bs, 4, h, w) -> NCHW (bs, 4, h, w)."""
  bs, cin, h, w = FV_x.shape
  n = h * w
  kp, in_dim = params["w_embed"].shape       # kp = 9*cin
  c8 = params["wq"].shape[1]
  cc = in_dim + c8
  assert kp == 9 * cin

  if kv_tile is None:
    kv_tile = _default_kv_tile()
  kv_tile = int(min(kv_tile, n))

  # lane-dense inputs (channels on sublanes, spatial on lanes); free reshapes.
  fv_cn = FV_x.reshape(bs, cin, n).astype(jnp.float32)
  bev_cn = BEV_x.reshape(bs, cin, n).astype(jnp.float32)
  masks = _tap_masks(h, w)                                        # (9, N)

  # ---- one-time weight prep (tiny XLA ops) ----------------------------------
  we_cn = params["w_embed"].T                                     # (in_dim, 9*cin)
  wq_cn = (params["w_embed"] @ params["wq"]).T                    # (c8, 9*cin)  folded
  be_col = params["b_embed"].T                                    # (in_dim, 1)
  bq_col = (params["b_embed"] @ params["wq"] + params["bq"]).T    # (c8, 1)
  # combined embed|query weight acting on per-tap [fv(4) | bev(4)] stacks
  zt = jnp.zeros((in_dim, kp), jnp.float32)
  zb = jnp.zeros((c8, kp), jnp.float32)
  w_comb = jnp.concatenate([
      jnp.concatenate([we_cn.reshape(in_dim, 9, cin),
                       zt.reshape(in_dim, 9, cin)], axis=2).reshape(in_dim, 2 * kp),
      jnp.concatenate([zb.reshape(c8, 9, cin),
                       wq_cn.reshape(c8, 9, cin)], axis=2).reshape(c8, 2 * kp),
  ], axis=0)                                                      # (in_dim+c8, 72)
  b_comb = jnp.concatenate([be_col, bq_col], axis=0)              # (in_dim+c8, 1)
  # packed key|value 1x1 projections
  wkv_cn = jnp.concatenate([params["wk"], params["wv"]], axis=1).T   # (2*c8, in_dim)
  bkv_col = jnp.concatenate([params["bk"], params["bv"]], axis=1).T  # (2*c8, 1)
  # f_conv transposed for lane-dense accumulation
  wf_cn = params["w_f"].T                                         # (cin, 9*cc)
  bf_col = params["b_f"].T                                        # (cin, 1)

  kern = functools.partial(_cross_transformer_kernel,
                           h=h, w=w, c8=c8, kv_tile=kv_tile)

  out_cn = pl.pallas_call(
      kern,
      out_shape=jax.ShapeDtypeStruct((bs, cin, n), jnp.float32),
      grid=(bs,),
      in_specs=[
          pl.BlockSpec((1, cin, n), lambda b: (b, 0, 0)),         # FV (lane dense)
          pl.BlockSpec((1, cin, n), lambda b: (b, 0, 0)),         # BEV (lane dense)
          pl.BlockSpec((9, n), lambda b: (0, 0)),                 # per-tap border masks
          pl.BlockSpec((in_dim + c8, 2 * kp), lambda b: (0, 0)),  # embed|query weight
          pl.BlockSpec((in_dim + c8, 1), lambda b: (0, 0)),       # its bias
          pl.BlockSpec((2 * c8, in_dim), lambda b: (0, 0)),       # packed k|v weight
          pl.BlockSpec((2 * c8, 1), lambda b: (0, 0)),            # packed k|v bias
          pl.BlockSpec((cin, 9 * cc), lambda b: (0, 0)),          # f_conv weight^T
          pl.BlockSpec((cin, 1), lambda b: (0, 0)),               # f_conv bias
      ],
      out_specs=pl.BlockSpec((1, cin, n), lambda b: (b, 0, 0)),
      scratch_shapes=[
          pltpu.VMEM((2 * c8, n), jnp.float32),   # packed key|value (lane dense)
          pltpu.VMEM((1, n), jnp.float32),        # running score max (S)
          pltpu.VMEM((c8, n), jnp.float32),       # running gathered value (T)
      ],
      compiler_params=pltpu.CompilerParams(
          dimension_semantics=("parallel",),
          vmem_limit_bytes=_vmem_limit_bytes()),
  )(fv_cn, bev_cn, masks, w_comb, b_comb, wkv_cn, bkv_col, wf_cn, bf_col)

  return out_cn.reshape(bs, cin, h, w)


# ----------------------------------------------------------------------------
# Pure-JAX reference (same synthetic weights) for verification
# ----------------------------------------------------------------------------
def reference_forward(FV_x, BEV_x, params, in_dim):
  def conv3x3(x_nhwc, w_flat, b, cin, cout):
    wr = w_flat.reshape(3, 3, cin, cout)
    y = jax.lax.conv_general_dilated(
        x_nhwc, wr, (1, 1), "SAME",
        dimension_numbers=("NHWC", "HWIO", "NHWC"))
    return y + b

  bs, cin, h, w = FV_x.shape
  N = h * w
  fv = jnp.transpose(FV_x, (0, 2, 3, 1))
  bev = jnp.transpose(BEV_x, (0, 2, 3, 1))
  fv_e = conv3x3(fv, params["w_embed"], params["b_embed"], cin, in_dim)
  bev_e = conv3x3(bev, params["w_embed"], params["b_embed"], cin, in_dim)

  q = (jnp.einsum("bhwc,cd->bhwd", bev_e, params["wq"]) + params["bq"]).reshape(bs, N, -1)
  k = (jnp.einsum("bhwc,cd->bhwd", fv_e, params["wk"]) + params["bk"]).reshape(bs, N, -1)
  v = (jnp.einsum("bhwc,cd->bhwd", fv_e, params["wv"]) + params["bv"]).reshape(bs, N, -1)

  score = jnp.einsum("bic,bjc->bij", k, q)            # score[b, i, j]
  score_star = score.max(axis=1)                      # (bs, N)
  arg = score.argmax(axis=1)                          # (bs, N)
  T = jnp.take_along_axis(v, arg[..., None], axis=1)  # (bs, N, c8)

  c8 = v.shape[-1]
  cat = jnp.concatenate([fv_e, T.reshape(bs, h, w, c8)], axis=-1)
  res = conv3x3(cat, params["w_f"], params["b_f"], in_dim + c8, cin)
  out = bev + res * score_star.reshape(bs, h, w, 1)
  return jnp.transpose(out, (0, 3, 1, 2))


# ----------------------------------------------------------------------------
if __name__ == "__main__":
  in_dim = 64                  # forced by f_conv(in_channels=72 = in_dim + in_dim//8)
  c8 = in_dim // 8
  bs, cin = 2, 4

  key = jax.random.PRNGKey(0)
  ks = jax.random.split(key, 10)
  scale = 0.1
  params = {
      # x_embed: Conv2d(4, in_dim, 3, pad=1) -> flattened (ky,kx,cin) x cout
      "w_embed": scale * jax.random.normal(ks[0], (9 * cin, in_dim), jnp.float32),
      "b_embed": scale * jax.random.normal(ks[1], (1, in_dim), jnp.float32),
      # 1x1 convs
      "wq": scale * jax.random.normal(ks[2], (in_dim, c8), jnp.float32),
      "bq": scale * jax.random.normal(ks[3], (1, c8), jnp.float32),
      "wk": scale * jax.random.normal(ks[4], (in_dim, c8), jnp.float32),
      "bk": scale * jax.random.normal(ks[5], (1, c8), jnp.float32),
      "wv": scale * jax.random.normal(ks[6], (in_dim, c8), jnp.float32),
      "bv": scale * jax.random.normal(ks[7], (1, c8), jnp.float32),
      # f_conv: Conv2d(72, 4, 3, pad=1), rows ordered (ky, kx, cin)
      "w_f": scale * jax.random.normal(ks[8], (9 * (in_dim + c8), cin), jnp.float32),
      "b_f": scale * jax.random.normal(ks[9], (1, cin), jnp.float32),
  }

  def run_case(h, w, kv_tile):
    kf, kb = jax.random.split(jax.random.fold_in(key, h * 1000 + w), 2)
    FV_x = jax.random.normal(kf, (bs, cin, h, w), jnp.float32)
    BEV_x = jax.random.normal(kb, (bs, cin, h, w), jnp.float32)
    out = jax.block_until_ready(
        cross_transformer_forward(FV_x, BEV_x, params, kv_tile=kv_tile))
    ref = jax.block_until_ready(reference_forward(FV_x, BEV_x, params, in_dim))
    assert out.shape == (bs, cin, h, w), out.shape
    err = float(jnp.abs(out - ref).max())
    assert jnp.allclose(out, ref, atol=2e-3, rtol=2e-3), err

  run_case(16, 16, None)   # default kv_tile (256 on v6e/v7x, 128 on older MXUs)
  run_case(16, 16, 128)    # multi-tile streaming loop (fori_loop + unroll)
  run_case(16, 24, 256)    # one full kv tile + static remainder tile
  print("KERNEL_OK")
</pallas_src>

<mosaic_0001>
module attributes {stable_mosaic.version = 11 : i64} {
  func.func @_cross_transformer_kernel(%arg0: i32, %arg1: memref<1x4x256xf32, #tpu.memory_space<vmem>>, %arg2: memref<1x4x256xf32, #tpu.memory_space<vmem>>, %arg3: memref<9x256xf32, #tpu.memory_space<vmem>>, %arg4: memref<72x72xf32, #tpu.memory_space<vmem>>, %arg5: memref<72x1xf32, #tpu.memory_space<vmem>>, %arg6: memref<16x64xf32, #tpu.memory_space<vmem>>, %arg7: memref<16x1xf32, #tpu.memory_space<vmem>>, %arg8: memref<4x648xf32, #tpu.memory_space<vmem>>, %arg9: memref<4x1xf32, #tpu.memory_space<vmem>>, %arg10: memref<1x4x256xf32, #tpu.memory_space<vmem>>, %arg11: memref<16x256xf32, #tpu.memory_space<vmem>>, %arg12: memref<1x256xf32, #tpu.memory_space<vmem>>, %arg13: memref<8x256xf32, #tpu.memory_space<vmem>>) attributes {dimension_semantics = [#tpu.dimension_semantics<parallel>], iteration_bounds = array<i64: 2>, scalar_prefetch = 0 : i64, scratch_operands = 3 : i64, tpu.core_type = #tpu.core_type<tc>, window_params = [{transform_indices = @transform_0, window_bounds = array<i64: 1, 4, 256>}, {transform_indices = @transform_1, window_bounds = array<i64: 1, 4, 256>}, {pipeline_mode = #tpu.pipeline_mode<synchronous>, transform_indices = @transform_2, window_bounds = array<i64: 9, 256>}, {pipeline_mode = #tpu.pipeline_mode<synchronous>, transform_indices = @transform_3, window_bounds = array<i64: 72, 72>}, {pipeline_mode = #tpu.pipeline_mode<synchronous>, transform_indices = @transform_4, window_bounds = array<i64: 72, 1>}, {pipeline_mode = #tpu.pipeline_mode<synchronous>, transform_indices = @transform_5, window_bounds = array<i64: 16, 64>}, {pipeline_mode = #tpu.pipeline_mode<synchronous>, transform_indices = @transform_6, window_bounds = array<i64: 16, 1>}, {pipeline_mode = #tpu.pipeline_mode<synchronous>, transform_indices = @transform_7, window_bounds = array<i64: 4, 648>}, {pipeline_mode = #tpu.pipeline_mode<synchronous>, transform_indices = @transform_8, window_bounds = array<i64: 4, 1>}, {transform_indices = @transform_9, window_bounds = array<i64: 1, 4, 256>}]} {
    %c0 = arith.constant 0 : index
    %c0_0 = arith.constant 0 : index
    %c0_1 = arith.constant 0 : index
    %0 = vector.load %arg1[%c0, %c0_0, %c0_1] : memref<1x4x256xf32, #tpu.memory_space<vmem>>, vector<1x4x256xf32>
    %1 = vector.shape_cast %0 : vector<1x4x256xf32> to vector<4x256xf32>
    %c0_2 = arith.constant 0 : index
    %c0_3 = arith.constant 0 : index
    %c0_4 = arith.constant 0 : index
    %2 = vector.load %arg2[%c0_2, %c0_3, %c0_4] : memref<1x4x256xf32, #tpu.memory_space<vmem>>, vector<1x4x256xf32>
    %3 = vector.shape_cast %2 : vector<1x4x256xf32> to vector<4x256xf32>
    %4 = tpu.concatenate %1, %3 in 0 : vector<4x256xf32>, vector<4x256xf32> -> vector<8x256xf32>
    %c17_i32 = arith.constant 17 : i32
    %5 = tpu.dynamic_rotate %4 by %c17_i32 dim 1 : vector<8x256xf32>, i32 -> vector<8x256xf32>
    %c0_5 = arith.constant 0 : index
    %c0_6 = arith.constant 0 : index
    %6 = vector.load %arg3[%c0_5, %c0_6] : memref<9x256xf32, #tpu.memory_space<vmem>>, vector<1x256xf32>
    %7 = vector.broadcast %6 : vector<1x256xf32> to vector<8x256xf32>
    %8 = arith.mulf %5, %7 : vector<8x256xf32>
    %c16_i32 = arith.constant 16 : i32
    %9 = tpu.dynamic_rotate %4 by %c16_i32 dim 1 : vector<8x256xf32>, i32 -> vector<8x256xf32>
    %c1 = arith.constant 1 : index
    %c0_7 = arith.constant 0 : index
    %10 = vector.load %arg3[%c1, %c0_7] : memref<9x256xf32, #tpu.memory_space<vmem>>, vector<1x256xf32>
    %11 = vector.broadcast %10 : vector<1x256xf32> to vector<8x256xf32>
    %12 = arith.mulf %9, %11 : vector<8x256xf32>
    %c15_i32 = arith.constant 15 : i32
    %13 = tpu.dynamic_rotate %4 by %c15_i32 dim 1 : vector<8x256xf32>, i32 -> vector<8x256xf32>
    %c2 = arith.constant 2 : index
    %c0_8 = arith.constant 0 : index
    %14 = vector.load %arg3[%c2, %c0_8] : memref<9x256xf32, #tpu.memory_space<vmem>>, vector<1x256xf32>
    %15 = vector.broadcast %14 : vector<1x256xf32> to vector<8x256xf32>
    %16 = arith.mulf %13, %15 : vector<8x256xf32>
    %c1_i32 = arith.constant 1 : i32
    %17 = tpu.dynamic_rotate %4 by %c1_i32 dim 1 : vector<8x256xf32>, i32 -> vector<8x256xf32>
    %c3 = arith.constant 3 : index
    %c0_9 = arith.constant 0 : index
    %18 = vector.load %arg3[%c3, %c0_9] : memref<9x256xf32, #tpu.memory_space<vmem>>, vector<1x256xf32>
    %19 = vector.broadcast %18 : vector<1x256xf32> to vector<8x256xf32>
    %20 = arith.mulf %17, %19 : vector<8x256xf32>
    %c255_i32 = arith.constant 255 : i32
    %21 = tpu.dynamic_rotate %4 by %c255_i32 dim 1 : vector<8x256xf32>, i32 -> vector<8x256xf32>
    %c5 = arith.constant 5 : index
    %c0_10 = arith.constant 0 : index
    %22 = vector.load %arg3[%c5, %c0_10] : memref<9x256xf32, #tpu.memory_space<vmem>>, vector<1x256xf32>
    %23 = vector.broadcast %22 : vector<1x256xf32> to vector<8x256xf32>
    %24 = arith.mulf %21, %23 : vector<8x256xf32>
    %c241_i32 = arith.constant 241 : i32
    %25 = tpu.dynamic_rotate %4 by %c241_i32 dim 1 : vector<8x256xf32>, i32 -> vector<8x256xf32>
    %c6 = arith.constant 6 : index
    %c0_11 = arith.constant 0 : index
    %26 = vector.load %arg3[%c6, %c0_11] : memref<9x256xf32, #tpu.memory_space<vmem>>, vector<1x256xf32>
    %27 = vector.broadcast %26 : vector<1x256xf32> to vector<8x256xf32>
    %28 = arith.mulf %25, %27 : vector<8x256xf32>
    %c240_i32 = arith.constant 240 : i32
    %29 = tpu.dynamic_rotate %4 by %c240_i32 dim 1 : vector<8x256xf32>, i32 -> vector<8x256xf32>
    %c7 = arith.constant 7 : index
    %c0_12 = arith.constant 0 : index
    %30 = vector.load %arg3[%c7, %c0_12] : memref<9x256xf32, #tpu.memory_space<vmem>>, vector<1x256xf32>
    %31 = vector.broadcast %30 : vector<1x256xf32> to vector<8x256xf32>
    %32 = arith.mulf %29, %31 : vector<8x256xf32>
    %c239_i32 = arith.constant 239 : i32
    %33 = tpu.dynamic_rotate %4 by %c239_i32 dim 1 : vector<8x256xf32>, i32 -> vector<8x256xf32>
    %c8 = arith.constant 8 : index
    %c0_13 = arith.constant 0 : index
    %34 = vector.load %arg3[%c8, %c0_13] : memref<9x256xf32, #tpu.memory_space<vmem>>, vector<1x256xf32>
    %35 = vector.broadcast %34 : vector<1x256xf32> to vector<8x256xf32>
    %36 = arith.mulf %33, %35 : vector<8x256xf32>
    %37 = tpu.concatenate %8, %12, %16, %20, %4, %24, %28, %32, %36 in 0 : vector<8x256xf32>, vector<8x256xf32>, vector<8x256xf32>, vector<8x256xf32>, vector<8x256xf32>, vector<8x256xf32>, vector<8x256xf32>, vector<8x256xf32>, vector<8x256xf32> -> vector<72x256xf32>
    %c0_14 = arith.constant 0 : index
    %c0_15 = arith.constant 0 : index
    %38 = vector.load %arg4[%c0_14, %c0_15] : memref<72x72xf32, #tpu.memory_space<vmem>>, vector<72x72xf32>
    %cst = arith.constant dense<0.000000e+00> : vector<72x256xf32>
    %39 = tpu.matmul %38, %37, %cst {dimension_numbers = #tpu.dot_dimension_numbers<[1], [0], [0], [1], [0, 0, 1, 1], [], []>} : vector<72x72xf32>, vector<72x256xf32>, vector<72x256xf32> -> vector<72x256xf32>
    %c0_16 = arith.constant 0 : index
    %c0_17 = arith.constant 0 : index
    %40 = vector.load %arg5[%c0_16, %c0_17] : memref<72x1xf32, #tpu.memory_space<vmem>>, vector<72x1xf32>
    %41 = vector.broadcast %40 : vector<72x1xf32> to vector<72x256xf32>
    %42 = arith.addf %39, %41 : vector<72x256xf32>
    %43 = vector.extract_strided_slice %42 {offsets = [0, 0], sizes = [64, 256], strides = [1, 1]} : vector<72x256xf32> to vector<64x256xf32>
    %44 = vector.extract_strided_slice %42 {offsets = [64, 0], sizes = [8, 256], strides = [1, 1]} : vector<72x256xf32> to vector<8x256xf32>
    %c0_18 = arith.constant 0 : index
    %c0_19 = arith.constant 0 : index
    %45 = vector.load %arg6[%c0_18, %c0_19] : memref<16x64xf32, #tpu.memory_space<vmem>>, vector<16x64xf32>
    %cst_20 = arith.constant dense<0.000000e+00> : vector<16x256xf32>
    %46 = tpu.matmul %45, %43, %cst_20 {dimension_numbers = #tpu.dot_dimension_numbers<[1], [0], [0], [1], [0, 0, 1, 1], [], []>} : vector<16x64xf32>, vector<64x256xf32>, vector<16x256xf32> -> vector<16x256xf32>
    %c0_21 = arith.constant 0 : index
    %c0_22 = arith.constant 0 : index
    %47 = vector.load %arg7[%c0_21, %c0_22] : memref<16x1xf32, #tpu.memory_space<vmem>>, vector<16x1xf32>
    %48 = vector.broadcast %47 : vector<16x1xf32> to vector<16x256xf32>
    %49 = arith.addf %46, %48 : vector<16x256xf32>
    %c0_23 = arith.constant 0 : index
    %c0_24 = arith.constant 0 : index
    %50 = vector.load %arg11[%c0_23, %c0_24] : memref<16x256xf32, #tpu.memory_space<vmem>>, vector<16x256xf32>
    tpu.vector_store %arg11[%c0_23, %c0_24], %49 {strides = array<i32>} : memref<16x256xf32, #tpu.memory_space<vmem>>, vector<16x256xf32>,
    %cst_25 = arith.constant 0xFF800000 : f32
    %51 = vector.broadcast %cst_25 : f32 to vector<1x256xf32>
    %c0_26 = arith.constant 0 : index
    %c0_27 = arith.constant 0 : index
    %52 = vector.load %arg12[%c0_26, %c0_27] : memref<1x256xf32, #tpu.memory_space<vmem>>, vector<1x256xf32>
    tpu.vector_store %arg12[%c0_26, %c0_27], %51 {strides = array<i32>} : memref<1x256xf32, #tpu.memory_space<vmem>>, vector<1x256xf32>,
    %cst_28 = arith.constant 0.000000e+00 : f32
    %53 = vector.broadcast %cst_28 : f32 to vector<8x256xf32>
    %c0_29 = arith.constant 0 : index
    %c0_30 = arith.constant 0 : index
    %54 = vector.load %arg13[%c0_29, %c0_30] : memref<8x256xf32, #tpu.memory_space<vmem>>, vector<8x256xf32>
    tpu.vector_store %arg13[%c0_29, %c0_30], %53 {strides = array<i32>} : memref<8x256xf32, #tpu.memory_space<vmem>>, vector<8x256xf32>,
    %c0_i32 = arith.constant 0 : i32
    %c256_i32 = arith.constant 256 : i32
    %55 = arith.muli %c0_i32, %c256_i32 : i32
    %56 = tpu.assume_multiple %55, 256 : i32
    %c0_31 = arith.constant 0 : index
    %57 = arith.index_cast %56 : i32 to index
    %58 = vector.load %arg11[%c0_31, %57] : memref<16x256xf32, #tpu.memory_space<vmem>>, vector<16x256xf32>
    %59 = vector.extract_strided_slice %58 {offsets = [0, 0], sizes = [8, 256], strides = [1, 1]} : vector<16x256xf32> to vector<8x256xf32>
    %60 = vector.extract_strided_slice %58 {offsets = [8, 0], sizes = [8, 256], strides = [1, 1]} : vector<16x256xf32> to vector<8x256xf32>
    %cst_32 = arith.constant dense<0.000000e+00> : vector<256x256xf32>
    %61 = tpu.matmul %59, %44, %cst_32 {dimension_numbers = #tpu.dot_dimension_numbers<[0], [0], [1], [1], [0, 1, 1, 1], [], []>} : vector<8x256xf32>, vector<8x256xf32>, vector<256x256xf32> -> vector<256x256xf32>
    %cst_33 = arith.constant dense<0xFF800000> : vector<256xf32>
    %62 = vector.multi_reduction <maximumf>, %61, %cst_33 [0] : vector<256x256xf32> to vector<256xf32>
    %63 = vector.shape_cast %62 : vector<256xf32> to vector<1x256xf32>
    %64 = tpu.iota {dimensions = array<i32: 0>} : vector<256x256xi32>
    %65 = vector.broadcast %63 : vector<1x256xf32> to vector<256x256xf32>
    %66 = arith.cmpf oeq, %61, %65 : vector<256x256xf32>
    %c256_i32_34 = arith.constant 256 : i32
    %67 = vector.broadcast %c256_i32_34 : i32 to vector<256x256xi32>
    %68 = arith.select %66, %64, %67 : vector<256x256xi1>, vector<256x256xi32>
    %cst_35 = arith.constant dense<2147483647> : vector<256xi32>
    %69 = vector.multi_reduction <minsi>, %68, %cst_35 [0] : vector<256x256xi32> to vector<256xi32>
    %70 = vector.shape_cast %69 : vector<256xi32> to vector<1x256xi32>
    %71 = vector.broadcast %70 : vector<1x256xi32> to vector<256x256xi32>
    %72 = arith.cmpi eq, %64, %71 : vector<256x256xi32>
    %73 = arith.extui %72 : vector<256x256xi1> to vector<256x256xi32>
    %74 = arith.sitofp %73 : vector<256x256xi32> to vector<256x256xf32>
    %cst_36 = arith.constant dense<0.000000e+00> : vector<8x256xf32>
    %75 = tpu.matmul %60, %74, %cst_36 {dimension_numbers = #tpu.dot_dimension_numbers<[1], [0], [0], [1], [0, 0, 1, 1], [], []>} : vector<8x256xf32>, vector<256x256xf32>, vector<8x256xf32> -> vector<8x256xf32>
    %c0_37 = arith.constant 0 : index
    %c0_38 = arith.constant 0 : index
    %76 = vector.load %arg12[%c0_37, %c0_38] : memref<1x256xf32, #tpu.memory_space<vmem>>, vector<1x256xf32>
    %77 = arith.cmpf ogt, %63, %76 : vector<1x256xf32>
    %c0_39 = arith.constant 0 : index
    %c0_40 = arith.constant 0 : index
    %78 = vector.load %arg12[%c0_39, %c0_40] : memref<1x256xf32, #tpu.memory_space<vmem>>, vector<1x256xf32>
    %79 = arith.select %77, %63, %78 : vector<1x256xi1>, vector<1x256xf32>
    %c0_41 = arith.constant 0 : index
    %c0_42 = arith.constant 0 : index
    %80 = vector.load %arg12[%c0_41, %c0_42] : memref<1x256xf32, #tpu.memory_space<vmem>>, vector<1x256xf32>
    tpu.vector_store %arg12[%c0_41, %c0_42], %79 {strides = array<i32>} : memref<1x256xf32, #tpu.memory_space<vmem>>, vector<1x256xf32>,
    %c0_43 = arith.constant 0 : index
    %c0_44 = arith.constant 0 : index
    %81 = vector.load %arg13[%c0_43, %c0_44] : memref<8x256xf32, #tpu.memory_space<vmem>>, vector<8x256xf32>
    %82 = vector.shape_cast %77 : vector<1x256xi1> to vector<1x256xi1>
    %83 = vector.broadcast %82 : vector<1x256xi1> to vector<8x256xi1>
    %84 = arith.select %83, %75, %81 : vector<8x256xi1>, vector<8x256xf32>
    %c0_45 = arith.constant 0 : index
    %c0_46 = arith.constant 0 : index
    %85 = vector.load %arg13[%c0_45, %c0_46] : memref<8x256xf32, #tpu.memory_space<vmem>>, vector<8x256xf32>
    tpu.vector_store %arg13[%c0_45, %c0_46], %84 {strides = array<i32>} : memref<8x256xf32, #tpu.memory_space<vmem>>, vector<8x256xf32>,
    %c1_i32_47 = arith.constant 1 : i32
    %c0_48 = arith.constant 0 : index
    %c0_49 = arith.constant 0 : index
    %86 = vector.load %arg12[%c0_48, %c0_49] : memref<1x256xf32, #tpu.memory_space<vmem>>, vector<1x256xf32>
    %c0_50 = arith.constant 0 : index
    %c0_51 = arith.constant 0 : index
    %87 = vector.load %arg13[%c0_50, %c0_51] : memref<8x256xf32, #tpu.memory_space<vmem>>, vector<8x256xf32>
    %88 = tpu.concatenate %43, %87 in 0 : vector<64x256xf32>, vector<8x256xf32> -> vector<72x256xf32>
    %c17_i32_52 = arith.constant 17 : i32
    %89 = tpu.dynamic_rotate %88 by %c17_i32_52 dim 1 : vector<72x256xf32>, i32 -> vector<72x256xf32>
    %c0_53 = arith.constant 0 : index
    %c0_54 = arith.constant 0 : index
    %90 = vector.load %arg3[%c0_53, %c0_54] : memref<9x256xf32, #tpu.memory_space<vmem>>, vector<1x256xf32>
    %91 = vector.broadcast %90 : vector<1x256xf32> to vector<72x256xf32>
    %92 = arith.mulf %89, %91 : vector<72x256xf32>
    %c16_i32_55 = arith.constant 16 : i32
    %93 = tpu.dynamic_rotate %88 by %c16_i32_55 dim 1 : vector<72x256xf32>, i32 -> vector<72x256xf32>
    %c1_56 = arith.constant 1 : index
    %c0_57 = arith.constant 0 : index
    %94 = vector.load %arg3[%c1_56, %c0_57] : memref<9x256xf32, #tpu.memory_space<vmem>>, vector<1x256xf32>
    %95 = vector.broadcast %94 : vector<1x256xf32> to vector<72x256xf32>
    %96 = arith.mulf %93, %95 : vector<72x256xf32>
    %c15_i32_58 = arith.constant 15 : i32
    %97 = tpu.dynamic_rotate %88 by %c15_i32_58 dim 1 : vector<72x256xf32>, i32 -> vector<72x256xf32>
    %c2_59 = arith.constant 2 : index
    %c0_60 = arith.constant 0 : index
    %98 = vector.load %arg3[%c2_59, %c0_60] : memref<9x256xf32, #tpu.memory_space<vmem>>, vector<1x256xf32>
    %99 = vector.broadcast %98 : vector<1x256xf32> to vector<72x256xf32>
    %100 = arith.mulf %97, %99 : vector<72x256xf32>
    %c1_i32_61 = arith.constant 1 : i32
    %101 = tpu.dynamic_rotate %88 by %c1_i32_61 dim 1 : vector<72x256xf32>, i32 -> vector<72x256xf32>
    %c3_62 = arith.constant 3 : index
    %c0_63 = arith.constant 0 : index
    %102 = vector.load %arg3[%c3_62, %c0_63] : memref<9x256xf32, #tpu.memory_space<vmem>>, vector<1x256xf32>
    %103 = vector.broadcast %102 : vector<1x256xf32> to vector<72x256xf32>
    %104 = arith.mulf %101, %103 : vector<72x256xf32>
    %c255_i32_64 = arith.constant 255 : i32
    %105 = tpu.dynamic_rotate %88 by %c255_i32_64 dim 1 : vector<72x256xf32>, i32 -> vector<72x256xf32>
    %c5_65 = arith.constant 5 : index
    %c0_66 = arith.constant 0 : index
    %106 = vector.load %arg3[%c5_65, %c0_66] : memref<9x256xf32, #tpu.memory_space<vmem>>, vector<1x256xf32>
    %107 = vector.broadcast %106 : vector<1x256xf32> to vector<72x256xf32>
    %108 = arith.mulf %105, %107 : vector<72x256xf32>
    %c241_i32_67 = arith.constant 241 : i32
    %109 = tpu.dynamic_rotate %88 by %c241_i32_67 dim 1 : vector<72x256xf32>, i32 -> vector<72x256xf32>
    %c6_68 = arith.constant 6 : index
    %c0_69 = arith.constant 0 : index
    %110 = vector.load %arg3[%c6_68, %c0_69] : memref<9x256xf32, #tpu.memory_space<vmem>>, vector<1x256xf32>
    %111 = vector.broadcast %110 : vector<1x256xf32> to vector<72x256xf32>
    %112 = arith.mulf %109, %111 : vector<72x256xf32>
    %c240_i32_70 = arith.constant 240 : i32
    %113 = tpu.dynamic_rotate %88 by %c240_i32_70 dim 1 : vector<72x256xf32>, i32 -> vector<72x256xf32>
    %c7_71 = arith.constant 7 : index
    %c0_72 = arith.constant 0 : index
    %114 = vector.load %arg3[%c7_71, %c0_72] : memref<9x256xf32, #tpu.memory_space<vmem>>, vector<1x256xf32>
    %115 = vector.broadcast %114 : vector<1x256xf32> to vector<72x256xf32>
    %116 = arith.mulf %113, %115 : vector<72x256xf32>
    %c239_i32_73 = arith.constant 239 : i32
    %117 = tpu.dynamic_rotate %88 by %c239_i32_73 dim 1 : vector<72x256xf32>, i32 -> vector<72x256xf32>
    %c8_74 = arith.constant 8 : index
    %c0_75 = arith.constant 0 : index
    %118 = vector.load %arg3[%c8_74, %c0_75] : memref<9x256xf32, #tpu.memory_space<vmem>>, vector<1x256xf32>
    %119 = vector.broadcast %118 : vector<1x256xf32> to vector<72x256xf32>
    %120 = arith.mulf %117, %119 : vector<72x256xf32>
    %121 = tpu.concatenate %92, %96, %100, %104, %88, %108, %112, %116, %120 in 0 : vector<72x256xf32>, vector<72x256xf32>, vector<72x256xf32>, vector<72x256xf32>, vector<72x256xf32>, vector<72x256xf32>, vector<72x256xf32>, vector<72x256xf32>, vector<72x256xf32> -> vector<648x256xf32>
    %c0_76 = arith.constant 0 : index
    %c0_77 = arith.constant 0 : index
    %122 = vector.load %arg8[%c0_76, %c0_77] : memref<4x648xf32, #tpu.memory_space<vmem>>, vector<4x648xf32>
    %cst_78 = arith.constant dense<0.000000e+00> : vector<4x256xf32>
    %123 = tpu.matmul %122, %121, %cst_78 {dimension_numbers = #tpu.dot_dimension_numbers<[1], [0], [0], [1], [0, 0, 1, 1], [], []>} : vector<4x648xf32>, vector<648x256xf32>, vector<4x256xf32> -> vector<4x256xf32>
    %c0_79 = arith.constant 0 : index
    %c0_80 = arith.constant 0 : index
    %124 = vector.load %arg9[%c0_79, %c0_80] : memref<4x1xf32, #tpu.memory_space<vmem>>, vector<4x1xf32>
    %125 = vector.broadcast %124 : vector<4x1xf32> to vector<4x256xf32>
    %126 = arith.addf %123, %125 : vector<4x256xf32>
    %127 = vector.broadcast %86 : vector<1x256xf32> to vector<4x256xf32>
    %128 = arith.mulf %126, %127 : vector<4x256xf32>
    %c0_81 = arith.constant 0 : index
    %c0_82 = arith.constant 0 : index
    %c0_83 = arith.constant 0 : index
    %129 = vector.load %arg2[%c0_81, %c0_82, %c0_83] : memref<1x4x256xf32, #tpu.memory_space<vmem>>, vector<1x4x256xf32>
    %130 = vector.shape_cast %129 : vector<1x4x256xf32> to vector<4x256xf32>
    %131 = arith.addf %128, %130 : vector<4x256xf32>
    %c0_84 = arith.constant 0 : index
    %c0_85 = arith.constant 0 : index
    %c0_86 = arith.constant 0 : index
    %132 = vector.load %arg10[%c0_84, %c0_85, %c0_86] : memref<1x4x256xf32, #tpu.memory_space<vmem>>, vector<1x4x256xf32>
    %133 = vector.shape_cast %132 : vector<1x4x256xf32> to vector<4x256xf32>
    %134 = vector.shape_cast %131 : vector<4x256xf32> to vector<1x4x256xf32>
    tpu.vector_store %arg10[%c0_84, %c0_85, %c0_86], %134 {strides = array<i32>} : memref<1x4x256xf32, #tpu.memory_space<vmem>>, vector<1x4x256xf32>,
    return
  }
  func.func @transform_0(%arg0: i32) -> (i32, i32, i32) {
    %c0_i32 = arith.constant 0 : i32
    %c0_i32_0 = arith.constant 0 : i32
    %c0_i32_1 = arith.constant 0 : i32
    return %arg0, %c0_i32, %c0_i32_0 : i32, i32, i32
  }
  func.func @transform_1(%arg0: i32) -> (i32, i32, i32) {
    %c0_i32 = arith.constant 0 : i32
    %c0_i32_0 = arith.constant 0 : i32
    %c0_i32_1 = arith.constant 0 : i32
    return %arg0, %c0_i32, %c0_i32_0 : i32, i32, i32
  }
  func.func @transform_2(%arg0: i32) -> (i32, i32) {
    %c0_i32 = arith.constant 0 : i32
    %c0_i32_0 = arith.constant 0 : i32
    %c0_i32_1 = arith.constant 0 : i32
    return %c0_i32, %c0_i32_0 : i32, i32
  }
  func.func @transform_3(%arg0: i32) -> (i32, i32) {
    %c0_i32 = arith.constant 0 : i32
    %c0_i32_0 = arith.constant 0 : i32
    %c0_i32_1 = arith.constant 0 : i32
    return %c0_i32, %c0_i32_0 : i32, i32
  }
  func.func @transform_4(%arg0: i32) -> (i32, i32) {
    %c0_i32 = arith.constant 0 : i32
    %c0_i32_0 = arith.constant 0 : i32
    %c0_i32_1 = arith.constant 0 : i32
    return %c0_i32, %c0_i32_0 : i32, i32
  }
  func.func @transform_5(%arg0: i32) -> (i32, i32) {
    %c0_i32 = arith.constant 0 : i32
    %c0_i32_0 = arith.constant 0 : i32
    %c0_i32_1 = arith.constant 0 : i32
    return %c0_i32, %c0_i32_0 : i32, i32
  }
  func.func @transform_6(%arg0: i32) -> (i32, i32) {
    %c0_i32 = arith.constant 0 : i32
    %c0_i32_0 = arith.constant 0 : i32
    %c0_i32_1 = arith.constant 0 : i32
    return %c0_i32, %c0_i32_0 : i32, i32
  }
  func.func @transform_7(%arg0: i32) -> (i32, i32) {
    %c0_i32 = arith.constant 0 : i32
    %c0_i32_0 = arith.constant 0 : i32
    %c0_i32_1 = arith.constant 0 : i32
    return %c0_i32, %c0_i32_0 : i32, i32
  }
  func.func @transform_8(%arg0: i32) -> (i32, i32) {
    %c0_i32 = arith.constant 0 : i32
    %c0_i32_0 = arith.constant 0 : i32
    %c0_i32_1 = arith.constant 0 : i32
    return %c0_i32, %c0_i32_0 : i32, i32
  }
  func.func @transform_9(%arg0: i32) -> (i32, i32, i32) {
    %c0_i32 = arith.constant 0 : i32
    %c0_i32_0 = arith.constant 0 : i32
    %c0_i32_1 = arith.constant 0 : i32
    return %arg0, %c0_i32, %c0_i32_0 : i32, i32, i32
  }
}

</mosaic_0001>

<bundles_post_ra>
// kernel: tpu_custom_call.1
= control target key start
LH: loop header
LB: loop body
LE: loop exit
PB: predicated region body
PF: predicated region fallthrough
CT: control target
= control target key end

     0   :  { %s6351_s0 = inlined_call_operand.hbm [shape: f32[2,4,256], index: 0, kind: input, shape index: {}]   ;;  %s6352_s1 = inlined_call_operand.hbm [shape: f32[2,4,256], index: 1, kind: input, shape index: {}]   ;;  %s6353_s2 = inlined_call_operand.hbm [shape: f32[9,256], index: 2, kind: input, shape index: {}]   ;;  %s6354_s3 = inlined_call_operand.vmem [shape: f32[72,72], index: 3, kind: input, shape index: {}]   ;;  %s6355_s4 = inlined_call_operand.vmem [shape: f32[72,1], index: 4, kind: input, shape index: {}]   ;;  %s6356_s5 = inlined_call_operand.hbm [shape: f32[16,64], index: 5, kind: input, shape index: {}]   ;;  %s6357_s6 = inlined_call_operand.vmem [shape: f32[16,1], index: 6, kind: input, shape index: {}]   ;;  %s6358_s7 = inlined_call_operand.vmem [shape: f32[4,648], index: 7, kind: input, shape index: {}]   ;;  %s6359_s8 = inlined_call_operand.vmem [shape: f32[4,1], index: 8, kind: input, shape index: {}]   ;;  %s6360_s9 = inlined_call_operand.hbm [shape: f32[2,4,256], index: 9, kind: output, shape index: {}]  }
   0x1   :  { %6544 = sst [smem:[#allocation180_spill]] %s6353_s2 }
   0x2   :  { %6545 = sst [smem:[#allocation181_spill]] %s6356_s5 }
   0x3   :  { %14 = vsyncpa [#allocation6], 0 }
   0x4   :  { %16 = vsyncpa [#allocation6 + $0x1], 0 }
   0x5   :  { %17 = vsyncpa [#allocation9], 0 }
   0x6   :  { %19 = vsyncpa [#allocation9 + $0x1], 0 }
   0x7   :  { %20 = vsyncpa [#allocation12], 0 }
   0x8   :  { %21 = vsyncpa [#allocation7], 0 }
   0x9   :  { %23 = vsyncpa [#allocation7 + $0x1], 0  ;;  %s3650_s30 = smov 0   ;;  %s3652_s10 = smov 0  }
   0xa   :  { %s3654_s11 = smov 0   ;;  %s3656_s12 = smov 0  }
   0xb LB: > { %6546 = sst [smem:[#allocation19_spill]] %s3572_s11  ;;  %s3671_s13 = sadd.s32 4294967295, %s3576_s12   ;;  %s3576_s12 = sphi %s3656_s12, %s6993_s12   ;;  %s3572_s11 = sphi %s3654_s11, %s6995_s11   ;;  %s3568_s10 = sphi %s3652_s10, %s6997_s10   ;;  %s3564_s30 = sphi %s3650_s30, %s6996_s30  }
   0xc   : > { %s3096_s14 = sadd.s32 4294967294, %s3576_s12   ;;  %p49_p0 = scmp.ne.s32.totalorder %s3568_s10, %s3564_s30 }
   0xd   : > { %p6361_p1 = scmp.eq.s32.totalorder %s3671_s13, 0  ;;  %p252_p3 = scmp.eq.s32.totalorder %s3096_s14, 1 }
   0xe   : > { %p3097_p5 = scmp.ge.s32.totalorder %s3576_s12, 1  ;;  %p259_p7 = scmp.lt.s32.totalorder %s3576_s12, 3 }
   0xf   : > { %p3680_p4 = por %p6361_p1, %p49_p0  ;;  %p3685_p6 = por %p252_p3, %p49_p0 }
  0x10   : > { %p3690_p8 = pnand %p3097_p5, %p259_p7  ;;  %s3578_s18 = smov [#allocation10]  }
  0x11   : > { %s6547_s15 = scalar_select %p3680_p4, 1, 0 }
  0x12   : > { %s6548_s16 = scalar_select %p3685_p6, 1, 0 }
  0x13   : > { %s6550_s17 = scalar_select %p3690_p8, 1, 0 }
  0x14   : > { %6549 = sst [smem:[#allocation20_spill]] %s6548_s16  ;;  %s271_s19 = sshll.u32 %s3578_s18, 4  ;;  %s272_s19 = int_to_ptr.vmem [resolvable:$true] %s271_s19 }
  0x15   : > { %p3309_p9 = pneg %p3690_p8  ;;  %s3579_s21 = smov [#allocation11]  }
  0x16   : > { %s290_s22 = sshll.u32 %s3579_s21, 4  ;;  %s3403_s23 = scalar_lea.vmem %s272_s19, 512  ;;  %s291_s22 = int_to_ptr.vmem [resolvable:$true] %s290_s22 }
  0x17   : > { %p3699_p11 = pnand %p3309_p9, %p6361_p1  ;;  %p3404_p13 = scmp.ne.s32.totalorder %s272_s19, %s3403_s23 }
  0x18   : > { %p3411_p5 = scmp.lt.s32.totalorder %s272_s19, %s272_s19  ;;  %p3412_p7 = scmp.lt.s32.totalorder %s3403_s23, %s3403_s23 }
  0x19   : > { %p3394_p12 = pneg %p3699_p11 }
  0x1a   : > { %p3413_p10 = por %p3412_p7, %p3411_p5 }
  0x1b   : > { %p3406_p0 = pnand %p3404_p13, %p3394_p12 }
  0x1d   : > { %p3407_p3 = pneg %p3406_p0 }
  0x1f   : > { %p3414_p9 = pnand %p3413_p10, %p3407_p3 }
  0x21   : > { %3417 = shalt.err (!%p3414_p9)
}
  0x22   : > { %s3580_s24 = smov 256   ;;  %s3581_s25 = smov 16  }
  0x23   : > { %s6552_s2 = sld [smem:[#allocation180_spill]]  ;;  %s3429_s28 = scalar_lea.vmem %s291_s22, 256 }
  0x24   : > { %p3430_p1 = scmp.ne.s32.totalorder %s291_s22, %s3429_s28  ;;  %p3437_p2 = scmp.lt.s32.totalorder %s291_s22, %s291_s22 }
  0x25   : > { %p3438_p6 = scmp.lt.s32.totalorder %s3429_s28, %s3429_s28 }
  0x26   : > { %p3432_p13 = pnand %p3430_p1, %p3394_p12 }
  0x27   : > { %p3439_p5 = por %p3438_p6, %p3437_p2 }
  0x28   : > { %p3433_p0 = pneg %p3432_p13 }
  0x29   : > { %3312 = dma.hbm_to_vmem [thread:$0]  (!%p3699_p11), %s6552_s2, 512, %s272_s19, [#allocation9], %s3580_s24, %s3580_s24, %s3581_s25  }
  0x2a   : > { %p3440_p10 = pnand %p3439_p5, %p3433_p0 }
  0x2c   : > { %3443 = shalt.err (!%p3440_p10)
}
  0x2d   : > { %s3582_s29 = smov 128   ;;  %s3583_s14 = smov 8  }
  0x2e   : > { %s6553_s5 = sld [smem:[#allocation181_spill]]  ;;  %s3722_s21 = sadd.s32 1, %s3576_s12  }
  0x2f   : > { %6554 = sst [smem:[#allocation21_spill]] %s3722_s21  ;;  %s33_s23 = ssub.s32 %s3576_s12, %s3722_s21 }
  0x30   : > { %p34_p1 = scmp.eq.s32.totalorder %s33_s23, 0  ;;  %s36_s24 = sadd.s32 1, %s3572_s11 }
  0x31   : > { %p43_p2 = scmp.ne.s32.totalorder %s3572_s11, %s3568_s10  ;;  %p44_p6 = scmp.eq.s32.totalorder %s3576_s12, 0 }
  0x32   : > { %s3731_s25 = scalar_select %p34_p1, %s3572_s11, %s36_s24  }
  0x33   : > { %p45_p12 = por %p44_p6, %p43_p2  ;;  %p6556_p3 = scmp.eq.s32.totalorder %s3671_s13, 1 }
  0x34   : > { %3315 = dma.hbm_to_vmem [thread:$0]  (!%p3699_p11), %s6553_s5, 256, %s291_s22, [#allocation12], %s3582_s29, %s3582_s29, %s3583_s14  }
  0x35   : > { %6555 = sst [smem:[#allocation22_spill]] %s3731_s25  ;;  %p3735_p7 = por %p6556_p3, %p43_p2 }
  0x36   : > { %p3329_p9 = scmp.lt.s32.totalorder %s3576_s12, 2  ;;  %s313_s20 = sand.u32 1, %s3572_s11  }
  0x37   : > { %s6557_s26 = scalar_select %p3735_p7, 1, 0 }
  0x38   : > { %s3741_s22 = sshll.u32 %s313_s20, 3  ;;  %s3290_s27 = sshll.u32 %s3576_s12, 7 }
  0x39   : > { %s3747_s14 = scalar_lea.hbm %s6351_s0, %s3290_s27  ;;  %s317_s18 = scalar_lea.vmem [#allocation5], %s3741_s22 }
  0x3a   : > { %s325_s19 = sshll.u32 %s317_s18, 4  ;;  %p3752_p11 = pnand %p3329_p9, %p45_p12  ;;  %s3750_s19 = int_to_ptr.vmem [resolvable:$true] %s325_s19 }
  0x3b   : > { %s3759_s5 = scalar_lea.hbm %s6352_s1, %s3290_s27  ;;  %s332_s28 = sand.u32 1, %s3576_s12  }
  0x3c   : > { %s314_s29 = scalar_lea.sflag [#allocation6], %s313_s20  ;;  %s3444_s25 = scalar_lea.hbm %s3747_s14, 128 }
  0x3d   : > { %p3445_p13 = scmp.ne.s32.totalorder %s3747_s14, %s3444_s25  ;;  %p3446_p0 = pneg %p3752_p11 }
  0x3e   : > { %s3449_s21 = scalar_lea.hbm %s6351_s0, 256  ;;  %p3450_p1 = scmp.lt.s32.totalorder %s3747_s14, %s6351_s0 }
  0x3f   : > { %p3447_p5 = pnand %p3446_p0, %p3445_p13  ;;  %p3451_p2 = scmp.lt.s32.totalorder %s3449_s21, %s3444_s25 }
  0x41   : > { %p3448_p10 = pneg %p3447_p5  ;;  %p3452_p6 = por %p3451_p2, %p3450_p1 }
  0x43   : > { %p3453_p12 = pnand %p3452_p6, %p3448_p10 }
  0x45   : > { %3456 = shalt.err (!%p3453_p12)
}
  0x46   : > { %s3457_s20 = scalar_lea.vmem %s3750_s19, 128  ;;  %s3584_s11 = smov [#allocation5]  }
  0x47   : > { %p3458_p3 = scmp.ne.s32.totalorder %s3750_s19, %s3457_s20  ;;  %s3462_s27 = sshll.u32 %s3584_s11, 4  ;;  %s3463_s27 = int_to_ptr.vmem [resolvable:$false] %s3462_s27 }
  0x48   : > { %s3464_s24 = scalar_lea.vmem %s3463_s27, 256  ;;  %p3465_p5 = scmp.lt.s32.totalorder %s3750_s19, %s3463_s27 }
  0x49   : > { %p3460_p9 = pnand %p3458_p3, %p3446_p0  ;;  %p3466_p7 = scmp.lt.s32.totalorder %s3464_s24, %s3457_s20 }
  0x4b   : > { %p3461_p13 = pneg %p3460_p9  ;;  %p3467_p4 = por %p3466_p7, %p3465_p5 }
  0x4d   : > { %p3468_p1 = pnand %p3467_p4, %p3461_p13 }
  0x4f   : > { %3471 = shalt.err (!%p3468_p1)
}
  0x50   : > { %3319 = dma.hbm_to_vmem [thread:$0]  (!%p3752_p11), %s3747_s14, 128, %s3750_s19, %s314_s29  }
  0x51   : > { %s336_s16 = scalar_lea.vmem [#allocation8], %s3741_s22  ;;  %s333_s25 = scalar_lea.sflag [#allocation9], %s332_s28 }
  0x52   : > { %s344_s21 = sshll.u32 %s336_s16, 4  ;;  %s3472_s18 = scalar_lea.hbm %s3759_s5, 128  ;;  %s345_s21 = int_to_ptr.vmem [resolvable:$true] %s344_s21 }
  0x53   : > { %p3473_p7 = scmp.ne.s32.totalorder %s3759_s5, %s3472_s18  ;;  %s3477_s11 = scalar_lea.hbm %s6352_s1, 256 }
  0x54   : > { %p3478_p2 = scmp.lt.s32.totalorder %s3759_s5, %s6352_s1  ;;  %p3479_p6 = scmp.lt.s32.totalorder %s3477_s11, %s3472_s18 }
  0x55   : > { %p3475_p4 = pnand %p3473_p7, %p3446_p0 }
  0x56   : > { %p3480_p12 = por %p3479_p6, %p3478_p2 }
  0x57   : > { %p3476_p10 = pneg %p3475_p4 }
  0x59   : > { %p3481_p3 = pnand %p3480_p12, %p3476_p10 }
  0x5b   : > { %3484 = shalt.err (!%p3481_p3)
}
  0x5c   : > { %s3485_s22 = scalar_lea.vmem %s345_s21, 128  ;;  %s3585_s14 = smov [#allocation8]  }
  0x5d   : > { %p3486_p9 = scmp.ne.s32.totalorder %s345_s21, %s3485_s22  ;;  %s3490_s19 = sshll.u32 %s3585_s14, 4  ;;  %s3491_s19 = int_to_ptr.vmem [resolvable:$false] %s3490_s19 }
  0x5e   : > { %s3492_s28 = scalar_lea.vmem %s3491_s19, 256  ;;  %p3493_p1 = scmp.lt.s32.totalorder %s345_s21, %s3491_s19 }
  0x5f   : > { %p3488_p13 = pnand %p3486_p9, %p3446_p0  ;;  %p3494_p7 = scmp.lt.s32.totalorder %s3492_s28, %s3485_s22 }
  0x61   : > { %p3489_p5 = pneg %p3488_p13  ;;  %p3495_p4 = por %p3494_p7, %p3493_p1 }
  0x63   : > { %p3496_p8 = pnand %p3495_p4, %p3489_p5 }
  0x65   : > { %3499 = shalt.err (!%p3496_p8)
}
  0x66   : > { %3322 = dma.hbm_to_vmem [thread:$0]  (!%p3752_p11), %s3759_s5, 128, %s345_s21, %s333_s25  }
  0x67   : > { %p6559_p10 = scmp.ne.s32.totalorder %s6550_s17, 0 }
  0x69   : > { %353 = sbr.rel (%p6559_p10) target bundleno = 1935 (0x78f), region = 56 }
  0x6e   : > { %s3810_s29 = sand.u32 1, %s3568_s10   ;;  %p6560_p0 = scmp.ne.s32.totalorder %s6547_s15, 0 }
  0x6f   : > { %s3813_s16 = sshll.u32 %s3810_s29, 3  ;;  %s356_s18 = scalar_lea.sflag [#allocation6], %s3810_s29 }
  0x70   : > { %s359_s2 = scalar_lea.vmem [#allocation5], %s3813_s16 }
  0x71   : > { %3543 = dma.done.wait (%p6560_p0), %s356_s18, 128  }
  0x72   : > { %3545 = vsyncadd (%p6560_p0), %s356_s18, 4294967168  ;;  %s364_s5 = sand.u32 1, %s3671_s13   ;;  %s6369_s23 = scalar_lea.vmem [#allocation8], %s3813_s16 }
  0x73   : > { %s365_s17 = scalar_lea.sflag [#allocation9], %s364_s5 }
  0x74   : > { %3547 = dma.done.wait (%p6560_p0), %s365_s17, 128  }
  0x75   : > { %3549 = vsyncadd (%p6560_p0), %s365_s17, 4294967168  ;;  %p6561_p8 = scmp.eq.s32.totalorder %s3671_s13, 0 }
  0x77   : > { %3551 = dma.done.wait (%p6561_p8), [#allocation9], 512   ;;  %p6562_p11 = pmov %p6561_p8 }
  0x78   : > { %p6563_p2 = pmov %p6561_p8 }
  0x79   : > { %3553 = vsyncadd (%p6562_p11), [#allocation9], 4294966784 }
  0x7a   : > { %3555 = dma.done.wait (%p6563_p2), [#allocation12], 256   ;;  %p6564_p6 = pmov %p6563_p2 }
  0x7b   : > { %v416_v0 = vld [vmem:[%s359_s2] sm:$0xff]  ;;  %v417_v1 = vld [vmem:[%s6369_s23] sm:$0xff]  ;;  %vm424_vm0 = vcmask 1043456   ;;  %s3586_s15 = smov 112   ;;  %s6372_s21 = smov 111   ;;  %v3591_v6 = vmov 0.0   ;;  %v6376_v18 = vlaneseq }
  0x7c   : > { %3557 = vsyncadd (%p6564_p6), [#allocation12], 4294967040  ;;  %v422_v2 = vcombine.low %v417_v1, %v417_v1  ;;  %v419_v3 = vcombine.high %v416_v0, %v416_v0  ;;  %s6370_s25 = smov 113   ;;  %s3589_s20 = smov 127   ;;  %759 = vmatprep.mubr.f32.mxu0 %v3591_v6  ;;  %899 = vmatprep.mubr.f32.mxu1 %v3591_v6  ;;  %v620_v7 = vld [vmem:[%s6355_s4 + $0x38] sm:$0xff]  ;;  %v619_v8 = vld [vmem:[%s6355_s4 + $0x30] sm:$0xff] }
  0x7d   : > { %s3590_s11 = smov 1   ;;  %s3592_s27 = smov 15   ;;  %v6374_v9 = vmov 0   ;;  %v617_v10 = vld [vmem:[%s6355_s4 + $0x20] sm:$0xff]  ;;  %v618_v11 = vld [vmem:[%s6355_s4 + $0x28] sm:$0xff]  ;;  %v615_v12 = vld [vmem:[%s6355_s4 + $0x10] sm:$0xff] }
  0x7e   : > { %v3837_v4 = vsel %vm424_vm0, %v416_v0, %v422_v2  ;;  %v3843_v5 = vsel %vm424_vm0, %v419_v3, %v417_v1  ;;  %s3593_s24 = smov 16   ;;  %s3594_s22 = smov 17   ;;  %3384 = vset.pattern.permute.xlu0 %v6374_v9  ;;  %3385 = vset.pattern.permute.xlu1 %v6374_v9  ;;  %v616_v13 = vld [vmem:[%s6355_s4 + $0x18] sm:$0xff]  ;;  %v613_v14 = vld [vmem:[%s6355_s4] sm:$0xff]  ;;  %v614_v15 = vld [vmem:[%s6355_s4 + $0x8] sm:$0xff]  ;;  %v3908_v19 = vshrl.u32 %v6376_v18, 7 }
  0x7f   : > { %560 = vrot.lane.b32.xlu1 %v3837_v4, %s3586_s15  ;;  %582 = vrot.lane.b32.xlu0 %v3837_v4, %s6372_s21  ;;  %v816_v16 = vld [vmem:[%s6357_s6] sm:$0xff]  ;;  %v3911_v20 = vand.u32 127, %v6376_v18  ;;  %v590_v23 = vld [vmem:[#allocation10 + $0x10] ss:$8 sm:$0x3]  ;;  %vm667_vm9 = vcmask 588800  }
  0x80   : > { %v621_v17 = vld [vmem:[%s6355_s4 + $0x40] sm:$0xff]  ;;  %v3914_v21 = vsub.s32 1, %v3908_v19  ;;  %v3917_v22 = vsub.s32 0, %v3908_v19  ;;  %v568_v26 = vld [vmem:[#allocation10 + $0x7] ss:$8 sm:$0x3] }
  0x81   : > { %6565 = vst [vmem:[#allocation23_spill] sm:$0xff] %v3911_v20  ;;  %vm6535_vm1 = vcmp.lt.s32.totalorder %v3911_v20, 112  ;;  %vm6536_vm2 = vcmp.lt.s32.totalorder %v3911_v20, 111  ;;  %v546_v29 = vld [vmem:[#allocation10 + $0x6] ss:$8 sm:$0x3] }
  0x82   : > { %6566 = vst [vmem:[#allocation24_spill] sm:$0xff] %v3914_v21  ;;  %6567 = vst [vmem:[#allocation25_spill] sm:$0xff] %v3917_v22  ;;  %v599_v27 = vrot.slane %v590_v23, %v3914_v21  ;;  %v595_v28 = vrot.slane %v590_v23, %v3917_v22  ;;  %vm6539_vm3 = vcmp.lt.s32.totalorder %v3911_v20, 113  ;;  %v577_v32 = vrot.slane %v568_v26, %v3914_v21  ;;  %v524_v42 = vld [vmem:[#allocation10 + $0x5] ss:$8 sm:$0x3] }
  0x83   : > { %562 = vrot.lane.b32.xlu1 %v3843_v5, %s3586_s15  ;;  %584 = vrot.lane.b32.xlu0 %v3843_v5, %s6372_s21  ;;  %v573_v33 = vrot.slane %v568_v26, %v3917_v22  ;;  %v555_v37 = vrot.slane %v546_v29, %v3914_v21  ;;  %v551_v41 = vrot.slane %v546_v29, %v3917_v22  ;;  %vm6534_vm4 = vcmp.lt.s32.totalorder %v3911_v20, 127  ;;  %v502_v53 = vld [vmem:[#allocation10 + $0x3] ss:$8 sm:$0x3]  ;;  %s6597_s21 = smov 111   ;;  %s6988_s2 = scalar_lea.vmem [#allocation8], %s3813_s16 }
  0x84   : > { %v533_v51 = vrot.slane %v524_v42, %v3914_v21  ;;  %v529_v52 = vrot.slane %v524_v42, %v3917_v22  ;;  %vm6538_vm5 = vcmp.lt.s32.totalorder %v3911_v20, 1  ;;  %v511_v60 = vrot.slane %v502_v53, %v3914_v21  ;;  %v480_v62 = vld [vmem:[#allocation10 + $0x2] ss:$8 sm:$0x3]  ;;  %s3292_s5 = sshll.u32 %s3671_s13, 7  ;;  %s415_s23 = scalar_lea.vmem [#allocation13], %s3813_s16 }
  0x85   : > { %v507_v61 = vrot.slane %v502_v53, %v3917_v22  ;;  %vm6537_vm6 = vcmp.lt.s32.totalorder %v3911_v20, 15  ;;  %vm6542_vm7 = vcmp.lt.s32.totalorder %v3911_v20, 16  ;;  %vm6540_vm8 = vcmp.lt.s32.totalorder %v3911_v20, 17  ;;  %v608_v42 = vld [vmem:[%s6354_s3 + $0x20] sm:$0xff]  ;;  %s2984_s17 = sshll.u32 %s415_s23, 4  ;;  %p6989_p3 = scmp.ne.s32.totalorder %s6557_s26, 0  ;;  %s2985_s17 = int_to_ptr.vmem [resolvable:$true] %s2984_s17 }
  0x86   : > { %vm828_vm10 = vcmask 523264   ;;  %vm6533_vm11 = vcmask 64512  }
  0x87   : > { %540 = vrot.lane.b32.xlu1 %v3843_v5, %s6370_s25  ;;  %538 = vrot.lane.b32.xlu0 %v3837_v4, %s6370_s25  ;;  %s6602_s25 = smov 113  }
  0x8b   : > { %518 = vrot.lane.b32.xlu1 %v3843_v5, %s3589_s20  ;;  %516 = vrot.lane.b32.xlu0 %v3837_v4, %s3589_s20 }
  0x8f   : > { %496 = vrot.lane.b32.xlu1 %v3843_v5, %s3590_s11  ;;  %494 = vrot.lane.b32.xlu0 %v3837_v4, %s3590_s11 }
  0x93   : > { %474 = vrot.lane.b32.xlu1 %v3843_v5, %s3592_s27  ;;  %472 = vrot.lane.b32.xlu0 %v3837_v4, %s3592_s27 }
  0x97   : > { %452 = vrot.lane.b32.xlu1 %v3843_v5, %s3593_s24  ;;  %450 = vrot.lane.b32.xlu0 %v3837_v4, %s3593_s24 }
  0x9b   : > { %429 = vrot.lane.b32.xlu1 %v3843_v5, %s3594_s22  ;;  %427 = vrot.lane.b32.xlu0 %v3837_v4, %s3594_s22 }
  0x9f   : > { %659 = vperm.xlu0 %3384, %v620_v7   ;;  %654 = vperm.xlu1 %3385, %v619_v8   ;;  %v489_v8 = vrot.slane %v480_v62, %v3914_v21 }
  0xa3   : > { %644 = vperm.xlu0 %3384, %v617_v10   ;;  %649 = vperm.xlu1 %3385, %v618_v11   ;;  %v485_v10 = vrot.slane %v480_v62, %v3917_v22  ;;  %v458_v11 = vld [vmem:[#allocation10 + $0x1] ss:$8 sm:$0x3] }
  0xa4   : > { %v463_v23 = vrot.slane %v458_v11, %v3917_v22 }
  0xa7   : > { %634 = vperm.xlu0 %3384, %v615_v12   ;;  %639 = vperm.xlu1 %3385, %v616_v13  }
  0xab   : > { %624 = vperm.xlu0 %3384, %v613_v14   ;;  %629 = vperm.xlu1 %3385, %v614_v15  }
  0xaf   : > { %820 = vperm.xlu1 %3385, %v816_v16   ;;  %664 = vperm.xlu0 %3384, %v621_v17   ;;  %v467_v17 = vrot.slane %v458_v11, %v3914_v21 }
  0xf1   : > { %v561_v24 = vpop.permute.xlu1 %560  ;;  %v583_v25 = vpop.permute.xlu0 %582 }
  0xf5   : > { %v563_v30 = vpop.permute.xlu1 %562  ;;  %v585_v31 = vpop.permute.xlu0 %584 }
  0xf6   : > { %v566_v34 = vsel %vm6535_vm1, %v563_v30, %v561_v24  ;;  %v588_v35 = vsel %vm6536_vm2, %v585_v31, %v583_v25  ;;  %v587_v36 = vsel %vm6536_vm2, %v583_v25, %v585_v31  ;;  %v565_v38 = vsel %vm6535_vm1, %v561_v24, %v563_v30 }
  0xf7   : > { %v603_v39 = vmul.f32 %v599_v27, %v588_v35  ;;  %v602_v40 = vmul.f32 %v595_v28, %v587_v36  ;;  %v581_v45 = vmul.f32 %v577_v32, %v566_v34  ;;  %v580_v48 = vmul.f32 %v573_v33, %v565_v38  ;;  %v604_v38 = vld [vmem:[%s6354_s3] sm:$0xff] }
  0xf9   : > { %v541_v43 = vpop.permute.xlu1 %540  ;;  %709 = vmatprep.subr.mxu0 %v603_v39  ;;  %v539_v44 = vpop.permute.xlu0 %538  ;;  %v605_v39 = vld [vmem:[%s6354_s3 + $0x8] sm:$0xff] }
  0xfa   : > { %v543_v46 = vsel %vm6539_vm3, %v539_v44, %v541_v43  ;;  %v544_v47 = vsel %vm6539_vm3, %v541_v43, %v539_v44  ;;  %710 = vmatpush1.msra.mxu0 %v602_v40  ;;  %v606_v40 = vld [vmem:[%s6354_s3 + $0x10] sm:$0xff]  ;;  %v609_v43 = vld [vmem:[%s6354_s3 + $0x28] sm:$0xff] }
  0xfb   : > { %711 = vmatprep.subr.mxu0 %v581_v45  ;;  %v559_v49 = vmul.f32 %v555_v37, %v544_v47  ;;  %v558_v50 = vmul.f32 %v551_v41, %v543_v46  ;;  %v607_v41 = vld [vmem:[%s6354_s3 + $0x18] sm:$0xff]  ;;  %v610_v44 = vld [vmem:[%s6354_s3 + $0x30] sm:$0xff]  ;;  %v612_v46 = vld [vmem:[%s6354_s3 + $0x40] sm:$0xff] }
  0xfc   : > { %712 = vmatpush1.msra.mxu0 %v580_v48  ;;  %v611_v45 = vld [vmem:[%s6354_s3 + $0x38] sm:$0xff] }
  0xfd   : > { %v519_v54 = vpop.permute.xlu1 %518  ;;  %713 = vmatprep.subr.mxu0 %v559_v49  ;;  %v517_v55 = vpop.permute.xlu0 %516 }
  0xfe   : > { %v521_v56 = vsel %vm6534_vm4, %v517_v55, %v519_v54  ;;  %v522_v57 = vsel %vm6534_vm4, %v519_v54, %v517_v55  ;;  %714 = vmatpush1.msra.mxu0 %v558_v50 }
  0xff   : > { %v537_v58 = vmul.f32 %v533_v51, %v522_v57  ;;  %v536_v59 = vmul.f32 %v529_v52, %v521_v56 }
 0x101   : > { %v497_v63 = vpop.permute.xlu1 %496  ;;  %715 = vmatprep.subr.mxu0 %v537_v58  ;;  %v495_v0 = vpop.permute.xlu0 %494 }
 0x102   : > { %v499_v1 = vsel %vm6538_vm5, %v495_v0, %v497_v63  ;;  %v500_v2 = vsel %vm6538_vm5, %v497_v63, %v495_v0  ;;  %716 = vmatpush1.msra.mxu0 %v536_v59 }
 0x103   : > { %717 = vmatprep.subr.mxu0 %v3843_v5  ;;  %v515_v3 = vmul.f32 %v511_v60, %v499_v1  ;;  %v514_v7 = vmul.f32 %v507_v61, %v500_v2 }
 0x104   : > { %718 = vmatpush1.msra.mxu0 %v3837_v4  ;;  %v436_v4 = vld [vmem:[#allocation10] ss:$8 sm:$0x3] }
 0x105   : > { %v475_v12 = vpop.permute.xlu1 %474  ;;  %719 = vmatprep.subr.mxu0 %v515_v3  ;;  %v473_v13 = vpop.permute.xlu0 %472  ;;  %v445_v30 = vrot.slane %v436_v4, %v3914_v21  ;;  %v441_v31 = vrot.slane %v436_v4, %v3917_v22 }
 0x106   : > { %v477_v14 = vsel %vm6537_vm6, %v473_v13, %v475_v12  ;;  %v478_v15 = vsel %vm6537_vm6, %v475_v12, %v473_v13  ;;  %720 = vmatpush1.msra.mxu0 %v514_v7 }
 0x107   : > { %v493_v5 = vmul.f32 %v489_v8, %v477_v14  ;;  %v492_v16 = vmul.f32 %v485_v10, %v478_v15 }
 0x109   : > { %v453_v24 = vpop.permute.xlu1 %452  ;;  %721 = vmatprep.subr.mxu0 %v493_v5  ;;  %v451_v25 = vpop.permute.xlu0 %450 }
 0x10a   : > { %v455_v26 = vsel %vm6542_vm7, %v451_v25, %v453_v24  ;;  %v456_v27 = vsel %vm6542_vm7, %v453_v24, %v451_v25  ;;  %722 = vmatpush1.msra.mxu0 %v492_v16 }
 0x10b   : > { %v471_v28 = vmul.f32 %v467_v17, %v455_v26  ;;  %v470_v29 = vmul.f32 %v463_v23, %v456_v27 }
 0x10d   : > { %v430_v32 = vpop.permute.xlu1 %429  ;;  %723 = vmatprep.subr.mxu0 %v471_v28  ;;  %v428_v33 = vpop.permute.xlu0 %427 }
 0x10e   : > { %v434_v34 = vsel %vm6540_vm8, %v428_v33, %v430_v32  ;;  %v435_v35 = vsel %vm6540_vm8, %v430_v32, %v428_v33  ;;  %724 = vmatpush1.msra.mxu0 %v470_v29  ;;  %v814_v33 = vld [vmem:[#allocation11] sm:$0xff] }
 0x10f   : > { %v449_v36 = vmul.f32 %v445_v30, %v434_v34  ;;  %v448_v37 = vmul.f32 %v441_v31, %v435_v35 }
 0x111   : > { %725 = vmatprep.subr.mxu0 %v449_v36  ;;  %v815_v36 = vld [vmem:[#allocation11 + $0x8] sm:$0xff] }
 0x112   : > { %726 = vmatpush1.msra.mxu0 %v448_v37 }
 0x113   : > { %3113 = vmatmul.mubr.msk.f32.vlgmr.msra.gmra.mxu0 %vm667_vm9, %v604_v38 }
 0x114   : > { %765 = vmatprep.mubr.f32.mxu0 %v3591_v6 }
 0x117   : > { %3114 = vmatmul.mubr.msk.f32.gmra.mxu0 %vm667_vm9, %v605_v39 }
 0x118   : > { %771 = vmatprep.mubr.f32.mxu0 %v3591_v6 }
 0x11a   : > { %v655_v59 = vpop.permute.xlu1 %654  ;;  %v660_v60 = vpop.permute.xlu0 %659 }
 0x11b   : > { %3115 = vmatmul.mubr.msk.f32.gmra.mxu0 %vm667_vm9, %v606_v40 }
 0x11c   : > { %777 = vmatprep.mubr.f32.mxu0 %v3591_v6 }
 0x11e   : > { %v650_v0 = vpop.permute.xlu1 %649  ;;  %v645_v1 = vpop.permute.xlu0 %644 }
 0x11f   : > { %3116 = vmatmul.mubr.msk.f32.gmra.mxu0 %vm667_vm9, %v607_v41 }
 0x120   : > { %783 = vmatprep.mubr.f32.mxu0 %v3591_v6 }
 0x122   : > { %v640_v11 = vpop.permute.xlu1 %639  ;;  %v635_v13 = vpop.permute.xlu0 %634 }
 0x123   : > { %3117 = vmatmul.mubr.msk.f32.gmra.mxu0 %vm667_vm9, %v608_v42  ;;  %v817_v42 = vld [vmem:[%s6357_s6 + $0x8] sm:$0xff] }
 0x124   : > { %789 = vmatprep.mubr.f32.mxu0 %v3591_v6 }
 0x126   : > { %v630_v4 = vpop.permute.xlu1 %629  ;;  %v625_v25 = vpop.permute.xlu0 %624 }
 0x127   : > { %3118 = vmatmul.mubr.msk.f32.gmra.mxu0 %vm667_vm9, %v609_v43 }
 0x128   : > { %795 = vmatprep.mubr.f32.mxu0 %v3591_v6 }
 0x12a   : > { %v665_v32 = vpop.permute.xlu0 %664  ;;  %v821_v37 = vpop.permute.xlu1 %820 }
 0x12b   : > { %3119 = vmatmul.mubr.msk.f32.gmra.mxu0 %vm667_vm9, %v610_v44 }
 0x12c   : > { %801 = vmatprep.mubr.f32.mxu0 %v3591_v6 }
 0x12f   : > { %3120 = vmatmul.mubr.msk.f32.gmra.mxu0 %vm667_vm9, %v611_v45 }
 0x130   : > { %807 = vmatprep.mubr.f32.mxu0 %v3591_v6 }
 0x133   : > { %3121 = vmatmul.mubr.msk.f32.gmra.mxu0 %vm667_vm9, %v612_v46 }
 0x1d3   : > { %v761_v47 = vpop.f32.mrf.mxu0 }
 0x1d4   : > { %v4064_v31 = vadd.f32 %v761_v47, %v625_v25 }
 0x1d5   : > { %v763_v48 = vpop.f32.mrf.mxu0 }
 0x1d6   : > { %v4061_v30 = vadd.f32 %v763_v48, %v625_v25  ;;  %6583 = vst [vmem:[#allocation41_spill] sm:$0xff] %v4064_v31 }
 0x1d7   : > { %v767_v49 = vpop.f32.mrf.mxu0 }
 0x1d8   : > { %v4058_v28 = vadd.f32 %v767_v49, %v630_v4  ;;  %6582 = vst [vmem:[#allocation40_spill] sm:$0xff] %v4061_v30 }
 0x1d9   : > { %v769_v50 = vpop.f32.mrf.mxu0 }
 0x1da   : > { %v4055_v27 = vadd.f32 %v769_v50, %v630_v4  ;;  %6581 = vst [vmem:[#allocation39_spill] sm:$0xff] %v4058_v28 }
 0x1db   : > { %v773_v51 = vpop.f32.mrf.mxu0 }
 0x1dc   : > { %v4052_v26 = vadd.f32 %v773_v51, %v635_v13  ;;  %6580 = vst [vmem:[#allocation38_spill] sm:$0xff] %v4055_v27 }
 0x1dd   : > { %v775_v52 = vpop.f32.mrf.mxu0 }
 0x1de   : > { %v4049_v24 = vadd.f32 %v775_v52, %v635_v13  ;;  %6579 = vst [vmem:[#allocation37_spill] sm:$0xff] %v4052_v26 }
 0x1df   : > { %v779_v53 = vpop.f32.mrf.mxu0 }
 0x1e0   : > { %v4046_v17 = vadd.f32 %v779_v53, %v640_v11  ;;  %6578 = vst [vmem:[#allocation36_spill] sm:$0xff] %v4049_v24 }
 0x1e1   : > { %v781_v54 = vpop.f32.mrf.mxu0 }
 0x1e2   : > { %v4043_v16 = vadd.f32 %v781_v54, %v640_v11  ;;  %6577 = vst [vmem:[#allocation35_spill] sm:$0xff] %v4046_v17 }
 0x1e3   : > { %v785_v55 = vpop.f32.mrf.mxu0 }
 0x1e4   : > { %v4040_v5 = vadd.f32 %v785_v55, %v645_v1  ;;  %6576 = vst [vmem:[#allocation34_spill] sm:$0xff] %v4043_v16 }
 0x1e5   : > { %v787_v56 = vpop.f32.mrf.mxu0 }
 0x1e6   : > { %v4037_v15 = vadd.f32 %v787_v56, %v645_v1  ;;  %6575 = vst [vmem:[#allocation33_spill] sm:$0xff] %v4040_v5 }
 0x1e7   : > { %v791_v57 = vpop.f32.mrf.mxu0 }
 0x1e8   : > { %v4034_v14 = vadd.f32 %v791_v57, %v650_v0  ;;  %6574 = vst [vmem:[#allocation32_spill] sm:$0xff] %v4037_v15 }
 0x1e9   : > { %v793_v58 = vpop.f32.mrf.mxu0 }
 0x1ea   : > { %v4031_v12 = vadd.f32 %v793_v58, %v650_v0  ;;  %6573 = vst [vmem:[#allocation31_spill] sm:$0xff] %v4034_v14 }
 0x1eb   : > { %v797_v61 = vpop.f32.mrf.mxu0 }
 0x1ec   : > { %v4028_v10 = vadd.f32 %v797_v61, %v655_v59  ;;  %6572 = vst [vmem:[#allocation30_spill] sm:$0xff] %v4031_v12 }
 0x1ed   : > { %v799_v62 = vpop.f32.mrf.mxu0 }
 0x1ee   : > { %v4025_v8 = vadd.f32 %v799_v62, %v655_v59  ;;  %6571 = vst [vmem:[#allocation29_spill] sm:$0xff] %v4028_v10 }
 0x1ef   : > { %v803_v63 = vpop.f32.mrf.mxu0 }
 0x1f0   : > { %v4023_v7 = vadd.f32 %v803_v63, %v660_v60  ;;  %6570 = vst [vmem:[#allocation28_spill] sm:$0xff] %v4025_v8 }
 0x1f1   : > { %v805_v2 = vpop.f32.mrf.mxu0 }
 0x1f2   : > { %v4021_v3 = vadd.f32 %v805_v2, %v660_v60  ;;  %6569 = vst [vmem:[#allocation27_spill] sm:$0xff] %v4023_v7 }
 0x1f3   : > { %v809_v23 = vpop.f32.mrf.mxu0 }
 0x1f4   : > { %6568 = vst [vmem:[#allocation26_spill] sm:$0xff] %v4021_v3  ;;  %851 = vmatprep.subr.mxu1 %v4021_v3  ;;  %v810_v35 = vadd.f32 %v809_v23, %v665_v32 }
 0x1f5   : > { %852 = vmatpush1.msra.mxu1 %v4023_v7  ;;  %v811_v29 = vpop.f32.mrf.mxu0 }
 0x1f6   : > { %853 = vmatprep.subr.mxu1 %v4025_v8  ;;  %v812_v34 = vadd.f32 %v811_v29, %v665_v32 }
 0x1f7   : > { %854 = vmatpush1.msra.mxu1 %v4028_v10 }
 0x1f8   : > { %855 = vmatprep.subr.mxu1 %v4031_v12 }
 0x1f9   : > { %856 = vmatpush1.msra.mxu1 %v4034_v14 }
 0x1fa   : > { %857 = vmatprep.subr.mxu1 %v4037_v15 }
 0x1fb   : > { %858 = vmatpush1.msra.mxu1 %v4040_v5 }
 0x1fc   : > { %859 = vmatprep.subr.mxu1 %v4043_v16 }
 0x1fd   : > { %860 = vmatpush1.msra.mxu1 %v4046_v17 }
 0x1fe   : > { %861 = vmatprep.subr.mxu1 %v4049_v24 }
 0x1ff   : > { %862 = vmatpush1.msra.mxu1 %v4052_v26 }
 0x200   : > { %863 = vmatprep.subr.mxu1 %v4055_v27 }
 0x201   : > { %864 = vmatpush1.msra.mxu1 %v4058_v28 }
 0x202   : > { %865 = vmatprep.subr.mxu1 %v4061_v30 }
 0x203   : > { %866 = vmatpush1.msra.mxu1 %v4064_v31 }
 0x204   : > { %3122 = vmatmul.mubr.msk.f32.vlgmr.msra.gmra.mxu1 %vm828_vm10, %v814_v33  ;;  %1118 = vmatprep.subr.mxu1 %v812_v34 }
 0x205   : > { %1119 = vmatpush1.msra.mxu1 %v810_v35  ;;  %905 = vmatprep.mubr.f32.mxu1 %v3591_v6 }
 0x208   : > { %3123 = vmatmul.mubr.msk.f32.gmra.mxu1 %vm828_vm10, %v815_v36 }
 0x209   : > { %1152 = vmatprep.mubr.f32.mxu1 %v3591_v6 }
 0x2c4   : > { %v901_v38 = vpop.f32.mrf.mxu1 }
 0x2c5   : > { %v902_v39 = vadd.f32 %v901_v38, %v821_v37 }
 0x2c6   : > { %v903_v40 = vpop.f32.mrf.mxu1 }
 0x2c7   : > { %v904_v41 = vadd.f32 %v903_v40, %v821_v37  ;;  %927 = vxpose.xlu1.b32.start.end [1/1] (short) %v902_v39, 128 }
 0x2c8   : > { %v4272_v37 = vpop.f32.mrf.mxu1 }
 0x2c9   : > { %959 = vxpose.xlu0.b32.start.end [1/1] (short) %v904_v41, 128  ;;  %6588 = vst [vmem:[#allocation46_spill] sm:$0xff] %v4272_v37 }
 0x2ca   : > { %v909_v41 = vpop.f32.mrf.mxu1 }
 0x321   : > { %2137 = vrot.lane.b32.xlu1 %v4028_v10, %s3593_s24 }
 0x325   : > { %2155 = vrot.lane.b32.xlu1 %v4025_v8, %s3593_s24 }
 0x329   : > { %2153 = vrot.lane.b32.xlu1 %v4031_v12, %s3593_s24 }
 0x32d   : > { %2151 = vrot.lane.b32.xlu1 %v4037_v15, %s3593_s24 }
 0x32e   : > { %825 = vperm.xlu0 %3384, %v817_v42  }
 0x331   : > { %2149 = vrot.lane.b32.xlu1 %v4043_v16, %s3593_s24 }
 0x332   : > { %2135 = vrot.lane.b32.xlu0 %v4034_v14, %s3593_s24 }
 0x335   : > { %2147 = vrot.lane.b32.xlu1 %v4049_v24, %s3593_s24 }
 0x336   : > { %2133 = vrot.lane.b32.xlu0 %v4040_v5, %s3593_s24 }
 0x339   : > { %2145 = vrot.lane.b32.xlu1 %v4055_v27, %s3593_s24 }
 0x33a   : > { %2131 = vrot.lane.b32.xlu0 %v4046_v17, %s3593_s24 }
 0x33d   : > { %2143 = vrot.lane.b32.xlu1 %v4061_v30, %s3593_s24 }
 0x33e   : > { %2129 = vrot.lane.b32.xlu0 %v4052_v26, %s3593_s24 }
 0x341   : > { %2073 = vrot.lane.b32.xlu1 %v4021_v3, %s3594_s22 }
 0x342   : > { %2127 = vrot.lane.b32.xlu0 %v4058_v28, %s3593_s24 }
 0x343   : > { %v943_v43 = vpop.trf.xlu1 }
 0x344   : > { %3124 = vmatmul.mubr.msk.f32.vlgmr.msra.gmra.mxu1 %vm6533_vm11, %v943_v43 }
 0x345   : > { %2071 = vrot.lane.b32.xlu1 %v4025_v8, %s3594_s22  ;;  %1158 = vmatprep.mubr.f32.mxu1 %v3591_v6  ;;  %v4112_v45 = vpop.trf.xlu0 }
 0x346   : > { %2125 = vrot.lane.b32.xlu0 %v4064_v31, %s3593_s24 }
 0x347   : > { %v944_v44 = vpop.trf.xlu1 }
 0x348   : > { %3125 = vmatmul.mubr.msk.f32.gmra.mxu1 %vm6533_vm11, %v944_v44 }
 0x349   : > { %2069 = vrot.lane.b32.xlu1 %v4031_v12, %s3594_s22  ;;  %1164 = vmatprep.mubr.f32.mxu1 %v3591_v6  ;;  %v4122_v48 = vpop.trf.xlu0 }
 0x34a   : > { %2055 = vrot.lane.b32.xlu0 %v4023_v7, %s3594_s22 }
 0x34b   : > { %v945_v46 = vpop.trf.xlu1 }
 0x34c   : > { %3126 = vmatmul.mubr.msk.f32.gmra.mxu1 %vm6533_vm11, %v945_v46 }
 0x34d   : > { %2067 = vrot.lane.b32.xlu1 %v4037_v15, %s3594_s22  ;;  %1170 = vmatprep.mubr.f32.mxu1 %v3591_v6  ;;  %v4134_v50 = vpop.trf.xlu0 }
 0x34e   : > { %2053 = vrot.lane.b32.xlu0 %v4028_v10, %s3594_s22 }
 0x34f   : > { %v946_v47 = vpop.trf.xlu1 }
 0x350   : > { %3127 = vmatmul.mubr.msk.f32.gmra.mxu1 %vm6533_vm11, %v946_v47 }
 0x351   : > { %2065 = vrot.lane.b32.xlu1 %v4043_v16, %s3594_s22  ;;  %1176 = vmatprep.mubr.f32.mxu1 %v3591_v6  ;;  %v4144_v53 = vpop.trf.xlu0 }
 0x352   : > { %2051 = vrot.lane.b32.xlu0 %v4034_v14, %s3594_s22 }
 0x353   : > { %v947_v49 = vpop.trf.xlu1 }
 0x354   : > { %3128 = vmatmul.mubr.msk.f32.gmra.mxu1 %vm6533_vm11, %v947_v49 }
 0x355   : > { %2063 = vrot.lane.b32.xlu1 %v4049_v24, %s3594_s22  ;;  %1182 = vmatprep.mubr.f32.mxu1 %v3591_v6  ;;  %v4156_v55 = vpop.trf.xlu0 }
 0x356   : > { %2049 = vrot.lane.b32.xlu0 %v4040_v5, %s3594_s22 }
 0x357   : > { %v948_v51 = vpop.trf.xlu1 }
 0x358   : > { %3129 = vmatmul.mubr.msk.f32.gmra.mxu1 %vm6533_vm11, %v948_v51 }
 0x359   : > { %2061 = vrot.lane.b32.xlu1 %v4055_v27, %s3594_s22  ;;  %1188 = vmatprep.mubr.f32.mxu1 %v3591_v6  ;;  %v4166_v58 = vpop.trf.xlu0 }
 0x35a   : > { %2047 = vrot.lane.b32.xlu0 %v4046_v17, %s3594_s22 }
 0x35b   : > { %v949_v52 = vpop.trf.xlu1 }
 0x35c   : > { %3130 = vmatmul.mubr.msk.f32.gmra.mxu1 %vm6533_vm11, %v949_v52 }
 0x35d   : > { %2059 = vrot.lane.b32.xlu1 %v4061_v30, %s3594_s22  ;;  %1194 = vmatprep.mubr.f32.mxu1 %v3591_v6  ;;  %v981_v60 = vpop.trf.xlu0 }
 0x35e   : > { %2045 = vrot.lane.b32.xlu0 %v4052_v26, %s3594_s22 }
 0x35f   : > { %v950_v54 = vpop.trf.xlu1 }
 0x360   : > { %3131 = vmatmul.mubr.msk.f32.gmra.mxu1 %vm6533_vm11, %v950_v54 }
 0x361   : > { %2319 = vrot.lane.b32.xlu1 %v4037_v15, %s3590_s11  ;;  %1200 = vmatprep.mubr.f32.mxu1 %v3591_v6  ;;  %v982_v63 = vpop.trf.xlu0 }
 0x362   : > { %2043 = vrot.lane.b32.xlu0 %v4058_v28, %s3594_s22 }
 0x363   : > { %v951_v56 = vpop.trf.xlu1 }
 0x364   : > { %3132 = vmatmul.mubr.msk.f32.gmra.mxu1 %vm6533_vm11, %v951_v56 }
 0x365   : > { %2399 = vrot.lane.b32.xlu1 %v4049_v24, %s3589_s20  ;;  %1206 = vmatprep.mubr.f32.mxu1 %v3591_v6  ;;  %v983_v1 = vpop.trf.xlu0 }
 0x366   : > { %2041 = vrot.lane.b32.xlu0 %v4064_v31, %s3594_s22 }
 0x367   : > { %v952_v57 = vpop.trf.xlu1 }
 0x368   : > { %3133 = vmatmul.mubr.msk.f32.gmra.mxu1 %vm6533_vm11, %v952_v57 }
 0x369   : > { %2317 = vrot.lane.b32.xlu1 %v4043_v16, %s3590_s11  ;;  %1212 = vmatprep.mubr.f32.mxu1 %v3591_v6  ;;  %v984_v13 = vpop.trf.xlu0 }
 0x36a   : > { %2301 = vrot.lane.b32.xlu0 %v4040_v5, %s3590_s11 }
 0x36b   : > { %v953_v59 = vpop.trf.xlu1 }
 0x36c   : > { %3134 = vmatmul.mubr.msk.f32.gmra.mxu1 %vm6533_vm11, %v953_v59 }
 0x36d   : > { %2397 = vrot.lane.b32.xlu1 %v4055_v27, %s3589_s20  ;;  %1218 = vmatprep.mubr.f32.mxu1 %v3591_v6  ;;  %v985_v23 = vpop.trf.xlu0 }
 0x36e   : > { %2381 = vrot.lane.b32.xlu0 %v4052_v26, %s3589_s20 }
 0x36f   : > { %v954_v61 = vpop.trf.xlu1 }
 0x370   : > { %3135 = vmatmul.mubr.msk.f32.gmra.mxu1 %vm6533_vm11, %v954_v61 }
 0x371   : > { %2315 = vrot.lane.b32.xlu1 %v4049_v24, %s3590_s11  ;;  %1224 = vmatprep.mubr.f32.mxu1 %v3591_v6  ;;  %v986_v4 = vpop.trf.xlu0 }
 0x372   : > { %2299 = vrot.lane.b32.xlu0 %v4046_v17, %s3590_s11 }
 0x373   : > { %v955_v62 = vpop.trf.xlu1 }
 0x374   : > { %3136 = vmatmul.mubr.msk.f32.gmra.mxu1 %vm6533_vm11, %v955_v62 }
 0x375   : > { %2395 = vrot.lane.b32.xlu1 %v4061_v30, %s3589_s20  ;;  %1230 = vmatprep.mubr.f32.mxu1 %v3591_v6  ;;  %v987_v25 = vpop.trf.xlu0 }
 0x376   : > { %2379 = vrot.lane.b32.xlu0 %v4058_v28, %s3589_s20 }
 0x377   : > { %v956_v0 = vpop.trf.xlu1 }
 0x378   : > { %3137 = vmatmul.mubr.msk.f32.gmra.mxu1 %vm6533_vm11, %v956_v0 }
 0x379   : > { %2313 = vrot.lane.b32.xlu1 %v4055_v27, %s3590_s11  ;;  %1236 = vmatprep.mubr.f32.mxu1 %v3591_v6  ;;  %v988_v33 = vpop.trf.xlu0 }
 0x37a   : > { %2297 = vrot.lane.b32.xlu0 %v4052_v26, %s3590_s11 }
 0x37b   : > { %v957_v2 = vpop.trf.xlu1 }
 0x37c   : > { %3138 = vmatmul.mubr.msk.f32.gmra.mxu1 %vm6533_vm11, %v957_v2 }
 0x37d   : > { %2311 = vrot.lane.b32.xlu1 %v4061_v30, %s3590_s11  ;;  %1242 = vmatprep.mubr.f32.mxu1 %v3591_v6  ;;  %v989_v35 = vpop.trf.xlu0 }
 0x37e   : > { %2377 = vrot.lane.b32.xlu0 %v4064_v31, %s3589_s20 }
 0x37f   : > { %v958_v11 = vpop.trf.xlu1 }
 0x380   : > { %3139 = vmatmul.mubr.msk.f32.gmra.mxu1 %vm6533_vm11, %v958_v11 }
 0x381   : > { %2241 = vrot.lane.b32.xlu1 %v4021_v3, %s3592_s27  ;;  %1248 = vmatprep.mubr.f32.mxu1 %v3591_v6  ;;  %v990_v39 = vpop.trf.xlu0 }
 0x382   : > { %2295 = vrot.lane.b32.xlu0 %v4058_v28, %s3590_s11 }
 0x384   : > { %3140 = vmatmul.mubr.msk.f32.gmra.mxu1 %vm6533_vm11, %v4112_v45 }
 0x385   : > { %2239 = vrot.lane.b32.xlu1 %v4025_v8, %s3592_s27  ;;  %1254 = vmatprep.mubr.f32.mxu1 %v3591_v6 }
 0x386   : > { %2293 = vrot.lane.b32.xlu0 %v4064_v31, %s3590_s11 }
 0x388   : > { %3141 = vmatmul.mubr.msk.f32.gmra.mxu1 %vm6533_vm11, %v4122_v48 }
 0x389   : > { %2237 = vrot.lane.b32.xlu1 %v4031_v12, %s3592_s27  ;;  %1260 = vmatprep.mubr.f32.mxu1 %v3591_v6 }
 0x38a   : > { %2223 = vrot.lane.b32.xlu0 %v4023_v7, %s3592_s27 }
 0x38c   : > { %3142 = vmatmul.mubr.msk.f32.gmra.mxu1 %vm6533_vm11, %v4134_v50 }
 0x38d   : > { %2235 = vrot.lane.b32.xlu1 %v4037_v15, %s3592_s27  ;;  %1266 = vmatprep.mubr.f32.mxu1 %v3591_v6 }
 0x38e   : > { %2221 = vrot.lane.b32.xlu0 %v4028_v10, %s3592_s27 }
 0x390   : > { %3143 = vmatmul.mubr.msk.f32.gmra.mxu1 %vm6533_vm11, %v4144_v53 }
 0x391   : > { %2233 = vrot.lane.b32.xlu1 %v4043_v16, %s3592_s27  ;;  %1272 = vmatprep.mubr.f32.mxu1 %v3591_v6 }
 0x392   : > { %2219 = vrot.lane.b32.xlu0 %v4034_v14, %s3592_s27 }
 0x393   : > { %v4238_v29 = vpop.permute.xlu1 %2137 }
 0x394   : > { %6584 = vst [vmem:[#allocation42_spill] sm:$0xff] %v4238_v29  ;;  %3144 = vmatmul.mubr.msk.f32.gmra.mxu1 %vm6533_vm11, %v4156_v55 }
 0x395   : > { %2231 = vrot.lane.b32.xlu1 %v4049_v24, %s3592_s27  ;;  %1278 = vmatprep.mubr.f32.mxu1 %v3591_v6 }
 0x396   : > { %2217 = vrot.lane.b32.xlu0 %v4040_v5, %s3592_s27 }
 0x397   : > { %v4247_v32 = vpop.permute.xlu1 %2155 }
 0x398   : > { %6585 = vst [vmem:[#allocation43_spill] sm:$0xff] %v4247_v32  ;;  %3145 = vmatmul.mubr.msk.f32.gmra.mxu1 %vm6533_vm11, %v4166_v58 }
 0x399   : > { %2229 = vrot.lane.b32.xlu1 %v4055_v27, %s3592_s27  ;;  %1284 = vmatprep.mubr.f32.mxu1 %v3591_v6 }
 0x39a   : > { %2215 = vrot.lane.b32.xlu0 %v4046_v17, %s3592_s27 }
 0x39b   : > { %v4256_v34 = vpop.permute.xlu1 %2153 }
 0x39c   : > { %6586 = vst [vmem:[#allocation44_spill] sm:$0xff] %v4256_v34  ;;  %3146 = vmatmul.mubr.msk.f32.gmra.mxu1 %vm6533_vm11, %v981_v60 }
 0x39d   : > { %2227 = vrot.lane.b32.xlu1 %v4061_v30, %s3592_s27  ;;  %1290 = vmatprep.mubr.f32.mxu1 %v3591_v6 }
 0x39e   : > { %2213 = vrot.lane.b32.xlu0 %v4052_v26, %s3592_s27 }
 0x39f   : > { %v4264_v36 = vpop.permute.xlu1 %2151 }
 0x3a0   : > { %6587 = vst [vmem:[#allocation45_spill] sm:$0xff] %v4264_v36  ;;  %3147 = vmatmul.mubr.msk.f32.gmra.mxu1 %vm6533_vm11, %v982_v63 }
 0x3a1   : > { %2325 = vrot.lane.b32.xlu1 %v4021_v3, %s3590_s11  ;;  %1296 = vmatprep.mubr.f32.mxu1 %v3591_v6 }
 0x3a2   : > { %2211 = vrot.lane.b32.xlu0 %v4058_v28, %s3592_s27 }
 0x3a3   : > { %v4274_v38 = vpop.permute.xlu1 %2149 }
 0x3a4   : > { %6589 = vst [vmem:[#allocation47_spill] sm:$0xff] %v4274_v38  ;;  %3148 = vmatmul.mubr.msk.f32.gmra.mxu1 %vm6533_vm11, %v983_v1 }
 0x3a5   : > { %2323 = vrot.lane.b32.xlu1 %v4025_v8, %s3590_s11  ;;  %1302 = vmatprep.mubr.f32.mxu1 %v3591_v6 }
 0x3a6   : > { %2209 = vrot.lane.b32.xlu0 %v4064_v31, %s3592_s27 }
 0x3a7   : > { %v4282_v40 = vpop.permute.xlu1 %2147 }
 0x3a8   : > { %6590 = vst [vmem:[#allocation48_spill] sm:$0xff] %v4282_v40  ;;  %3149 = vmatmul.mubr.msk.f32.gmra.mxu1 %vm6533_vm11, %v984_v13 }
 0x3a9   : > { %2157 = vrot.lane.b32.xlu1 %v4021_v3, %s3593_s24  ;;  %v4287_v42 = vpop.permute.xlu0 %825  ;;  %1308 = vmatprep.mubr.f32.mxu1 %v3591_v6 }
 0x3aa   : > { %6591 = vst [vmem:[#allocation49_spill] sm:$0xff] %v4287_v42  ;;  %v910_v43 = vadd.f32 %v909_v41, %v4287_v42  ;;  %2307 = vrot.lane.b32.xlu0 %v4023_v7, %s3590_s11 }
 0x3ab   : > { %v4293_v44 = vpop.permute.xlu1 %2145 }
 0x3ac   : > { %6592 = vst [vmem:[#allocation50_spill] sm:$0xff] %v4293_v44  ;;  %3150 = vmatmul.mubr.msk.f32.gmra.mxu1 %vm6533_vm11, %v985_v23  ;;  %1978 = vmatprep.mubr.f32.mxu0 %v910_v43 }
 0x3ad   : > { %2321 = vrot.lane.b32.xlu1 %v4031_v12, %s3590_s11  ;;  %v4298_v45 = vpop.permute.xlu0 %2135  ;;  %1314 = vmatprep.mubr.f32.mxu1 %v3591_v6 }
 0x3ae   : > { %6593 = vst [vmem:[#allocation51_spill] sm:$0xff] %v4298_v45  ;;  %2305 = vrot.lane.b32.xlu0 %v4028_v10, %s3590_s11 }
 0x3af   : > { %v4303_v46 = vpop.permute.xlu1 %2143 }
 0x3b0   : > { %6594 = vst [vmem:[#allocation52_spill] sm:$0xff] %v4303_v46  ;;  %3151 = vmatmul.mubr.msk.f32.gmra.mxu1 %vm6533_vm11, %v986_v4 }
 0x3b1   : > { %2563 = vrot.lane.b32.xlu1 %v4061_v30, %s3586_s15  ;;  %v4308_v47 = vpop.permute.xlu0 %2133  ;;  %1320 = vmatprep.mubr.f32.mxu1 %v3591_v6 }
 0x3b2   : > { %6595 = vst [vmem:[#allocation53_spill] sm:$0xff] %v4308_v47  ;;  %2139 = vrot.lane.b32.xlu0 %v4023_v7, %s3593_s24 }
 0x3b3   : > { %v4313_v48 = vpop.permute.xlu1 %2073 }
 0x3b4   : > { %6596 = vst [vmem:[#allocation54_spill] sm:$0xff] %v4313_v48  ;;  %3152 = vmatmul.mubr.msk.f32.gmra.mxu1 %vm6533_vm11, %v987_v25 }
 0x3b5   : > { %2661 = vrot.lane.b32.xlu1 %v4021_v3, %s6597_s21  ;;  %v4318_v49 = vpop.permute.xlu0 %2131  ;;  %1326 = vmatprep.mubr.f32.mxu1 %v3591_v6 }
 0x3b6   : > { %6598 = vst [vmem:[#allocation55_spill] sm:$0xff] %v4318_v49  ;;  %2303 = vrot.lane.b32.xlu0 %v4034_v14, %s3590_s11 }
 0x3b7   : > { %v4323_v50 = vpop.permute.xlu1 %2071 }
 0x3b8   : > { %6599 = vst [vmem:[#allocation56_spill] sm:$0xff] %v4323_v50  ;;  %3153 = vmatmul.mubr.msk.f32.gmra.mxu1 %vm6533_vm11, %v988_v33  ;;  %v2431_v33 = vld [vmem:[#allocation10 + $0x5] ss:$8 sm:$0x3] }
 0x3b9   : > { %2659 = vrot.lane.b32.xlu1 %v4025_v8, %s6597_s21  ;;  %v4328_v51 = vpop.permute.xlu0 %2129  ;;  %1332 = vmatprep.mubr.f32.mxu1 %v3591_v6  ;;  %v4421_v41 = vrot.slane %v2431_v33, %v3917_v22  ;;  %v4424_v43 = vrot.slane %v2431_v33, %v3914_v21 }
 0x3ba   : > { %6600 = vst [vmem:[#allocation57_spill] sm:$0xff] %v4328_v51  ;;  %2545 = vrot.lane.b32.xlu0 %v4064_v31, %s3586_s15 }
 0x3bb   : > { %v4333_v52 = vpop.permute.xlu1 %2069  ;;  %6622 = vst [vmem:[#allocation78_spill] sm:$0xff] %v4421_v41  ;;  %6623 = vst [vmem:[#allocation79_spill] sm:$0xff] %v4424_v43 }
 0x3bc   : > { %6601 = vst [vmem:[#allocation58_spill] sm:$0xff] %v4333_v52  ;;  %3154 = vmatmul.mubr.msk.f32.gmra.mxu1 %vm6533_vm11, %v989_v35 }
 0x3bd   : > { %2493 = vrot.lane.b32.xlu1 %v4021_v3, %s6602_s25  ;;  %v4338_v53 = vpop.permute.xlu0 %2127  ;;  %1338 = vmatprep.mubr.f32.mxu1 %v3591_v6 }
 0x3be   : > { %6603 = vst [vmem:[#allocation59_spill] sm:$0xff] %v4338_v53  ;;  %2643 = vrot.lane.b32.xlu0 %v4023_v7, %s6597_s21 }
 0x3bf   : > { %v4343_v54 = vpop.permute.xlu1 %2067 }
 0x3c0   : > { %6604 = vst [vmem:[#allocation60_spill] sm:$0xff] %v4343_v54  ;;  %3155 = vmatmul.mubr.msk.f32.gmra.mxu1 %vm6533_vm11, %v990_v39 }
 0x3c1   : > { %2657 = vrot.lane.b32.xlu1 %v4031_v12, %s6597_s21  ;;  %v4348_v55 = vpop.permute.xlu0 %2125 }
 0x3c2   : > { %6605 = vst [vmem:[#allocation61_spill] sm:$0xff] %v4348_v55  ;;  %2641 = vrot.lane.b32.xlu0 %v4028_v10, %s6597_s21 }
 0x3c3   : > { %v4352_v56 = vpop.permute.xlu1 %2065 }
 0x3c4   : > { %6606 = vst [vmem:[#allocation62_spill] sm:$0xff] %v4352_v56 }
 0x3c5   : > { %2491 = vrot.lane.b32.xlu1 %v4025_v8, %s6602_s25  ;;  %v4356_v6 = vpop.permute.xlu0 %2055 }
 0x3c6   : > { %6607 = vst [vmem:[#allocation63_spill] sm:$0xff] %v4356_v6  ;;  %2475 = vrot.lane.b32.xlu0 %v4023_v7, %s6602_s25 }
 0x3c7   : > { %v4360_v57 = vpop.permute.xlu1 %2063 }
 0x3c8   : > { %6608 = vst [vmem:[#allocation64_spill] sm:$0xff] %v4360_v57 }
 0x3c9   : > { %2655 = vrot.lane.b32.xlu1 %v4037_v15, %s6597_s21  ;;  %v4364_v58 = vpop.permute.xlu0 %2053 }
 0x3ca   : > { %6609 = vst [vmem:[#allocation65_spill] sm:$0xff] %v4364_v58  ;;  %2639 = vrot.lane.b32.xlu0 %v4034_v14, %s6597_s21 }
 0x3cb   : > { %v4368_v59 = vpop.permute.xlu1 %2061 }
 0x3cc   : > { %6610 = vst [vmem:[#allocation66_spill] sm:$0xff] %v4368_v59 }
 0x3cd   : > { %2489 = vrot.lane.b32.xlu1 %v4031_v12, %s6602_s25  ;;  %v4372_v60 = vpop.permute.xlu0 %2051 }
 0x3ce   : > { %6611 = vst [vmem:[#allocation67_spill] sm:$0xff] %v4372_v60  ;;  %2473 = vrot.lane.b32.xlu0 %v4028_v10, %s6602_s25 }
 0x3cf   : > { %v4376_v61 = vpop.permute.xlu1 %2059 }
 0x3d0   : > { %6612 = vst [vmem:[#allocation68_spill] sm:$0xff] %v4376_v61 }
 0x3d1   : > { %2653 = vrot.lane.b32.xlu1 %v4043_v16, %s6597_s21  ;;  %v4380_v62 = vpop.permute.xlu0 %2049 }
 0x3d2   : > { %6613 = vst [vmem:[#allocation69_spill] sm:$0xff] %v4380_v62  ;;  %2637 = vrot.lane.b32.xlu0 %v4040_v5, %s6597_s21 }
 0x3d3   : > { %v4384_v63 = vpop.permute.xlu1 %2319 }
 0x3d4   : > { %6614 = vst [vmem:[#allocation70_spill] sm:$0xff] %v4384_v63 }
 0x3d5   : > { %2487 = vrot.lane.b32.xlu1 %v4037_v15, %s6602_s25  ;;  %v4388_v0 = vpop.permute.xlu0 %2047 }
 0x3d6   : > { %6615 = vst [vmem:[#allocation71_spill] sm:$0xff] %v4388_v0  ;;  %2471 = vrot.lane.b32.xlu0 %v4034_v14, %s6602_s25 }
 0x3d7   : > { %v2400_v1 = vpop.permute.xlu1 %2399 }
 0x3d9   : > { %2651 = vrot.lane.b32.xlu1 %v4049_v24, %s6597_s21  ;;  %v4394_v2 = vpop.permute.xlu0 %2045 }
 0x3da   : > { %6616 = vst [vmem:[#allocation72_spill] sm:$0xff] %v4394_v2  ;;  %2635 = vrot.lane.b32.xlu0 %v4046_v17, %s6597_s21 }
 0x3db   : > { %v4398_v11 = vpop.permute.xlu1 %2317 }
 0x3dc   : > { %6617 = vst [vmem:[#allocation73_spill] sm:$0xff] %v4398_v11 }
 0x3dd   : > { %2485 = vrot.lane.b32.xlu1 %v4043_v16, %s6602_s25  ;;  %v4402_v13 = vpop.permute.xlu0 %2043 }
 0x3de   : > { %6618 = vst [vmem:[#allocation74_spill] sm:$0xff] %v4402_v13  ;;  %2469 = vrot.lane.b32.xlu0 %v4040_v5, %s6602_s25 }
 0x3df   : > { %v2398_v23 = vpop.permute.xlu1 %2397 }
 0x3e1   : > { %2649 = vrot.lane.b32.xlu1 %v4055_v27, %s6597_s21  ;;  %v4408_v4 = vpop.permute.xlu0 %2041 }
 0x3e2   : > { %6619 = vst [vmem:[#allocation75_spill] sm:$0xff] %v4408_v4  ;;  %2633 = vrot.lane.b32.xlu0 %v4052_v26, %s6597_s21 }
 0x3e3   : > { %v4412_v25 = vpop.permute.xlu1 %2315 }
 0x3e4   : > { %6620 = vst [vmem:[#allocation76_spill] sm:$0xff] %v4412_v25 }
 0x3e5   : > { %2483 = vrot.lane.b32.xlu1 %v4049_v24, %s6602_s25  ;;  %v4416_v35 = vpop.permute.xlu0 %2301 }
 0x3e6   : > { %6621 = vst [vmem:[#allocation77_spill] sm:$0xff] %v4416_v35  ;;  %2467 = vrot.lane.b32.xlu0 %v4046_v17, %s6602_s25 }
 0x3e7   : > { %v2396_v39 = vpop.permute.xlu1 %2395 }
 0x3e9   : > { %2647 = vrot.lane.b32.xlu1 %v4061_v30, %s6597_s21  ;;  %v2382_v9 = vpop.permute.xlu0 %2381 }
 0x3ea   : > { %v2415_v18 = vsel %vm6534_vm4, %v2382_v9, %v2400_v1  ;;  %v2424_v25 = vsel %vm6534_vm4, %v2400_v1, %v2382_v9  ;;  %2631 = vrot.lane.b32.xlu0 %v4058_v28, %s6597_s21 }
 0x3eb   : > { %v2447_v11 = vmul.f32 %v4421_v41, %v2415_v18  ;;  %v4435_v35 = vpop.permute.xlu1 %2313  ;;  %v2448_v33 = vmul.f32 %v4424_v43, %v2424_v25 }
 0x3ec   : > { %6624 = vst [vmem:[#allocation80_spill] sm:$0xff] %v4435_v35 }
 0x3ed   : > { %2803 = vmatprep.subr.mxu1 %v2448_v33  ;;  %v4438_v63 = vpop.permute.xlu0 %2299 }
 0x3ee   : > { %6625 = vst [vmem:[#allocation81_spill] sm:$0xff] %v4438_v63  ;;  %2465 = vrot.lane.b32.xlu0 %v4052_v26, %s6602_s25  ;;  %2804 = vmatpush1.msra.mxu1 %v2447_v11 }
 0x3ef   : > { %v4442_v4 = vpop.permute.xlu1 %2311 }
 0x3f0   : > { %6626 = vst [vmem:[#allocation82_spill] sm:$0xff] %v4442_v4 }
 0x3f1   : > { %v2380_v61 = vpop.permute.xlu0 %2379 }
 0x3f2   : > { %v2414_v9 = vsel %vm6534_vm4, %v2380_v61, %v2398_v23  ;;  %v2423_v18 = vsel %vm6534_vm4, %v2398_v23, %v2380_v61  ;;  %2629 = vrot.lane.b32.xlu0 %v4064_v31, %s6597_s21 }
 0x3f3   : > { %v2445_v1 = vmul.f32 %v4421_v41, %v2414_v9  ;;  %v4451_v25 = vpop.permute.xlu1 %2241  ;;  %v2446_v33 = vmul.f32 %v4424_v43, %v2423_v18 }
 0x3f4   : > { %6627 = vst [vmem:[#allocation83_spill] sm:$0xff] %v4451_v25 }
 0x3f5   : > { %2805 = vmatprep.subr.mxu1 %v2446_v33  ;;  %v4454_v11 = vpop.permute.xlu0 %2297 }
 0x3f6   : > { %6628 = vst [vmem:[#allocation84_spill] sm:$0xff] %v4454_v11  ;;  %2806 = vmatpush1.msra.mxu1 %v2445_v1 }
 0x3f7   : > { %v2240_v4 = vpop.permute.xlu1 %2239 }
 0x3f9   : > { %v2378_v35 = vpop.permute.xlu0 %2377 }
 0x3fa   : > { %v2413_v63 = vsel %vm6534_vm4, %v2378_v35, %v2396_v39  ;;  %v2422_v61 = vsel %vm6534_vm4, %v2396_v39, %v2378_v35 }
 0x3fb   : > { %v2443_v23 = vmul.f32 %v4421_v41, %v2413_v63  ;;  %v2238_v13 = vpop.permute.xlu1 %2237  ;;  %v2444_v9 = vmul.f32 %v4424_v43, %v2422_v61 }
 0x3fd   : > { %2807 = vmatprep.subr.mxu1 %v2444_v9  ;;  %v4462_v25 = vpop.permute.xlu0 %2295 }
 0x3fe   : > { %6629 = vst [vmem:[#allocation85_spill] sm:$0xff] %v4462_v25  ;;  %2808 = vmatpush1.msra.mxu1 %v2443_v23 }
 0x3ff   : > { %v2236_v18 = vpop.permute.xlu1 %2235 }
 0x401   : > { %v4464_v33 = vpop.permute.xlu0 %2293 }
 0x402   : > { %6630 = vst [vmem:[#allocation86_spill] sm:$0xff] %v4464_v33 }
 0x403   : > { %v2234_v1 = vpop.permute.xlu1 %2233 }
 0x404   : > { %v4466_v11 = vpop.f32.mrf.mxu1 }
 0x405   : > { %v4468_v59 = vpop.permute.xlu0 %2223 }
 0x406   : > { %6631 = vst [vmem:[#allocation87_spill] sm:$0xff] %v4468_v59  ;;  %v4470_v2 = vpop.f32.mrf.mxu1 }
 0x407   : > { %6632 = vst [vmem:[#allocation88_spill] sm:$0xff] %v4470_v2  ;;  %v2232_v35 = vpop.permute.xlu1 %2231 }
 0x408   : > { %v4472_v39 = vpop.f32.mrf.mxu1 }
 0x409   : > { %v2222_v63 = vpop.permute.xlu0 %2221 }
 0x40a   : > { %v4476_v61 = vsel %vm6537_vm6, %v2222_v63, %v2240_v4  ;;  %v4480_v23 = vsel %vm6537_vm6, %v2240_v4, %v2222_v63  ;;  %v4482_v9 = vpop.f32.mrf.mxu1 }
 0x40b   : > { %6633 = vst [vmem:[#allocation89_spill] sm:$0xff] %v4476_v61  ;;  %6634 = vst [vmem:[#allocation90_spill] sm:$0xff] %v4480_v23  ;;  %v2230_v43 = vpop.permute.xlu1 %2229 }
 0x40c   : > { %6635 = vst [vmem:[#allocation91_spill] sm:$0xff] %v4482_v9  ;;  %v4484_v41 = vpop.f32.mrf.mxu1 }
 0x40d   : > { %v2220_v59 = vpop.permute.xlu0 %2219 }
 0x40e   : > { %v4488_v33 = vsel %vm6537_vm6, %v2220_v59, %v2238_v13  ;;  %v4492_v25 = vsel %vm6537_vm6, %v2238_v13, %v2220_v59  ;;  %v4494_v57 = vpop.f32.mrf.mxu1 }
 0x40f   : > { %6636 = vst [vmem:[#allocation92_spill] sm:$0xff] %v4488_v33  ;;  %6637 = vst [vmem:[#allocation93_spill] sm:$0xff] %v4492_v25  ;;  %v2228_v61 = vpop.permute.xlu1 %2227 }
 0x410   : > { %6638 = vst [vmem:[#allocation94_spill] sm:$0xff] %v4494_v57  ;;  %v4496_v0 = vpop.f32.mrf.mxu1 }
 0x411   : > { %6639 = vst [vmem:[#allocation95_spill] sm:$0xff] %v4496_v0  ;;  %v2218_v4 = vpop.permute.xlu0 %2217 }
 0x412   : > { %v4500_v63 = vsel %vm6537_vm6, %v2218_v4, %v2236_v18  ;;  %v4504_v23 = vsel %vm6537_vm6, %v2236_v18, %v2218_v4  ;;  %v4506_v56 = vpop.f32.mrf.mxu1 }
 0x413   : > { %6640 = vst [vmem:[#allocation96_spill] sm:$0xff] %v4500_v63  ;;  %6641 = vst [vmem:[#allocation97_spill] sm:$0xff] %v4504_v23  ;;  %v2326_v33 = vpop.permute.xlu1 %2325 }
 0x414   : > { %6642 = vst [vmem:[#allocation98_spill] sm:$0xff] %v4506_v56  ;;  %v4508_v62 = vpop.f32.mrf.mxu1 }
 0x415   : > { %v2216_v59 = vpop.permute.xlu0 %2215 }
 0x416   : > { %v4512_v13 = vsel %vm6537_vm6, %v2216_v59, %v2234_v1  ;;  %v4516_v25 = vsel %vm6537_vm6, %v2234_v1, %v2216_v59  ;;  %v4518_v54 = vpop.f32.mrf.mxu1 }
 0x417   : > { %6643 = vst [vmem:[#allocation99_spill] sm:$0xff] %v4512_v13  ;;  %6644 = vst [vmem:[#allocation100_spill] sm:$0xff] %v4516_v25  ;;  %v2324_v63 = vpop.permute.xlu1 %2323 }
 0x418   : > { %6645 = vst [vmem:[#allocation101_spill] sm:$0xff] %v4518_v54  ;;  %v4520_v60 = vpop.f32.mrf.mxu1 }
 0x419   : > { %v2214_v18 = vpop.permute.xlu0 %2213 }
 0x41a   : > { %v4524_v4 = vsel %vm6537_vm6, %v2214_v18, %v2232_v35  ;;  %v4528_v23 = vsel %vm6537_vm6, %v2232_v35, %v2214_v18  ;;  %v4530_v52 = vpop.f32.mrf.mxu1 }
 0x41b   : > { %6646 = vst [vmem:[#allocation102_spill] sm:$0xff] %v4524_v4  ;;  %6647 = vst [vmem:[#allocation103_spill] sm:$0xff] %v4528_v23  ;;  %v2158_v13 = vpop.permute.xlu1 %2157 }
 0x41c   : > { %6648 = vst [vmem:[#allocation104_spill] sm:$0xff] %v4530_v52  ;;  %v4532_v58 = vpop.f32.mrf.mxu1 }
 0x41d   : > { %v2212_v1 = vpop.permute.xlu0 %2211 }
 0x41e   : > { %v4536_v59 = vsel %vm6537_vm6, %v2212_v1, %v2230_v43  ;;  %v4540_v25 = vsel %vm6537_vm6, %v2230_v43, %v2212_v1  ;;  %v4542_v50 = vpop.f32.mrf.mxu1 }
 0x41f   : > { %6649 = vst [vmem:[#allocation105_spill] sm:$0xff] %v4536_v59  ;;  %6650 = vst [vmem:[#allocation106_spill] sm:$0xff] %v4540_v25  ;;  %v2322_v4 = vpop.permute.xlu1 %2321 }
 0x420   : > { %6651 = vst [vmem:[#allocation107_spill] sm:$0xff] %v4542_v50  ;;  %v4544_v6 = vpop.f32.mrf.mxu1 }
 0x421   : > { %v2210_v35 = vpop.permute.xlu0 %2209 }
 0x422   : > { %v4548_v18 = vsel %vm6537_vm6, %v2210_v35, %v2228_v61  ;;  %v4552_v23 = vsel %vm6537_vm6, %v2228_v61, %v2210_v35  ;;  %v4554_v48 = vpop.f32.mrf.mxu1 }
 0x423   : > { %6652 = vst [vmem:[#allocation108_spill] sm:$0xff] %v4548_v18  ;;  %6653 = vst [vmem:[#allocation109_spill] sm:$0xff] %v4552_v23  ;;  %v2564_v59 = vpop.permute.xlu1 %2563 }
 0x424   : > { %6654 = vst [vmem:[#allocation110_spill] sm:$0xff] %v4554_v48  ;;  %v4556_v31 = vpop.f32.mrf.mxu1 }
 0x425   : > { %v2308_v43 = vpop.permute.xlu0 %2307 }
 0x426   : > { %v4560_v1 = vsel %vm6538_vm5, %v2308_v43, %v2326_v33  ;;  %v4564_v25 = vsel %vm6538_vm5, %v2326_v33, %v2308_v43  ;;  %v4566_v26 = vpop.f32.mrf.mxu1 }
 0x427   : > { %6655 = vst [vmem:[#allocation111_spill] sm:$0xff] %v4560_v1  ;;  %6656 = vst [vmem:[#allocation112_spill] sm:$0xff] %v4564_v25  ;;  %v2662_v18 = vpop.permute.xlu1 %2661 }
 0x428   : > { %6657 = vst [vmem:[#allocation113_spill] sm:$0xff] %v4566_v26  ;;  %v4568_v24 = vpop.f32.mrf.mxu1 }
 0x429   : > { %v2306_v61 = vpop.permute.xlu0 %2305 }
 0x42a   : > { %v4572_v35 = vsel %vm6538_vm5, %v2306_v61, %v2324_v63  ;;  %v4576_v23 = vsel %vm6538_vm5, %v2324_v63, %v2306_v61  ;;  %v4578_v17 = vpop.f32.mrf.mxu1 }
 0x42b   : > { %6658 = vst [vmem:[#allocation114_spill] sm:$0xff] %v4572_v35  ;;  %6659 = vst [vmem:[#allocation115_spill] sm:$0xff] %v4576_v23  ;;  %v2660_v1 = vpop.permute.xlu1 %2659 }
 0x42c   : > { %6660 = vst [vmem:[#allocation116_spill] sm:$0xff] %v4578_v17  ;;  %v4580_v16 = vpop.f32.mrf.mxu1 }
 0x42d   : > { %v2140_v33 = vpop.permute.xlu0 %2139 }
 0x42e   : > { %v4584_v43 = vsel %vm6542_vm7, %v2140_v33, %v2158_v13  ;;  %v4588_v25 = vsel %vm6542_vm7, %v2158_v13, %v2140_v33  ;;  %v4590_v5 = vpop.f32.mrf.mxu1 }
 0x42f   : > { %6661 = vst [vmem:[#allocation117_spill] sm:$0xff] %v4584_v43  ;;  %6662 = vst [vmem:[#allocation118_spill] sm:$0xff] %v4588_v25  ;;  %v2494_v35 = vpop.permute.xlu1 %2493 }
 0x430   : > { %6663 = vst [vmem:[#allocation119_spill] sm:$0xff] %v4590_v5  ;;  %v4592_v30 = vpop.f32.mrf.mxu1 }
 0x431   : > { %v2304_v63 = vpop.permute.xlu0 %2303 }
 0x432   : > { %v4596_v61 = vsel %vm6538_vm5, %v2304_v63, %v2322_v4  ;;  %v4600_v23 = vsel %vm6538_vm5, %v2322_v4, %v2304_v63  ;;  %v4602_v15 = vpop.f32.mrf.mxu1 }
 0x433   : > { %6664 = vst [vmem:[#allocation120_spill] sm:$0xff] %v4596_v61  ;;  %6665 = vst [vmem:[#allocation121_spill] sm:$0xff] %v4600_v23  ;;  %v2658_v43 = vpop.permute.xlu1 %2657 }
 0x434   : > { %6666 = vst [vmem:[#allocation122_spill] sm:$0xff] %v4602_v15  ;;  %v4604_v14 = vpop.f32.mrf.mxu1 }
 0x435   : > { %v2546_v13 = vpop.permute.xlu0 %2545 }
 0x436   : > { %v4608_v33 = vsel %vm6535_vm1, %v2546_v13, %v2564_v59  ;;  %v4612_v25 = vsel %vm6535_vm1, %v2564_v59, %v2546_v13  ;;  %v4614_v12 = vpop.f32.mrf.mxu1  ;;  %v6674_v59 = vmov 0  ;;  %v3596_v13 = vmov -inf  }
 0x437   : > { %6667 = vst [vmem:[#allocation123_spill] sm:$0xff] %v4608_v33  ;;  %6668 = vst [vmem:[#allocation124_spill] sm:$0xff] %v4612_v25  ;;  %v2492_v4 = vpop.permute.xlu1 %2491  ;;  %v6673_v33 = vlaneseq }
 0x438   : > { %6669 = vst [vmem:[#allocation125_spill] sm:$0xff] %v4614_v12  ;;  %v4616_v61 = vpop.f32.mrf.mxu1 }
 0x439   : > { %v2644_v63 = vpop.permute.xlu0 %2643  ;;  %vm4629_vm12 = vcmp.lt.s32.totalorder %v6673_v33, 256 }
 0x43a   : > { %v4620_v23 = vsel %vm6536_vm2, %v2644_v63, %v2662_v18  ;;  %v4624_v10 = vsel %vm6536_vm2, %v2662_v18, %v2644_v63  ;;  %v4626_v27 = vpop.f32.mrf.mxu1  ;;  %v6675_v59 = vsel %vm4629_vm12, 4294967295, %v6674_v59  ;;  %920 = vst.msk [vmem:[#allocation3] sm:$0x3] %vm4629_vm12, %v3596_v13 }
 0x43b   : > { %6670 = vst [vmem:[#allocation126_spill] sm:$0xff] %v4620_v23  ;;  %6671 = vst [vmem:[#allocation127_spill] sm:$0xff] %v4624_v10  ;;  %v2656_v33 = vpop.permute.xlu1 %2655 }
 0x43c   : > { %6672 = vst [vmem:[#allocation128_spill] sm:$0xff] %v4626_v27  ;;  %6676 = vst [vmem:[#allocation129_spill] sm:$0xff] %v6675_v59  ;;  %v4635_v25 = vpop.f32.mrf.mxu1  ;;  %v1383_v59 = vmax.f32 %v4482_v9, %v4506_v56 }
 0x43d   : > { %v2642_v8 = vpop.permute.xlu0 %2641 }
 0x43e   : > { %v4639_v23 = vsel %vm6536_vm2, %v2642_v8, %v2660_v1  ;;  %v4643_v18 = vsel %vm6536_vm2, %v2660_v1, %v2642_v8  ;;  %v4645_v63 = vpop.f32.mrf.mxu1 }
 0x43f   : > { %6677 = vst [vmem:[#allocation130_spill] sm:$0xff] %v4639_v23  ;;  %6678 = vst [vmem:[#allocation131_spill] sm:$0xff] %v4643_v18  ;;  %v2490_v8 = vpop.permute.xlu1 %2489 }
 0x440   : > { %6679 = vst [vmem:[#allocation132_spill] sm:$0xff] %v4645_v63  ;;  %v4647_v10 = vpop.f32.mrf.mxu1 }
 0x441   : > { %v2476_v7 = vpop.permute.xlu0 %2475 }
 0x442   : > { %v4651_v13 = vsel %vm6539_vm3, %v2476_v7, %v2494_v35  ;;  %v4655_v28 = vsel %vm6539_vm3, %v2494_v35, %v2476_v7  ;;  %v4657_v3 = vpop.f32.mrf.mxu1 }
 0x443   : > { %6680 = vst [vmem:[#allocation133_spill] sm:$0xff] %v4651_v13  ;;  %6681 = vst [vmem:[#allocation134_spill] sm:$0xff] %v4655_v28 }
 0x444   : > { %6682 = vst [vmem:[#allocation135_spill] sm:$0xff] %v4657_v3  ;;  %v4659_v23 = vpop.f32.mrf.mxu1 }
 0x445   : > { %v2640_v1 = vpop.permute.xlu0 %2639 }
 0x446   : > { %v4663_v18 = vsel %vm6536_vm2, %v2640_v1, %v2658_v43  ;;  %v4667_v55 = vsel %vm6536_vm2, %v2658_v43, %v2640_v1  ;;  %v4669_v46 = vpop.f32.mrf.mxu1 }
 0x447   : > { %6683 = vst [vmem:[#allocation136_spill] sm:$0xff] %v4663_v18  ;;  %6684 = vst [vmem:[#allocation137_spill] sm:$0xff] %v4667_v55  ;;  %v2654_v18 = vpop.permute.xlu1 %2653 }
 0x448   : > { %6685 = vst [vmem:[#allocation138_spill] sm:$0xff] %v4669_v46  ;;  %v4671_v13 = vpop.f32.mrf.mxu1 }
 0x449   : > { %v2474_v7 = vpop.permute.xlu0 %2473 }
 0x44a   : > { %v4675_v35 = vsel %vm6539_vm3, %v2474_v7, %v2492_v4  ;;  %v4679_v28 = vsel %vm6539_vm3, %v2492_v4, %v2474_v7  ;;  %v4681_v53 = vpop.f32.mrf.mxu1 }
 0x44b   : > { %6686 = vst [vmem:[#allocation139_spill] sm:$0xff] %v4675_v35  ;;  %6687 = vst [vmem:[#allocation140_spill] sm:$0xff] %v4679_v28  ;;  %v2488_v4 = vpop.permute.xlu1 %2487 }
 0x44c   : > { %6688 = vst [vmem:[#allocation141_spill] sm:$0xff] %v4681_v53  ;;  %v4683_v44 = vpop.f32.mrf.mxu1 }
 0x44d   : > { %v2638_v43 = vpop.permute.xlu0 %2637 }
 0x44e   : > { %v4687_v1 = vsel %vm6536_vm2, %v2638_v43, %v2656_v33  ;;  %v4691_v55 = vsel %vm6536_vm2, %v2656_v33, %v2638_v43  ;;  %v4693_v51 = vpop.f32.mrf.mxu1 }
 0x44f   : > { %6689 = vst [vmem:[#allocation142_spill] sm:$0xff] %v4687_v1  ;;  %6690 = vst [vmem:[#allocation143_spill] sm:$0xff] %v4691_v55 }
 0x450   : > { %6691 = vst [vmem:[#allocation144_spill] sm:$0xff] %v4693_v51  ;;  %v4695_v35 = vpop.f32.mrf.mxu1 }
 0x451   : > { %v2472_v7 = vpop.permute.xlu0 %2471 }
 0x452   : > { %v4699_v28 = vsel %vm6539_vm3, %v2472_v7, %v2490_v8  ;;  %v4703_v40 = vsel %vm6539_vm3, %v2490_v8, %v2472_v7  ;;  %v4705_v49 = vpop.f32.mrf.mxu1 }
 0x453   : > { %6692 = vst [vmem:[#allocation145_spill] sm:$0xff] %v4699_v28  ;;  %6693 = vst [vmem:[#allocation146_spill] sm:$0xff] %v4703_v40  ;;  %v2652_v28 = vpop.permute.xlu1 %2651 }
 0x454   : > { %6694 = vst [vmem:[#allocation147_spill] sm:$0xff] %v4705_v49  ;;  %v4707_v1 = vpop.f32.mrf.mxu1 }
 0x455   : > { %v2636_v33 = vpop.permute.xlu0 %2635 }
 0x456   : > { %v4711_v43 = vsel %vm6536_vm2, %v2636_v33, %v2654_v18  ;;  %v4715_v55 = vsel %vm6536_vm2, %v2654_v18, %v2636_v33  ;;  %v4717_v38 = vpop.f32.mrf.mxu1 }
 0x457   : > { %6695 = vst [vmem:[#allocation148_spill] sm:$0xff] %v4711_v43  ;;  %6696 = vst [vmem:[#allocation149_spill] sm:$0xff] %v4715_v55  ;;  %v2486_v18 = vpop.permute.xlu1 %2485 }
 0x458   : > { %6697 = vst [vmem:[#allocation150_spill] sm:$0xff] %v4717_v38  ;;  %v4719_v47 = vpop.f32.mrf.mxu1 }
 0x459   : > { %v2470_v8 = vpop.permute.xlu0 %2469 }
 0x45a   : > { %v4723_v7 = vsel %vm6539_vm3, %v2470_v8, %v2488_v4  ;;  %v4727_v40 = vsel %vm6539_vm3, %v2488_v4, %v2470_v8  ;;  %v4729_v36 = vpop.f32.mrf.mxu1 }
 0x45b   : > { %6698 = vst [vmem:[#allocation151_spill] sm:$0xff] %v4723_v7  ;;  %6699 = vst [vmem:[#allocation152_spill] sm:$0xff] %v4727_v40 }
 0x45c   : > { %6700 = vst [vmem:[#allocation153_spill] sm:$0xff] %v4729_v36  ;;  %v4731_v43 = vpop.f32.mrf.mxu1 }
 0x45d   : > { %v2634_v33 = vpop.permute.xlu0 %2633 }
 0x45e   : > { %v4735_v55 = vsel %vm6536_vm2, %v2634_v33, %v2652_v28  ;;  %v4739_v37 = vsel %vm6536_vm2, %v2652_v28, %v2634_v33  ;;  %v4741_v42 = vpop.f32.mrf.mxu1  ;;  %v1345_v28 = vmax.f32 %v4466_v11, %v4484_v41  ;;  %v1346_v33 = vmax.f32 %v4472_v39, %v4496_v0 }
 0x45f   : > { %6701 = vst [vmem:[#allocation154_spill] sm:$0xff] %v4735_v55  ;;  %6702 = vst [vmem:[#allocation155_spill] sm:$0xff] %v4739_v37  ;;  %v2650_v55 = vpop.permute.xlu1 %2649 }
 0x460   : > { %6703 = vst [vmem:[#allocation156_spill] sm:$0xff] %v4741_v42  ;;  %v4743_v7 = vpop.f32.mrf.mxu1 }
 0x461   : > { %v2468_v4 = vpop.permute.xlu0 %2467 }
 0x462   : > { %v4747_v8 = vsel %vm6539_vm3, %v2468_v4, %v2486_v18  ;;  %v4751_v40 = vsel %vm6539_vm3, %v2486_v18, %v2468_v4  ;;  %v4753_v45 = vpop.f32.mrf.mxu1 }
 0x463   : > { %6704 = vst [vmem:[#allocation157_spill] sm:$0xff] %v4747_v8  ;;  %6705 = vst [vmem:[#allocation158_spill] sm:$0xff] %v4751_v40  ;;  %v1347_v40 = vmax.f32 %v1345_v28, %v4508_v62  ;;  %v1348_v8 = vmax.f32 %v1346_v33, %v4520_v60  ;;  %v1382_v33 = vmax.f32 %v4470_v2, %v4494_v57  ;;  %v4942_v57 = vadd.s32 200, %v3908_v19 }
 0x464   : > { %6706 = vst [vmem:[#allocation159_spill] sm:$0xff] %v4753_v45  ;;  %v4755_v34 = vpop.f32.mrf.mxu1 }
 0x465   : > { %v2632_v37 = vpop.permute.xlu0 %2631  ;;  %v1349_v21 = vmax.f32 %v1347_v40, %v4532_v58  ;;  %v1350_v22 = vmax.f32 %v1348_v8, %v4544_v6  ;;  %v1384_v9 = vmax.f32 %v1382_v33, %v4518_v54  ;;  %v4939_v54 = vadd.s32 192, %v3908_v19 }
 0x466   : > { %v4763_v29 = vsel %vm6536_vm2, %v2632_v37, %v2650_v55  ;;  %v4767_v18 = vsel %vm6536_vm2, %v2650_v55, %v2632_v37  ;;  %v4769_v4 = vpop.f32.mrf.mxu1 }
 0x467   : > { %6707 = vst [vmem:[#allocation160_spill] sm:$0xff] %v4763_v29  ;;  %6708 = vst [vmem:[#allocation161_spill] sm:$0xff] %v4767_v18  ;;  %v2484_v29 = vpop.permute.xlu1 %2483  ;;  %v1385_v18 = vmax.f32 %v1383_v59, %v4530_v52  ;;  %v1351_v40 = vmax.f32 %v1349_v21, %v4556_v31  ;;  %v1352_v8 = vmax.f32 %v1350_v22, %v4568_v24 }
 0x468   : > { %6709 = vst [vmem:[#allocation162_spill] sm:$0xff] %v4769_v4  ;;  %v4773_v32 = vpop.f32.mrf.mxu1  ;;  %v1386_v20 = vmax.f32 %v1384_v9, %v4542_v50  ;;  %v4936_v50 = vadd.s32 184, %v3908_v19 }
 0x469   : > { %v2466_v0 = vpop.permute.xlu0 %2465 }
 0x46a   : > { %v4781_v37 = vsel %vm6539_vm3, %v2466_v0, %v2484_v29  ;;  %v4785_v55 = vsel %vm6539_vm3, %v2484_v29, %v2466_v0  ;;  %v4787_v28 = vpop.f32.mrf.mxu1  ;;  %v1353_v29 = vmax.f32 %v1351_v40, %v4580_v16  ;;  %v1354_v0 = vmax.f32 %v1352_v8, %v4592_v30  ;;  %6722 = vst [vmem:[#allocation175_spill] sm:$0xff] %v4936_v50 }
 0x46b   : > { %6710 = vst [vmem:[#allocation163_spill] sm:$0xff] %v4781_v37  ;;  %6711 = vst [vmem:[#allocation164_spill] sm:$0xff] %v4785_v55  ;;  %v1387_v37 = vmax.f32 %v1385_v18, %v4554_v48  ;;  %v1388_v33 = vmax.f32 %v1386_v20, %v4566_v26  ;;  %v4933_v26 = vadd.s32 176, %v3908_v19  ;;  %v4956_v50 = vadd.s32 232, %v3908_v19 }
 0x46c   : > { %6712 = vst [vmem:[#allocation165_spill] sm:$0xff] %v4787_v28  ;;  %v4794_v56 = vpop.f32.mrf.mxu1  ;;  %v1355_v21 = vmax.f32 %v1353_v29, %v4604_v14  ;;  %v1356_v22 = vmax.f32 %v1354_v0, %v4616_v61 }
 0x46d   : > { %v1389_v59 = vmax.f32 %v1387_v37, %v4578_v17  ;;  %v1390_v9 = vmax.f32 %v1388_v33, %v4590_v5  ;;  %v4930_v5 = vadd.s32 168, %v3908_v19  ;;  %6721 = vst [vmem:[#allocation174_spill] sm:$0xff] %v4933_v26  ;;  %v4953_v26 = vadd.s32 224, %v3908_v19  ;;  %6725 = vst [vmem:[#allocation178_spill] sm:$0xff] %v4956_v50 }
 0x46e   : > { %v4800_v55 = vpop.f32.mrf.mxu1  ;;  %v1357_v40 = vmax.f32 %v1355_v21, %v4635_v25  ;;  %v1358_v8 = vmax.f32 %v1356_v22, %v4647_v10 }
 0x46f   : > { %6713 = vst [vmem:[#allocation166_spill] sm:$0xff] %v4800_v55  ;;  %v1391_v18 = vmax.f32 %v1389_v59, %v4602_v15  ;;  %v1392_v20 = vmax.f32 %v1390_v9, %v4614_v12  ;;  %v4927_v12 = vadd.s32 160, %v3908_v19  ;;  %6720 = vst [vmem:[#allocation173_spill] sm:$0xff] %v4930_v5  ;;  %v4950_v5 = vadd.s32 216, %v3908_v19 }
 0x470   : > { %v4806_v52 = vpop.f32.mrf.mxu1  ;;  %v1359_v29 = vmax.f32 %v1357_v40, %v4659_v23  ;;  %v1360_v0 = vmax.f32 %v1358_v8, %v4671_v13  ;;  %6724 = vst [vmem:[#allocation177_spill] sm:$0xff] %v4953_v26  ;;  %v6728_v26 = vld [vmem:[#allocation25_spill] sm:$0xff] }
 0x471   : > { %v1393_v37 = vmax.f32 %v1391_v18, %v4626_v27  ;;  %v1394_v33 = vmax.f32 %v1392_v20, %v4645_v63  ;;  %6719 = vst [vmem:[#allocation172_spill] sm:$0xff] %v4927_v12  ;;  %v4947_v12 = vadd.s32 208, %v3908_v19  ;;  %6723 = vst [vmem:[#allocation176_spill] sm:$0xff] %v4950_v5  ;;  %v6729_v5 = vld [vmem:[#allocation24_spill] sm:$0xff] }
 0x472   : > { %v4812_v48 = vpop.f32.mrf.mxu1  ;;  %v1361_v21 = vmax.f32 %v1359_v29, %v4683_v44  ;;  %v1362_v22 = vmax.f32 %v1360_v0, %v4695_v35 }
 0x473   : > { %6714 = vst [vmem:[#allocation167_spill] sm:$0xff] %v4812_v48  ;;  %v1395_v59 = vmax.f32 %v1393_v37, %v4657_v3  ;;  %v1396_v9 = vmax.f32 %v1394_v33, %v4669_v46  ;;  %v4919_v46 = vadd.s32 144, %v3908_v19 }
 0x474   : > { %v4818_v17 = vpop.f32.mrf.mxu1  ;;  %v1363_v40 = vmax.f32 %v1361_v21, %v4707_v1  ;;  %v1364_v8 = vmax.f32 %v1362_v22, %v4719_v47 }
 0x475   : > { %v1397_v18 = vmax.f32 %v1395_v59, %v4681_v53  ;;  %v1398_v20 = vmax.f32 %v1396_v9, %v4693_v51  ;;  %v4868_v51 = vadd.s32 8, %v3908_v19 }
 0x476   : > { %v4824_v15 = vpop.f32.mrf.mxu1  ;;  %v1365_v29 = vmax.f32 %v1363_v40, %v4731_v43  ;;  %v1366_v0 = vmax.f32 %v1364_v8, %v4743_v7 }
 0x477   : > { %6715 = vst [vmem:[#allocation168_spill] sm:$0xff] %v4824_v15  ;;  %v1399_v37 = vmax.f32 %v1397_v18, %v4705_v49  ;;  %v1400_v33 = vmax.f32 %v1398_v20, %v4717_v38 }
 0x478   : > { %v4830_v27 = vpop.f32.mrf.mxu1  ;;  %v1367_v21 = vmax.f32 %v1365_v29, %v4755_v34  ;;  %v1368_v22 = vmax.f32 %v1366_v0, %v4773_v32 }
 0x479   : > { %v1401_v59 = vmax.f32 %v1399_v37, %v4729_v36  ;;  %v1402_v9 = vmax.f32 %v1400_v33, %v4741_v42 }
 0x47a   : > { %v4836_v3 = vpop.f32.mrf.mxu1  ;;  %v1369_v40 = vmax.f32 %v1367_v21, %v4794_v56  ;;  %v1370_v8 = vmax.f32 %v1368_v22, %v4806_v52 }
 0x47b   : > { %6716 = vst [vmem:[#allocation169_spill] sm:$0xff] %v4836_v3  ;;  %v1403_v18 = vmax.f32 %v1401_v59, %v4753_v45  ;;  %v1404_v20 = vmax.f32 %v1402_v9, %v4769_v4 }
 0x47c   : > { %v4842_v53 = vpop.f32.mrf.mxu1  ;;  %v1371_v29 = vmax.f32 %v1369_v40, %v4818_v17  ;;  %v1372_v0 = vmax.f32 %v1370_v8, %v4830_v27 }
 0x47d   : > { %v1405_v37 = vmax.f32 %v1403_v18, %v4787_v28  ;;  %v1406_v33 = vmax.f32 %v1404_v20, %v4800_v55  ;;  %v4871_v20 = vadd.s32 16, %v3908_v19  ;;  %v4916_v55 = vadd.s32 136, %v3908_v19 }
 0x47e   : > { %v4848_v49 = vpop.f32.mrf.mxu1  ;;  %v1373_v21 = vmax.f32 %v1371_v29, %v4842_v53 }
 0x47f   : > { %6717 = vst [vmem:[#allocation170_spill] sm:$0xff] %v4848_v49  ;;  %v1407_v59 = vmax.f32 %v1405_v37, %v4812_v48  ;;  %v1408_v40 = vmax.f32 %v1406_v33, %v4824_v15  ;;  %v4892_v33 = vadd.s32 72, %v3908_v19  ;;  %v4913_v15 = vadd.s32 128, %v3908_v19 }
 0x480   : > { %v4854_v36 = vpop.f32.mrf.mxu1 }
 0x481   : > { %v1374_v22 = vmax.f32 %v1372_v0, %v4854_v36  ;;  %v1409_v18 = vmax.f32 %v1407_v59, %v4836_v3  ;;  %v1410_v9 = vmax.f32 %v1408_v40, %v4848_v49  ;;  %v4874_v59 = vadd.s32 24, %v3908_v19 }
 0x482   : > { %v4860_v45 = vpop.f32.mrf.mxu1  ;;  %v4898_v40 = vadd.s32 88, %v3908_v19  ;;  %v4907_v49 = vadd.s32 112, %v3908_v19  ;;  %v4910_v3 = vadd.s32 120, %v3908_v19 }
 0x483   : > { %6718 = vst [vmem:[#allocation171_spill] sm:$0xff] %v4860_v45  ;;  %v1375_v28 = vmax.f32 %v1373_v21, %v1374_v22  ;;  %v1411_v42 = vmax.f32 %v1409_v18, %v4860_v45  ;;  %v4877_v21 = vadd.s32 32, %v3908_v19  ;;  %v4880_v22 = vadd.s32 40, %v3908_v19 }
 0x484   : > { %v4895_v18 = vadd.s32 80, %v3908_v19  ;;  %v4904_v45 = vadd.s32 104, %v3908_v19 }
 0x485   : > { %v1376_v8 = vrot.slane %v1375_v28, 4  ;;  %v1412_v37 = vmax.f32 %v1410_v9, %v1411_v42  ;;  %v4883_v42 = vadd.s32 48, %v3908_v19 }
 0x487   : > { %v1377_v4 = vmax.f32 %v1375_v28, %v1376_v8  ;;  %v1413_v29 = vrot.slane %v1412_v37, 4  ;;  %v4889_v28 = vadd.s32 64, %v3908_v19  ;;  %v4901_v8 = vadd.s32 96, %v3908_v19 }
 0x489   : > { %v1378_v48 = vrot.slane %v1377_v4, 2  ;;  %v1414_v0 = vmax.f32 %v1412_v37, %v1413_v29  ;;  %v3597_v37 = vmov 1966171168  }
 0x48a   : > { %v2005_v29 = vunpack.c.l.s4 %v3597_v37  ;;  %v4922_v37 = vadd.s32 152, %v3908_v19 }
 0x48b   : > { %v1379_v38 = vmax.f32 %v1377_v4, %v1378_v48  ;;  %v4886_v4 = vadd.s32 56, %v3908_v19  ;;  %v1415_v9 = vrot.slane %v1414_v0, 2 }
 0x48c   : > { %v2006_v2 = vunpack.c.0.s8 %v2005_v29  ;;  %v4970_v29 = vadd.s32 248, %v3908_v19 }
 0x48d   : > { %v1380_v48 = vrot.slane %v1379_v38, 1 }
 0x48f   : > { %v4924_v63 = vmax.f32 %v1379_v38, %v1380_v48  ;;  %v4944_v38 = vmax.f32 %v1414_v0, %v1415_v9  ;;  %v1985_v48 = vld [vmem:[#allocation3] sm:$0x3]  ;;  %v6726_v0 = vld [vmem:[#allocation95_spill] sm:$0xff]  ;;  %v4967_v9 = vadd.s32 240, %v3908_v19 }
 0x490   : > { %6727 = vst [vmem:[#allocation95_spill] sm:$0xff] %v4970_v29  ;;  %v4973_v50 = vrot.slane %v1985_v48, %v6728_v26 }
 0x491   : > { %vm1452_vm13 = vcmp.eq.f32.partialorder %v4466_v11, %v4924_v63  ;;  %vm1454_vm14 = vcmp.eq.f32.partialorder %v4472_v39, %v4924_v63  ;;  %vm1456_vm15 = vcmp.eq.f32.partialorder %v4484_v41, %v4924_v63  ;;  %vm1458_vm0 = vcmp.eq.f32.partialorder %v6726_v0, %v4924_v63 }
 0x492   : > { %v4976_v11 = vrot.slane %v1985_v48, %v6729_v5  ;;  %vm1460_vm9 = vcmp.eq.f32.partialorder %v4508_v62, %v4924_v63  ;;  %vm1462_vm10 = vcmp.eq.f32.partialorder %v4520_v60, %v4924_v63  ;;  %v4984_v39 = vsub.s32 %v2006_v2, %v3908_v19 }
 0x493   : > { %v1516_v0 = vsel %vm1452_vm13, %v3908_v19, 256  ;;  %v1518_v29 = vsel %vm1454_vm14, %v4868_v51, 256  ;;  %v1520_v26 = vsel %vm1456_vm15, %v4871_v20, 256  ;;  %v1522_v48 = vsel %vm1458_vm0, %v4874_v59, 256 }
 0x494   : > { %6730 = vst [vmem:[#allocation179_spill] sm:$0xff] %v4984_v39  ;;  %vm1464_vm11 = vcmp.eq.f32.partialorder %v4532_v58, %v4924_v63  ;;  %vm1466_vm4 = vcmp.eq.f32.partialorder %v4544_v6, %v4924_v63  ;;  %vm1468_vm1 = vcmp.eq.f32.partialorder %v4556_v31, %v4924_v63  ;;  %vm1470_vm2 = vcmp.eq.f32.partialorder %v4568_v24, %v4924_v63 }
 0x495   : > { %vm1472_vm13 = vcmp.eq.f32.partialorder %v4580_v16, %v4924_v63  ;;  %vm1474_vm14 = vcmp.eq.f32.partialorder %v4592_v30, %v4924_v63  ;;  %vm1476_vm15 = vcmp.eq.f32.partialorder %v4604_v14, %v4924_v63  ;;  %vm1580_vm3 = vcmp.lt.s32.totalorder %v1516_v0, %v1520_v26 }
 0x496   : > { %vm1582_vm8 = vcmp.lt.s32.totalorder %v1518_v29, %v1522_v48  ;;  %v1524_v2 = vsel %vm1460_vm9, %v4877_v21, 256  ;;  %v1526_v41 = vsel %vm1462_vm10, %v4880_v22, 256  ;;  %v1581_v5 = vsel %vm1580_vm3, %v1516_v0, %v1520_v26 }
 0x497   : > { %v1583_v39 = vsel %vm1582_vm8, %v1518_v29, %v1522_v48  ;;  %vm1484_vm7 = vcmp.eq.f32.partialorder %v4659_v23, %v4924_v63  ;;  %vm1584_vm6 = vcmp.lt.s32.totalorder %v1581_v5, %v1524_v2  ;;  %v1528_v62 = vsel %vm1464_vm11, %v4883_v42, 256 }
 0x498   : > { %vm1586_vm0 = vcmp.lt.s32.totalorder %v1583_v39, %v1526_v41  ;;  %v1530_v60 = vsel %vm1466_vm4, %v4886_v4, 256  ;;  %v1585_v26 = vsel %vm1584_vm6, %v1581_v5, %v1524_v2  ;;  %vm1488_vm3 = vcmp.eq.f32.partialorder %v4683_v44, %v4924_v63  ;;  %v6738_v44 = vld [vmem:[#allocation174_spill] sm:$0xff] }
 0x499   : > { %v1587_v29 = vsel %vm1586_vm0, %v1583_v39, %v1526_v41  ;;  %vm1490_vm8 = vcmp.eq.f32.partialorder %v4695_v35, %v4924_v63  ;;  %vm1588_vm9 = vcmp.lt.s32.totalorder %v1585_v26, %v1528_v62  ;;  %vm1492_vm5 = vcmp.eq.f32.partialorder %v4707_v1, %v4924_v63 }
 0x49a   : > { %vm1590_vm10 = vcmp.lt.s32.totalorder %v1587_v29, %v1530_v60  ;;  %v1532_v5 = vsel %vm1468_vm1, %v4889_v28, 256  ;;  %v1534_v6 = vsel %vm1470_vm2, %v4892_v33, 256  ;;  %v1589_v58 = vsel %vm1588_vm9, %v1585_v26, %v1528_v62 }
 0x49b   : > { %v1591_v41 = vsel %vm1590_vm10, %v1587_v29, %v1530_v60  ;;  %vm1496_vm4 = vcmp.eq.f32.partialorder %v4731_v43, %v4924_v63  ;;  %vm1498_vm6 = vcmp.eq.f32.partialorder %v4743_v7, %v4924_v63  ;;  %vm1592_vm0 = vcmp.lt.s32.totalorder %v1589_v58, %v1532_v5 }
 0x49c   : > { %vm1594_vm11 = vcmp.lt.s32.totalorder %v1591_v41, %v1534_v6  ;;  %v1536_v31 = vsel %vm1472_vm13, %v4895_v18, 256  ;;  %v1538_v24 = vsel %vm1474_vm14, %v4898_v40, 256  ;;  %v1593_v39 = vsel %vm1592_vm0, %v1589_v58, %v1532_v5  ;;  %v6735_v58 = vld [vmem:[#allocation172_spill] sm:$0xff] }
 0x49d   : > { %v1595_v0 = vsel %vm1594_vm11, %v1591_v41, %v1534_v6  ;;  %vm1596_vm9 = vcmp.lt.s32.totalorder %v1593_v39, %v1536_v31  ;;  %v1540_v16 = vsel %vm1476_vm15, %v4901_v8, 256  ;;  %vm6731_vm13 = vcmp.eq.f32.partialorder %v4616_v61, %v4924_v63 }
 0x49e   : > { %vm1598_vm10 = vcmp.lt.s32.totalorder %v1595_v0, %v1538_v24  ;;  %v1542_v30 = vsel %vm6731_vm13, %v4904_v45, 256  ;;  %v1597_v48 = vsel %vm1596_vm9, %v1593_v39, %v1536_v31  ;;  %vm1504_vm14 = vcmp.eq.f32.partialorder %v4794_v56, %v4924_v63  ;;  %v6736_v31 = vld [vmem:[#allocation173_spill] sm:$0xff]  ;;  %v6739_v39 = vld [vmem:[#allocation175_spill] sm:$0xff] }
 0x49f   : > { %v1599_v2 = vsel %vm1598_vm10, %v1595_v0, %v1538_v24  ;;  %vm1600_vm0 = vcmp.lt.s32.totalorder %v1597_v48, %v1540_v16  ;;  %vm6732_vm1 = vcmp.eq.f32.partialorder %v4635_v25, %v4924_v63  ;;  %vm6733_vm15 = vcmp.eq.f32.partialorder %v4647_v10, %v4924_v63 }
 0x4a0   : > { %vm1602_vm2 = vcmp.lt.s32.totalorder %v1599_v2, %v1542_v30  ;;  %v1544_v14 = vsel %vm6732_vm1, %v4907_v49, 256  ;;  %v1546_v61 = vsel %vm6733_vm15, %v4910_v3, 256  ;;  %v1601_v62 = vsel %vm1600_vm0, %v1597_v48, %v1540_v16 }
 0x4a1   : > { %v1603_v60 = vsel %vm1602_vm2, %v1599_v2, %v1542_v30  ;;  %vm1508_vm9 = vcmp.eq.f32.partialorder %v4818_v17, %v4924_v63  ;;  %vm1604_vm13 = vcmp.lt.s32.totalorder %v1601_v62, %v1544_v14  ;;  %v1548_v25 = vsel %vm1484_vm7, %v4913_v15, 256 }
 0x4a2   : > { %vm1606_vm11 = vcmp.lt.s32.totalorder %v1603_v60, %v1546_v61  ;;  %vm6734_vm1 = vcmp.eq.f32.partialorder %v4671_v13, %v4924_v63  ;;  %v1605_v26 = vsel %vm1604_vm13, %v1601_v62, %v1544_v14  ;;  %vm1512_vm2 = vcmp.eq.f32.partialorder %v4842_v53, %v4924_v63  ;;  %v6746_v62 = vld [vmem:[#allocation178_spill] sm:$0xff]  ;;  %v6750_v53 = vld [vmem:[#allocation91_spill] sm:$0xff] }
 0x4a3   : > { %v1550_v10 = vsel %vm6734_vm1, %v4916_v55, 256  ;;  %v1607_v29 = vsel %vm1606_vm11, %v1603_v60, %v1546_v61  ;;  %vm1514_vm0 = vcmp.eq.f32.partialorder %v4854_v36, %v4924_v63  ;;  %vm1608_vm15 = vcmp.lt.s32.totalorder %v1605_v26, %v1548_v25  ;;  %v6745_v61 = vld [vmem:[#allocation177_spill] sm:$0xff]  ;;  %v6751_v36 = vld [vmem:[#allocation94_spill] sm:$0xff] }
 0x4a4   : > { %vm1610_vm10 = vcmp.lt.s32.totalorder %v1607_v29, %v1550_v10  ;;  %v1552_v23 = vsel %vm1488_vm3, %v4919_v46, 256  ;;  %v1554_v13 = vsel %vm1490_vm8, %v4922_v37, 256  ;;  %v1609_v5 = vsel %vm1608_vm15, %v1605_v26, %v1548_v25 }
 0x4a5   : > { %v1611_v6 = vsel %vm1610_vm10, %v1607_v29, %v1550_v10  ;;  %v1556_v41 = vsel %vm1492_vm5, %v6735_v58, 256  ;;  %vm6737_vm7 = vcmp.eq.f32.partialorder %v4719_v47, %v4924_v63  ;;  %vm1612_vm11 = vcmp.lt.s32.totalorder %v1609_v5, %v1552_v23  ;;  %v6748_v10 = vld [vmem:[#allocation95_spill] sm:$0xff] }
 0x4a6   : > { %v1558_v24 = vsel %vm6737_vm7, %v6736_v31, 256  ;;  %vm1614_vm13 = vcmp.lt.s32.totalorder %v1611_v6, %v1554_v13  ;;  %v1560_v35 = vsel %vm1496_vm4, %v6738_v44, 256  ;;  %v1562_v0 = vsel %vm1498_vm6, %v6739_v39, 256 }
 0x4a7   : > { %v1613_v16 = vsel %vm1612_vm11, %v1609_v5, %v1552_v23  ;;  %v1615_v1 = vsel %vm1614_vm13, %v1611_v6, %v1554_v13  ;;  %vm6740_vm5 = vcmp.eq.f32.partialorder %v4755_v34, %v4924_v63  ;;  %vm6741_vm3 = vcmp.eq.f32.partialorder %v4773_v32, %v4924_v63  ;;  %v6743_v34 = vld [vmem:[#allocation176_spill] sm:$0xff]  ;;  %v6752_v6 = vld [vmem:[#allocation98_spill] sm:$0xff] }
 0x4a8   : > { %v1564_v47 = vsel %vm6740_vm5, %v4939_v54, 256  ;;  %v1566_v30 = vsel %vm6741_vm3, %v4942_v57, 256  ;;  %vm1616_vm8 = vcmp.lt.s32.totalorder %v1613_v16, %v1556_v41  ;;  %vm1618_vm10 = vcmp.lt.s32.totalorder %v1615_v1, %v1558_v24  ;;  %v6749_v23 = vld [vmem:[#allocation88_spill] sm:$0xff] }
 0x4a9   : > { %v1568_v43 = vsel %vm1504_vm14, %v4947_v12, 256  ;;  %v1617_v7 = vsel %vm1616_vm8, %v1613_v16, %v1556_v41  ;;  %v1619_v48 = vsel %vm1618_vm10, %v1615_v1, %v1558_v24  ;;  %v6742_v2 = vrot.slane %v4944_v38, 1  ;;  %v6753_v41 = vld [vmem:[#allocation101_spill] sm:$0xff]  ;;  %v6754_v24 = vld [vmem:[#allocation104_spill] sm:$0xff]  ;;  %v6756_v1 = vld [vmem:[#allocation110_spill] sm:$0xff] }
 0x4aa   : > { %vm6744_vm4 = vcmp.eq.f32.partialorder %v4806_v52, %v4924_v63  ;;  %vm1620_vm6 = vcmp.lt.s32.totalorder %v1617_v7, %v1560_v35  ;;  %vm1622_vm1 = vcmp.lt.s32.totalorder %v1619_v48, %v1562_v0  ;;  %vm6543_vm15 = vcmp.gt.f32.partialorder %v4924_v63, %v4973_v50 }
 0x4ab   : > { %v5137_v14 = vmax.f32 %v4944_v38, %v6742_v2  ;;  %v1570_v32 = vsel %vm6744_vm4, %v6743_v34, 256  ;;  %v1572_v56 = vsel %vm1508_vm9, %v6745_v61, 256  ;;  %vm6747_vm14 = vcmp.eq.f32.partialorder %v4830_v27, %v4924_v63 }
 0x4ac   : > { %v1574_v38 = vsel %vm6747_vm14, %v6746_v62, 256  ;;  %v1621_v60 = vsel %vm1620_vm6, %v1617_v7, %v1560_v35  ;;  %v1623_v25 = vsel %vm1622_vm1, %v1619_v48, %v1562_v0  ;;  %v1576_v52 = vsel %vm1512_vm2, %v4967_v9, 256  ;;  %v6755_v35 = vld [vmem:[#allocation107_spill] sm:$0xff] }
 0x4ad   : > { %v1578_v26 = vsel %vm1514_vm0, %v6748_v10, 256  ;;  %vm1624_vm7 = vcmp.lt.s32.totalorder %v1621_v60, %v1564_v47  ;;  %vm1626_vm11 = vcmp.lt.s32.totalorder %v1623_v25, %v1566_v30  ;;  %vm1453_vm9 = vcmp.eq.f32.partialorder %v6749_v23, %v5137_v14  ;;  %v6763_v23 = vld [vmem:[#allocation132_spill] sm:$0xff] }
 0x4ae   : > { %v1625_v17 = vsel %vm1624_vm7, %v1621_v60, %v1564_v47  ;;  %v1627_v29 = vsel %vm1626_vm11, %v1623_v25, %v1566_v30  ;;  %v5168_v27 = vsel %vm6543_vm15, %v4924_v63, %v4973_v50  ;;  %vm1455_vm5 = vcmp.eq.f32.partialorder %v6750_v53, %v5137_v14  ;;  %v6757_v47 = vld [vmem:[#allocation113_spill] sm:$0xff]  ;;  %v6758_v30 = vld [vmem:[#allocation116_spill] sm:$0xff] }
 0x4af   : > { %vm1628_vm2 = vcmp.lt.s32.totalorder %v1625_v17, %v1568_v43  ;;  %vm1630_vm13 = vcmp.lt.s32.totalorder %v1627_v29, %v1570_v32  ;;  %vm1457_vm0 = vcmp.eq.f32.partialorder %v6751_v36, %v5137_v14  ;;  %vm1459_vm3 = vcmp.eq.f32.partialorder %v6752_v6, %v5137_v14 }
 0x4b0   : > { %v1629_v13 = vsel %vm1628_vm2, %v1625_v17, %v1568_v43  ;;  %v1631_v5 = vsel %vm1630_vm13, %v1627_v29, %v1570_v32  ;;  %vm1461_vm8 = vcmp.eq.f32.partialorder %v6753_v41, %v5137_v14  ;;  %vm1463_vm6 = vcmp.eq.f32.partialorder %v6754_v24, %v5137_v14  ;;  %v6759_v43 = vld [vmem:[#allocation119_spill] sm:$0xff]  ;;  %v6765_v41 = vld [vmem:[#allocation138_spill] sm:$0xff] }
 0x4b1   : > { %vm1632_vm10 = vcmp.lt.s32.totalorder %v1629_v13, %v1572_v56  ;;  %vm1634_vm4 = vcmp.lt.s32.totalorder %v1631_v5, %v1574_v38  ;;  %vm1465_vm1 = vcmp.eq.f32.partialorder %v6755_v35, %v5137_v14  ;;  %vm1467_vm14 = vcmp.eq.f32.partialorder %v6756_v1, %v5137_v14 }
 0x4b2   : > { %v1633_v0 = vsel %vm1632_vm10, %v1629_v13, %v1572_v56  ;;  %v1635_v16 = vsel %vm1634_vm4, %v1631_v5, %v1574_v38  ;;  %vm1469_vm7 = vcmp.eq.f32.partialorder %v6757_v47, %v5137_v14  ;;  %vm1471_vm13 = vcmp.eq.f32.partialorder %v6758_v30, %v5137_v14  ;;  %v6760_v56 = vld [vmem:[#allocation122_spill] sm:$0xff]  ;;  %v6764_v13 = vld [vmem:[#allocation135_spill] sm:$0xff] }
 0x4b3   : > { %vm1636_vm11 = vcmp.lt.s32.totalorder %v1633_v0, %v1576_v52  ;;  %vm1638_vm2 = vcmp.lt.s32.totalorder %v1635_v16, %v1578_v26  ;;  %vm1473_vm15 = vcmp.eq.f32.partialorder %v6759_v43, %v5137_v14  ;;  %v1517_v2 = vsel %vm1453_vm9, %v3908_v19, 256 }
 0x4b4   : > { %v1637_v7 = vsel %vm1636_vm11, %v1633_v0, %v1576_v52  ;;  %v1639_v48 = vsel %vm1638_vm2, %v1635_v16, %v1578_v26  ;;  %v1521_v32 = vsel %vm1457_vm0, %v4871_v20, 256  ;;  %vm1475_vm4 = vcmp.eq.f32.partialorder %v6760_v56, %v5137_v14  ;;  %v6761_v52 = vld [vmem:[#allocation125_spill] sm:$0xff]  ;;  %v6762_v26 = vld [vmem:[#allocation128_spill] sm:$0xff]  ;;  %v6770_v56 = vld [vmem:[#allocation150_spill] sm:$0xff] }
 0x4b5   : > { %vm1640_vm10 = vcmp.lt.s32.totalorder %v1637_v7, %v1639_v48  ;;  %v1519_v38 = vsel %vm1455_vm5, %v4868_v51, 256  ;;  %v1523_v60 = vsel %vm1459_vm3, %v4874_v59, 256  ;;  %vm1477_vm9 = vcmp.eq.f32.partialorder %v6761_v52, %v5137_v14  ;;  %v6766_v16 = vld [vmem:[#allocation141_spill] sm:$0xff] }
 0x4b6   : > { %v1641_v25 = vsel %vm1640_vm10, %v1637_v7, %v1639_v48  ;;  %vm1479_vm0 = vcmp.eq.f32.partialorder %v6762_v26, %v5137_v14  ;;  %v1525_v17 = vsel %vm1461_vm8, %v4877_v21, 256  ;;  %vm1481_vm5 = vcmp.eq.f32.partialorder %v6763_v23, %v5137_v14 }
 0x4b7   : > { %v1642_v29 = vrot.slane %v1641_v25, 4  ;;  %v1527_v53 = vsel %vm1463_vm6, %v4880_v22, 256  ;;  %v1529_v36 = vsel %vm1465_vm1, %v4883_v42, 256  ;;  %vm1651_vm3 = vcmp.lt.s32.totalorder %v1517_v2, %v1521_v32 }
 0x4b8   : > { %vm1483_vm11 = vcmp.eq.f32.partialorder %v6764_v13, %v5137_v14  ;;  %v1531_v5 = vsel %vm1467_vm14, %v4886_v4, 256  ;;  %v1652_v6 = vsel %vm1651_vm3, %v1517_v2, %v1521_v32  ;;  %vm1653_vm8 = vcmp.lt.s32.totalorder %v1519_v38, %v1523_v60  ;;  %v6767_v2 = vld [vmem:[#allocation144_spill] sm:$0xff] }
 0x4b9   : > { %vm1998_vm2 = vcmp.gt.f32.partialorder %v5137_v14, %v4976_v11  ;;  %vm1643_vm6 = vcmp.lt.s32.totalorder %v1641_v25, %v1642_v29  ;;  %v1654_v24 = vsel %vm1653_vm8, %v1519_v38, %v1523_v60  ;;  %vm1655_vm1 = vcmp.lt.s32.totalorder %v1652_v6, %v1525_v17 }
 0x4ba   : > { %v2000_v35 = vsel %vm1998_vm2, %v5137_v14, %v4976_v11  ;;  %v1644_v0 = vsel %vm1643_vm6, %v1641_v25, %v1642_v29  ;;  %vm1487_vm14 = vcmp.eq.f32.partialorder %v6766_v16, %v5137_v14  ;;  %v1533_v1 = vsel %vm1469_vm7, %v4889_v28, 256  ;;  %v6768_v29 = vld [vmem:[#allocation179_spill] sm:$0xff] }
 0x4bb   : > { %v1656_v7 = vsel %vm1655_vm1, %v1652_v6, %v1525_v17  ;;  %vm1657_vm3 = vcmp.lt.s32.totalorder %v1654_v24, %v1527_v53  ;;  %v1645_v48 = vrot.slane %v1644_v0, 2  ;;  %vm1489_vm8 = vcmp.eq.f32.partialorder %v6767_v2, %v5137_v14  ;;  %v6777_v2 = vld [vmem:[#allocation165_spill] sm:$0xff]  ;;  %v6820_v11 = vld [vmem:[#allocation39_spill] sm:$0xff] }
 0x4bc   : > { %v1658_v32 = vsel %vm1657_vm3, %v1654_v24, %v1527_v53  ;;  %vm1659_vm10 = vcmp.lt.s32.totalorder %v1656_v7, %v1529_v36  ;;  %v2003_v38 = vcombine.low %v5168_v27, %v2000_v35  ;;  %v1535_v60 = vsel %vm1471_vm13, %v4892_v33, 256 }
 0x4bd   : > { %v1537_v47 = vsel %vm1473_vm15, %v4895_v18, 256  ;;  %v1660_v25 = vsel %vm1659_vm10, %v1656_v7, %v1529_v36  ;;  %vm1661_vm7 = vcmp.lt.s32.totalorder %v1658_v32, %v1531_v5  ;;  %vm1646_vm6 = vcmp.lt.s32.totalorder %v1644_v0, %v1645_v48  ;;  %v6769_v36 = vld [vmem:[#allocation147_spill] sm:$0xff] }
 0x4be   : > { %v1662_v17 = vsel %vm1661_vm7, %v1658_v32, %v1531_v5  ;;  %vm1663_vm1 = vcmp.lt.s32.totalorder %v1660_v25, %v1533_v1  ;;  %v2010_v53 = vrot.slane %v2003_v38, %v6768_v29  ;;  %v1647_v6 = vsel %vm1646_vm6, %v1644_v0, %v1645_v48  ;;  %v6772_v38 = vld [vmem:[#allocation153_spill] sm:$0xff] }
 0x4bf   : > { %v1539_v27 = vsel %vm1475_vm4, %v4898_v40, 256  ;;  %v1664_v30 = vsel %vm1663_vm1, %v1660_v25, %v1533_v1  ;;  %vm1665_vm13 = vcmp.lt.s32.totalorder %v1662_v17, %v1535_v60  ;;  %v1648_v24 = vrot.slane %v1647_v6, 1 }
 0x4c0   : > { %v1666_v35 = vsel %vm1665_vm13, %v1662_v17, %v1535_v60  ;;  %vm1667_vm3 = vcmp.lt.s32.totalorder %v1664_v30, %v1537_v47  ;;  %v2017_v43 = vrot.slane %v2010_v53, %v6768_v29  ;;  %vm1491_vm15 = vcmp.eq.f32.partialorder %v6769_v36, %v5137_v14  ;;  %v6775_v53 = vld [vmem:[#allocation159_spill] sm:$0xff] }
 0x4c1   : > { %v1541_v5 = vsel %vm1477_vm9, %v4901_v8, 256  ;;  %v1668_v0 = vsel %vm1667_vm3, %v1664_v30, %v1537_v47  ;;  %vm1669_vm10 = vcmp.lt.s32.totalorder %v1666_v35, %v1539_v27  ;;  %vm1493_vm4 = vcmp.eq.f32.partialorder %v6770_v56, %v5137_v14  ;;  %v6773_v47 = vld [vmem:[#allocation156_spill] sm:$0xff] }
 0x4c2   : > { %v1543_v1 = vsel %vm1479_vm0, %v4904_v45, 256  ;;  %v1670_v7 = vsel %vm1669_vm10, %v1666_v35, %v1539_v27  ;;  %vm1671_vm7 = vcmp.lt.s32.totalorder %v1668_v0, %v1541_v5  ;;  %2019 = vst.msk [vmem:[#allocation3] sm:$0x3] %vm4629_vm12, %v2017_v43  ;;  %vm1649_vm6 = vcmp.lt.s32.totalorder %v1647_v6, %v1648_v24 }
 0x4c3   : > { %v1545_v52 = vsel %vm1481_vm5, %v4907_v49, 256  ;;  %v1672_v32 = vsel %vm1671_vm7, %v1668_v0, %v1541_v5  ;;  %vm1673_vm9 = vcmp.lt.s32.totalorder %v1670_v7, %v1543_v1  ;;  %vm1495_vm1 = vcmp.eq.f32.partialorder %v6772_v38, %v5137_v14  ;;  %v6778_v5 = vld [vmem:[#allocation166_spill] sm:$0xff] }
 0x4c4   : > { %v1547_v26 = vsel %vm1483_vm11, %v4910_v3, 256  ;;  %v1674_v60 = vsel %vm1673_vm9, %v1670_v7, %v1543_v1  ;;  %vm1675_vm0 = vcmp.lt.s32.totalorder %v1672_v32, %v1545_v52  ;;  %vm1497_vm12 = vcmp.eq.f32.partialorder %v6773_v47, %v5137_v14  ;;  %v6779_v1 = vld [vmem:[#allocation167_spill] sm:$0xff]  ;;  %v6781_v47 = vld [vmem:[#allocation169_spill] sm:$0xff] }
 0x4c5   : > { %vm6774_vm13 = vcmp.eq.f32.partialorder %v6765_v41, %v5137_v14  ;;  %v1676_v25 = vsel %vm1675_vm0, %v1672_v32, %v1545_v52  ;;  %vm1677_vm5 = vcmp.lt.s32.totalorder %v1674_v60, %v1547_v26  ;;  %v5294_v17 = vsel %vm1649_vm6, %v1647_v6, %v1648_v24  ;;  %v6776_v6 = vld [vmem:[#allocation162_spill] sm:$0xff]  ;;  %v6780_v52 = vld [vmem:[#allocation168_spill] sm:$0xff] }
 0x4c6   : > { %v1549_v23 = vsel %vm6774_vm13, %v4913_v15, 256  ;;  %v1551_v13 = vsel %vm1487_vm14, %v4916_v55, 256  ;;  %v1678_v29 = vsel %vm1677_vm5, %v1674_v60, %v1547_v26  ;;  %vm1499_vm3 = vcmp.eq.f32.partialorder %v6775_v53, %v5137_v14 }
 0x4c7   : > { %vm1679_vm11 = vcmp.lt.s32.totalorder %v1676_v25, %v1549_v23  ;;  %v1553_v41 = vsel %vm1489_vm8, %v4919_v46, 256  ;;  %vm1681_vm10 = vcmp.lt.s32.totalorder %v1678_v29, %v1551_v13  ;;  %vm1501_vm7 = vcmp.eq.f32.partialorder %v6776_v6, %v5137_v14 }
 0x4c8   : > { %v1680_v27 = vsel %vm1679_vm11, %v1676_v25, %v1549_v23  ;;  %v1555_v16 = vsel %vm1491_vm15, %v4922_v37, 256  ;;  %v1682_v30 = vsel %vm1681_vm10, %v1678_v29, %v1551_v13  ;;  %v1557_v24 = vsel %vm1493_vm4, %v6735_v58, 256  ;;  %v6782_v13 = vld [vmem:[#allocation170_spill] sm:$0xff] }
 0x4c9   : > { %vm1683_vm14 = vcmp.lt.s32.totalorder %v1680_v27, %v1553_v41  ;;  %vm1685_vm6 = vcmp.lt.s32.totalorder %v1682_v30, %v1555_v16  ;;  %vm1732_vm8 = vcmp.eq.s32.totalorder %v4880_v22, %v5294_v17  ;;  %vm1503_vm9 = vcmp.eq.f32.partialorder %v6777_v2, %v5137_v14 }
 0x4ca   : > { %v1684_v35 = vsel %vm1683_vm14, %v1680_v27, %v1553_v41  ;;  %v1559_v43 = vsel %vm1495_vm1, %v6736_v31, 256  ;;  %v1686_v36 = vsel %vm1685_vm6, %v1682_v30, %v1555_v16  ;;  %vm1505_vm0 = vcmp.eq.f32.partialorder %v6778_v5, %v5137_v14  ;;  %v6783_v41 = vld [vmem:[#allocation171_spill] sm:$0xff] }
 0x4cb   : > { %vm1687_vm15 = vcmp.lt.s32.totalorder %v1684_v35, %v1557_v24  ;;  %v1561_v0 = vsel %vm1497_vm12, %v6738_v44, 256  ;;  %vm1689_vm4 = vcmp.lt.s32.totalorder %v1686_v36, %v1559_v43  ;;  %vm1507_vm13 = vcmp.eq.f32.partialorder %v6779_v1, %v5137_v14 }
 0x4cc   : > { %v1688_v56 = vsel %vm1687_vm15, %v1684_v35, %v1557_v24  ;;  %v1563_v7 = vsel %vm1499_vm3, %v6739_v39, 256  ;;  %v1690_v48 = vsel %vm1689_vm4, %v1686_v36, %v1559_v43  ;;  %vm1509_vm5 = vcmp.eq.f32.partialorder %v6780_v52, %v5137_v14 }
 0x4cd   : > { %vm1691_vm1 = vcmp.lt.s32.totalorder %v1688_v56, %v1561_v0  ;;  %v1565_v32 = vsel %vm1501_vm7, %v4939_v54, 256  ;;  %vm1693_vm12 = vcmp.lt.s32.totalorder %v1690_v48, %v1563_v7  ;;  %v1567_v26 = vsel %vm1503_vm9, %v4942_v57, 256 }
 0x4ce   : > { %v1692_v38 = vsel %vm1691_vm1, %v1688_v56, %v1561_v0  ;;  %v1694_v60 = vsel %vm1693_vm12, %v1690_v48, %v1563_v7  ;;  %vm1774_vm3 = vcmp.eq.s32.totalorder %v4947_v12, %v5294_v17  ;;  %vm1511_vm10 = vcmp.eq.f32.partialorder %v6781_v47, %v5137_v14 }
 0x4cf   : > { %vm1695_vm11 = vcmp.lt.s32.totalorder %v1692_v38, %v1565_v32  ;;  %v1569_v23 = vsel %vm1505_vm0, %v4947_v12, 256  ;;  %vm1697_vm7 = vcmp.lt.s32.totalorder %v1694_v60, %v1567_v26  ;;  %vm1513_vm14 = vcmp.eq.f32.partialorder %v6782_v13, %v5137_v14  ;;  %v6810_v13 = vld [vmem:[#allocation59_spill] sm:$0xff] }
 0x4d0   : > { %v1696_v25 = vsel %vm1695_vm11, %v1692_v38, %v1565_v32  ;;  %v1571_v29 = vsel %vm1507_vm13, %v6743_v34, 256  ;;  %v1698_v53 = vsel %vm1697_vm7, %v1694_v60, %v1567_v26  ;;  %vm1515_vm9 = vcmp.eq.f32.partialorder %v6783_v41, %v5137_v14  ;;  %v6821_v14 = vld [vmem:[#allocation27_spill] sm:$0xff] }
 0x4d1   : > { %vm1699_vm6 = vcmp.lt.s32.totalorder %v1696_v25, %v1569_v23  ;;  %v1573_v27 = vsel %vm1509_vm5, %v6745_v61, 256  ;;  %vm1701_vm15 = vcmp.lt.s32.totalorder %v1698_v53, %v1571_v29  ;;  %v1575_v16 = vsel %vm1511_vm10, %v6746_v62, 256 }
 0x4d2   : > { %v1700_v6 = vsel %vm1699_vm6, %v1696_v25, %v1569_v23  ;;  %v1702_v30 = vsel %vm1701_vm15, %v1698_v53, %v1571_v29  ;;  %v1577_v24 = vsel %vm1513_vm14, %v4967_v9, 256  ;;  %v1579_v2 = vsel %vm1515_vm9, %v6748_v10, 256  ;;  %v6809_v25 = vld [vmem:[#allocation50_spill] sm:$0xff] }
 0x4d3   : > { %vm1703_vm0 = vcmp.lt.s32.totalorder %v1700_v6, %v1573_v27  ;;  %vm1705_vm4 = vcmp.lt.s32.totalorder %v1702_v30, %v1575_v16  ;;  %v3598_v38 = vmov 1.0   ;;  %vm1752_vm14 = vcmp.eq.s32.totalorder %v4910_v3, %v5294_v17 }
 0x4d4   : > { %v1704_v35 = vsel %vm1703_vm0, %v1700_v6, %v1573_v27  ;;  %v1706_v43 = vsel %vm1705_vm4, %v1702_v30, %v1575_v16  ;;  %vm1750_vm9 = vcmp.eq.s32.totalorder %v4907_v49, %v5294_v17  ;;  %vm1748_vm0 = vcmp.eq.s32.totalorder %v4904_v45, %v5294_v17  ;;  %v6813_v6 = vld [vmem:[#allocation52_spill] sm:$0xff]  ;;  %v6814_v16 = vld [vmem:[#allocation61_spill] sm:$0xff] }
 0x4d5   : > { %vm1707_vm13 = vcmp.lt.s32.totalorder %v1704_v35, %v1577_v24  ;;  %vm1709_vm1 = vcmp.lt.s32.totalorder %v1706_v43, %v1579_v2 }
 0x4d6   : > { %v1708_v36 = vsel %vm1707_vm13, %v1704_v35, %v1577_v24  ;;  %v1710_v5 = vsel %vm1709_vm1, %v1706_v43, %v1579_v2  ;;  %vm1746_vm13 = vcmp.eq.s32.totalorder %v4901_v8, %v5294_v17 }
 0x4d7   : > { %vm1711_vm12 = vcmp.lt.s32.totalorder %v1708_v36, %v1710_v5 }
 0x4d8   : > { %v1712_v0 = vsel %vm1711_vm12, %v1708_v36, %v1710_v5  ;;  %vm1744_vm12 = vcmp.eq.s32.totalorder %v4898_v40, %v5294_v17  ;;  %v6817_v5 = vmov 0  }
 0x4d9   : > { %v1713_v56 = vrot.slane %v1712_v0, 4 }
 0x4db   : > { %vm1714_vm5 = vcmp.lt.s32.totalorder %v1712_v0, %v1713_v56 }
 0x4dc   : > { %v1715_v1 = vsel %vm1714_vm5, %v1712_v0, %v1713_v56  ;;  %v2023_v56 = vsel %vm1998_vm2, 1, %v6817_v5 }
 0x4dd   : > { %v1716_v7 = vrot.slane %v1715_v1, 2 }
 0x4df   : > { %vm1717_vm11 = vcmp.lt.s32.totalorder %v1715_v1, %v1716_v7 }
 0x4e0   : > { %v1718_v48 = vsel %vm1717_vm11, %v1715_v1, %v1716_v7  ;;  %vm1742_vm11 = vcmp.eq.s32.totalorder %v4895_v18, %v5294_v17 }
 0x4e1   : > { %v1719_v52 = vrot.slane %v1718_v48, 1 }
 0x4e3   : > { %vm1720_vm10 = vcmp.lt.s32.totalorder %v1718_v48, %v1719_v52 }
 0x4e4   : > { %v5369_v32 = vsel %vm1720_vm10, %v1718_v48, %v1719_v52 }
 0x4e5   : > { %vm1753_vm7 = vcmp.eq.s32.totalorder %v4910_v3, %v5369_v32  ;;  %vm1751_vm6 = vcmp.eq.s32.totalorder %v4907_v49, %v5369_v32  ;;  %vm1749_vm15 = vcmp.eq.s32.totalorder %v4904_v45, %v5369_v32  ;;  %vm1747_vm4 = vcmp.eq.s32.totalorder %v4901_v8, %v5369_v32  ;;  %v6784_v3 = vld [vmem:[#allocation24_spill] sm:$0xff]  ;;  %v6785_v45 = vld [vmem:[#allocation25_spill] sm:$0xff] }
 0x4e6   : > { %3220 = vmatprep.subr.msk.mxu0 %vm1753_vm7, %v3598_v38  ;;  %vm1745_vm1 = vcmp.eq.s32.totalorder %v4898_v40, %v5369_v32  ;;  %vm1743_vm5 = vcmp.eq.s32.totalorder %v4895_v18, %v5369_v32  ;;  %vm1741_vm10 = vcmp.eq.s32.totalorder %v4892_v33, %v5369_v32  ;;  %vm1740_vm7 = vcmp.eq.s32.totalorder %v4892_v33, %v5294_v17  ;;  %v6797_v40 = vld [vmem:[#allocation45_spill] sm:$0xff] }
 0x4e7   : > { %3221 = vmatpush1.msk.msra.mxu0 %vm1752_vm14, %v3598_v38  ;;  %vm1739_vm14 = vcmp.eq.s32.totalorder %v4889_v28, %v5369_v32  ;;  %v6798_v8 = vld [vmem:[#allocation53_spill] sm:$0xff]  ;;  %v2031_v7 = vrot.slane %v2023_v56, %v6785_v45  ;;  %v6850_v56 = vld [vmem:[#allocation60_spill] sm:$0xff] }
 0x4e8   : > { %3222 = vmatprep.subr.msk.mxu0 %vm1751_vm6, %v3598_v38  ;;  %vm1738_vm6 = vcmp.eq.s32.totalorder %v4889_v28, %v5294_v17 }
 0x4e9   : > { %3223 = vmatpush1.msk.msra.mxu0 %vm1750_vm9, %v3598_v38  ;;  %vm1737_vm9 = vcmp.eq.s32.totalorder %v4886_v4, %v5369_v32 }
 0x4ea   : > { %3224 = vmatprep.subr.msk.mxu0 %vm1749_vm15, %v3598_v38  ;;  %vm1736_vm15 = vcmp.eq.s32.totalorder %v4886_v4, %v5294_v17  ;;  %v6795_v4 = vld [vmem:[#allocation46_spill] sm:$0xff] }
 0x4eb   : > { %3225 = vmatpush1.msk.msra.mxu0 %vm1748_vm0, %v3598_v38  ;;  %vm1735_vm0 = vcmp.eq.s32.totalorder %v4883_v42, %v5369_v32 }
 0x4ec   : > { %3226 = vmatprep.subr.msk.mxu0 %vm1747_vm4, %v3598_v38  ;;  %vm1734_vm4 = vcmp.eq.s32.totalorder %v4883_v42, %v5294_v17  ;;  %v6794_v42 = vld [vmem:[#allocation49_spill] sm:$0xff] }
 0x4ed   : > { %3227 = vmatpush1.msk.msra.mxu0 %vm1746_vm13, %v3598_v38  ;;  %vm1733_vm13 = vcmp.eq.s32.totalorder %v4880_v22, %v5369_v32  ;;  %v908_v28 = vadd.f32 %v6795_v4, %v6794_v42  ;;  %v6831_v42 = vld [vmem:[#allocation35_spill] sm:$0xff]  ;;  %v6832_v4 = vld [vmem:[#allocation36_spill] sm:$0xff] }
 0x4ee   : > { %3228 = vmatprep.subr.msk.mxu0 %vm1745_vm1, %v3598_v38  ;;  %vm1731_vm1 = vcmp.eq.s32.totalorder %v4877_v21, %v5369_v32 }
 0x4ef   : > { %3229 = vmatpush1.msk.msra.mxu0 %vm1744_vm12, %v3598_v38  ;;  %vm1730_vm12 = vcmp.eq.s32.totalorder %v4877_v21, %v5294_v17  ;;  %v6792_v21 = vld [vmem:[#allocation51_spill] sm:$0xff] }
 0x4f0   : > { %3230 = vmatprep.subr.msk.mxu0 %vm1743_vm5, %v3598_v38  ;;  %vm1729_vm5 = vcmp.eq.s32.totalorder %v4874_v59, %v5369_v32 }
 0x4f1   : > { %3231 = vmatpush1.msk.msra.mxu0 %vm1742_vm11, %v3598_v38  ;;  %vm1728_vm11 = vcmp.eq.s32.totalorder %v4874_v59, %v5294_v17 }
 0x4f2   : > { %3232 = vmatprep.subr.msk.mxu0 %vm1741_vm10, %v3598_v38  ;;  %vm1726_vm10 = vcmp.eq.s32.totalorder %v4871_v20, %v5294_v17 }
 0x4f3   : > { %3233 = vmatpush1.msk.msra.mxu0 %vm1740_vm7, %v3598_v38  ;;  %vm1725_vm7 = vcmp.eq.s32.totalorder %v4868_v51, %v5369_v32 }
 0x4f4   : > { %3234 = vmatprep.subr.msk.mxu0 %vm1739_vm14, %v3598_v38  ;;  %vm1724_vm14 = vcmp.eq.s32.totalorder %v4868_v51, %v5294_v17  ;;  %v6786_v51 = vld [vmem:[#allocation43_spill] sm:$0xff] }
 0x4f5   : > { %3235 = vmatpush1.msk.msra.mxu0 %vm1738_vm6, %v3598_v38  ;;  %vm1723_vm6 = vcmp.eq.s32.totalorder %v3908_v19, %v5369_v32 }
 0x4f6   : > { %3236 = vmatprep.subr.msk.mxu0 %vm1737_vm9, %v3598_v38  ;;  %vm1722_vm9 = vcmp.eq.s32.totalorder %v3908_v19, %v5294_v17  ;;  %v2179_v19 = vld [vmem:[#allocation10 + $0x1] ss:$8 sm:$0x3] }
 0x4f7   : > { %3237 = vmatpush1.msk.msra.mxu0 %vm1736_vm15, %v3598_v38  ;;  %vm1785_vm15 = vcmp.eq.s32.totalorder %v6748_v10, %v5369_v32  ;;  %v5556_v49 = vrot.slane %v2179_v19, %v6785_v45 }
 0x4f8   : > { %3238 = vmatprep.subr.msk.mxu0 %vm1735_vm0, %v3598_v38  ;;  %vm1784_vm0 = vcmp.eq.s32.totalorder %v6748_v10, %v5294_v17  ;;  %v6805_v10 = vld [vmem:[#allocation48_spill] sm:$0xff] }
 0x4f9   : > { %3239 = vmatpush1.msk.msra.mxu0 %vm1734_vm4, %v3598_v38  ;;  %vm1783_vm4 = vcmp.eq.s32.totalorder %v4967_v9, %v5369_v32 }
 0x4fa   : > { %3240 = vmatprep.subr.msk.mxu0 %vm1733_vm13, %v3598_v38  ;;  %vm1782_vm13 = vcmp.eq.s32.totalorder %v4967_v9, %v5294_v17 }
 0x4fb   : > { %3241 = vmatpush1.msk.msra.mxu0 %vm1732_vm8, %v3598_v38  ;;  %vm1727_vm8 = vcmp.eq.s32.totalorder %v4871_v20, %v5369_v32 }
 0x4fc   : > { %3242 = vmatprep.subr.msk.mxu0 %vm1731_vm1, %v3598_v38  ;;  %vm1781_vm1 = vcmp.eq.s32.totalorder %v6746_v62, %v5369_v32 }
 0x4fd   : > { %3243 = vmatpush1.msk.msra.mxu0 %vm1730_vm12, %v3598_v38  ;;  %vm1780_vm12 = vcmp.eq.s32.totalorder %v6746_v62, %v5294_v17 }
 0x4fe   : > { %3244 = vmatprep.subr.msk.mxu0 %vm1729_vm5, %v3598_v38  ;;  %vm1779_vm5 = vcmp.eq.s32.totalorder %v6745_v61, %v5369_v32 }
 0x4ff   : > { %3245 = vmatpush1.msk.msra.mxu0 %vm1728_vm11, %v3598_v38  ;;  %vm1778_vm11 = vcmp.eq.s32.totalorder %v6745_v61, %v5294_v17 }
 0x500   : > { %3246 = vmatprep.subr.msk.mxu0 %vm1727_vm8, %v3598_v38  ;;  %vm1777_vm8 = vcmp.eq.s32.totalorder %v6743_v34, %v5369_v32 }
 0x501   : > { %3247 = vmatpush1.msk.msra.mxu0 %vm1726_vm10, %v3598_v38  ;;  %vm1776_vm10 = vcmp.eq.s32.totalorder %v6743_v34, %v5294_v17 }
 0x502   : > { %3248 = vmatprep.subr.msk.mxu0 %vm1725_vm7, %v3598_v38  ;;  %vm1775_vm7 = vcmp.eq.s32.totalorder %v4947_v12, %v5369_v32  ;;  %v5550_v12 = vrot.slane %v2179_v19, %v6784_v3  ;;  %v6823_v19 = vld [vmem:[#allocation38_spill] sm:$0xff] }
 0x503   : > { %3249 = vmatpush1.msk.msra.mxu0 %vm1724_vm14, %v3598_v38  ;;  %vm1773_vm14 = vcmp.eq.s32.totalorder %v4942_v57, %v5369_v32 }
 0x504   : > { %3250 = vmatprep.subr.msk.mxu0 %vm1723_vm6, %v3598_v38  ;;  %vm1772_vm6 = vcmp.eq.s32.totalorder %v4942_v57, %v5294_v17  ;;  %v6788_v57 = vld [vmem:[#allocation23_spill] sm:$0xff] }
 0x505   : > { %3251 = vmatpush1.msk.msra.mxu0 %vm1722_vm9, %v3598_v38  ;;  %vm1771_vm9 = vcmp.eq.s32.totalorder %v4939_v54, %v5369_v32  ;;  %vm6837_vm2 = vcmp.lt.s32.totalorder %v6788_v57, 17 }
 0x506   : > { %3252 = vmatprep.subr.msk.mxu0 %vm1785_vm15, %v3598_v38  ;;  %vm1770_vm15 = vcmp.eq.s32.totalorder %v4939_v54, %v5294_v17  ;;  %v6787_v54 = vld [vmem:[#allocation42_spill] sm:$0xff] }
 0x507   : > { %3253 = vmatpush2.msk.msra.mxu0 %vm1784_vm0, %v3598_v38  ;;  %vm1768_vm0 = vcmp.eq.s32.totalorder %v6739_v39, %v5294_v17 }
 0x508   : > { %3254 = vmatprep.subr.msk.mxu0 %vm1783_vm4, %v3598_v38  ;;  %vm1767_vm4 = vcmp.eq.s32.totalorder %v6738_v44, %v5369_v32 }
 0x509   : > { %3255 = vmatpush2.msk.msra.mxu0 %vm1782_vm13, %v3598_v38  ;;  %vm1766_vm13 = vcmp.eq.s32.totalorder %v6738_v44, %v5294_v17  ;;  %v6802_v44 = vld [vmem:[#allocation55_spill] sm:$0xff] }
 0x50a   : > { %3256 = vmatprep.subr.msk.mxu0 %vm1781_vm1, %v3598_v38  ;;  %vm1765_vm1 = vcmp.eq.s32.totalorder %v6736_v31, %v5369_v32 }
 0x50b   : > { %3257 = vmatpush2.msk.msra.mxu0 %vm1780_vm12, %v3598_v38  ;;  %vm1764_vm12 = vcmp.eq.s32.totalorder %v6736_v31, %v5294_v17  ;;  %v6801_v31 = vld [vmem:[#allocation47_spill] sm:$0xff] }
 0x50c   : > { %3258 = vmatprep.subr.msk.mxu0 %vm1779_vm5, %v3598_v38  ;;  %vm1763_vm5 = vcmp.eq.s32.totalorder %v6735_v58, %v5369_v32 }
 0x50d   : > { %3259 = vmatpush2.msk.msra.mxu0 %vm1778_vm11, %v3598_v38  ;;  %vm1762_vm11 = vcmp.eq.s32.totalorder %v6735_v58, %v5294_v17 }
 0x50e   : > { %3260 = vmatprep.subr.msk.mxu0 %vm1777_vm8, %v3598_v38  ;;  %vm1761_vm8 = vcmp.eq.s32.totalorder %v4922_v37, %v5369_v32 }
 0x50f   : > { %3261 = vmatpush2.msk.msra.mxu0 %vm1776_vm10, %v3598_v38  ;;  %vm1760_vm10 = vcmp.eq.s32.totalorder %v4922_v37, %v5294_v17 }
 0x510   : > { %3262 = vmatprep.subr.msk.mxu0 %vm1775_vm7, %v3598_v38  ;;  %vm1759_vm7 = vcmp.eq.s32.totalorder %v4919_v46, %v5369_v32 }
 0x511   : > { %3263 = vmatpush2.msk.msra.mxu0 %vm1774_vm3, %v3598_v38  ;;  %vm1769_vm3 = vcmp.eq.s32.totalorder %v6739_v39, %v5369_v32 }
 0x512   : > { %3264 = vmatprep.subr.msk.mxu0 %vm1773_vm14, %v3598_v38  ;;  %vm1758_vm14 = vcmp.eq.s32.totalorder %v4919_v46, %v5294_v17  ;;  %v6791_v46 = vld [vmem:[#allocation44_spill] sm:$0xff] }
 0x513   : > { %3265 = vmatpush2.msk.msra.mxu0 %vm1772_vm6, %v3598_v38  ;;  %vm6789_vm6 = vcmp.lt.s32.totalorder %v6788_v57, 16 }
 0x514   : > { %3266 = vmatprep.subr.msk.mxu0 %vm1771_vm9, %v3598_v38  ;;  %v2167_v20 = vsel %vm6789_vm6, %v6787_v54, %v6786_v51  ;;  %vm1757_vm9 = vcmp.eq.s32.totalorder %v4916_v55, %v5369_v32 }
 0x515   : > { %3267 = vmatpush2.msk.msra.mxu0 %vm1770_vm15, %v3598_v38  ;;  %vm6790_vm15 = vmmov %vm6789_vm6 }
 0x516   : > { %3268 = vmatprep.subr.msk.mxu0 %vm1769_vm3, %v3598_v38  ;;  %v2176_v59 = vsel %vm6790_vm15, %v6786_v51, %v6787_v54  ;;  %vm1756_vm3 = vcmp.eq.s32.totalorder %v4916_v55, %v5294_v17  ;;  %v2204_v55 = vmul.f32 %v5550_v12, %v2167_v20  ;;  %v6824_v51 = vld [vmem:[#allocation29_spill] sm:$0xff]  ;;  %v6825_v54 = vld [vmem:[#allocation30_spill] sm:$0xff]  ;;  %v6826_v20 = vld [vmem:[#allocation31_spill] sm:$0xff] }
 0x517   : > { %3269 = vmatpush2.msk.msra.mxu0 %vm1768_vm0, %v3598_v38  ;;  %vm6793_vm0 = vmmov %vm6789_vm6  ;;  %v2203_v18 = vmul.f32 %v5556_v49, %v2176_v59  ;;  %v6827_v59 = vld [vmem:[#allocation32_spill] sm:$0xff] }
 0x518   : > { %3270 = vmatprep.subr.msk.mxu0 %vm1767_vm4, %v3598_v38  ;;  %v2166_v22 = vsel %vm6793_vm0, %v6792_v21, %v6791_v46  ;;  %vm1755_vm4 = vcmp.eq.s32.totalorder %v4913_v15, %v5369_v32  ;;  %vm6812_vm6 = vmmov %vm6793_vm0 }
 0x519   : > { %3271 = vmatpush2.msk.msra.mxu0 %vm1766_vm13, %v3598_v38  ;;  %vm6796_vm13 = vmmov %vm6793_vm0  ;;  %v2171_v53 = vsel %vm6812_vm6, %v6809_v25, %v6810_v13 }
 0x51a   : > { %3272 = vmatprep.subr.msk.mxu0 %vm1765_vm1, %v3598_v38  ;;  %v2175_v33 = vsel %vm6796_vm13, %v6791_v46, %v6792_v21  ;;  %vm1754_vm1 = vcmp.eq.s32.totalorder %v4913_v15, %v5294_v17  ;;  %v2202_v15 = vmul.f32 %v5550_v12, %v2166_v22  ;;  %v6806_v17 = vld [vmem:[#allocation57_spill] sm:$0xff]  ;;  %vm6816_vm15 = vmmov %vm6793_vm0  ;;  %v2193_v2 = vmul.f32 %v5556_v49, %v2171_v53  ;;  %v6828_v46 = vld [vmem:[#allocation40_spill] sm:$0xff] }
 0x51b   : > { %3273 = vmatpush2.msk.msra.mxu0 %vm1764_vm12, %v3598_v38  ;;  %vm6799_vm12 = vmmov %vm6793_vm0  ;;  %v2201_v58 = vmul.f32 %v5556_v49, %v2175_v33  ;;  %v2170_v24 = vsel %vm6816_vm15, %v6813_v6, %v6814_v16  ;;  %v6829_v21 = vld [vmem:[#allocation33_spill] sm:$0xff]  ;;  %v6830_v22 = vld [vmem:[#allocation34_spill] sm:$0xff] }
 0x51c   : > { %3274 = vmatprep.subr.msk.mxu0 %vm1763_vm5, %v3598_v38  ;;  %v2165_v37 = vsel %vm6799_vm12, %v6798_v8, %v6797_v40  ;;  %vm6800_vm5 = vmmov %vm6793_vm0  ;;  %v2191_v36 = vmul.f32 %v5556_v49, %v2170_v24  ;;  %v6834_v33 = vld [vmem:[#allocation41_spill] sm:$0xff]  ;;  %v6846_v24 = vld [vmem:[#allocation67_spill] sm:$0xff] }
 0x51d   : > { %3275 = vmatpush2.msk.msra.mxu0 %vm1762_vm11, %v3598_v38  ;;  %v2174_v9 = vsel %vm6800_vm5, %v6797_v40, %v6798_v8  ;;  %vm6803_vm11 = vmmov %vm6793_vm0  ;;  %v2200_v61 = vmul.f32 %v5550_v12, %v2165_v37  ;;  %v5759_v40 = vld [vmem:[%s6358_s7 + $0x8] sm:$0xff]  ;;  %v2716_v37 = vld [vmem:[%s6359_s8] sm:$0xf] }
 0x51e   : > { %3276 = vmatprep.subr.msk.mxu0 %vm1761_vm8, %v3598_v38  ;;  %v2164_v39 = vsel %vm6803_vm11, %v6802_v44, %v6801_v31  ;;  %vm6804_vm8 = vmmov %vm6793_vm0  ;;  %v2199_v62 = vmul.f32 %v5556_v49, %v2174_v9  ;;  %v2726_v8 = vcombine.high %v5759_v40, %v5759_v40  ;;  %v5778_v9 = vpop.permute.xlu0 %2629 }
 0x51f   : > { %3277 = vmatpush2.msk.msra.mxu0 %vm1760_vm10, %v3598_v38  ;;  %v2173_v34 = vsel %vm6804_vm8, %v6801_v31, %v6802_v44  ;;  %vm6807_vm10 = vmmov %vm6793_vm0  ;;  %v2198_v47 = vmul.f32 %v5550_v12, %v2164_v39 }
 0x520   : > { %3278 = vmatprep.subr.msk.mxu0 %vm1759_vm7, %v3598_v38  ;;  %v2163_v26 = vsel %vm6807_vm10, %v6806_v17, %v6805_v10  ;;  %vm6808_vm7 = vmmov %vm6793_vm0  ;;  %v2197_v23 = vmul.f32 %v5556_v49, %v2173_v34  ;;  %2867 = vmatprep.mubr.f32.mxu1 %v2726_v8  ;;  %vm6848_vm10 = vcmp.lt.s32.totalorder %v6788_v57, 113  ;;  %v2347_v8 = vld [vmem:[#allocation10 + $0x3] ss:$8 sm:$0x3] }
 0x521   : > { %3279 = vmatpush2.msk.msra.mxu0 %vm1758_vm14, %v3598_v38  ;;  %v2172_v60 = vsel %vm6808_vm7, %v6805_v10, %v6806_v17  ;;  %vm6811_vm14 = vmmov %vm6793_vm0  ;;  %v2196_v41 = vmul.f32 %v5550_v12, %v2163_v26 }
 0x522   : > { %3280 = vmatprep.subr.msk.mxu0 %vm1757_vm9, %v3598_v38  ;;  %v2162_v29 = vsel %vm6811_vm14, %v6810_v13, %v6809_v25  ;;  %v2195_v27 = vmul.f32 %v5556_v49, %v2172_v60  ;;  %vm6815_vm9 = vmmov %vm6793_vm0  ;;  %v6841_v13 = vld [vmem:[#allocation56_spill] sm:$0xff] }
 0x523   : > { %3281 = vmatpush2.msk.msra.mxu0 %vm1756_vm3, %v3598_v38  ;;  %v2161_v30 = vsel %vm6815_vm9, %v6814_v16, %v6813_v6  ;;  %v2194_v35 = vmul.f32 %v5550_v12, %v2162_v29  ;;  %vm6818_vm3 = vcmp.gt.f32.partialorder %v4924_v63, %v4973_v50  ;;  %v6819_v63 = vld [vmem:[#allocation26_spill] sm:$0xff]  ;;  %vm6838_vm13 = vmmov %vm6837_vm2  ;;  %v6842_v29 = vld [vmem:[#allocation65_spill] sm:$0xff] }
 0x524   : > { %3282 = vmatprep.subr.msk.mxu0 %vm1755_vm4, %v3598_v38  ;;  %v2192_v43 = vmul.f32 %v5550_v12, %v2161_v30  ;;  %v2022_v0 = vsel %vm6818_vm3, 1, %v6817_v5  ;;  %vm2033_vm4 = vcmp.eq.s32.totalorder %v2031_v7, 1  ;;  %v6845_v30 = vld [vmem:[#allocation58_spill] sm:$0xff] }
 0x525   : > { %3283 = vmatpush2.msk.msra.mxu0 %vm1754_vm1, %v3598_v38  ;;  %v2027_v1 = vrot.slane %v2022_v0, %v6785_v45  ;;  %v6822_v38 = vld [vmem:[#allocation28_spill] sm:$0xff]  ;;  %vm6839_vm1 = vmmov %vm6837_vm2 }
 0x526   : > { %1979 = vmatmul.mubr.f32.vlgmr.msra.gmra.mxu0 %v908_v28  ;;  %2732 = vmatprep.subr.mxu0 %v2204_v55  ;;  %v6833_v28 = vld [vmem:[#allocation37_spill] sm:$0xff]  ;;  %v5722_v55 = vld [vmem:[%s6358_s7] sm:$0xff]  ;;  %vm6840_vm12 = vmmov %vm6839_vm1 }
 0x527   : > { %2733 = vmatpush1.msra.mxu0 %v2203_v18  ;;  %vm2032_vm0 = vcmp.eq.s32.totalorder %v2027_v1, 1  ;;  %v2725_v18 = vcombine.high %v5722_v55, %v5722_v55  ;;  %vm6843_vm5 = vmmov %vm6839_vm1  ;;  %v6851_v1 = vld [vmem:[#allocation69_spill] sm:$0xff] }
 0x528   : > { %2734 = vmatprep.subr.mxu0 %v2202_v15  ;;  %v5780_v15 = vpop.permute.xlu1 %2647  ;;  %v2083_v53 = vsel %vm6843_vm5, %v6842_v29, %v6841_v13  ;;  %vm6844_vm11 = vmmov %vm6839_vm1 }
 0x529   : > { %2735 = vmatpush1.msra.mxu0 %v2201_v58  ;;  %2796 = vmatprep.mubr.f32.mxu0 %v2725_v18  ;;  %v2095_v58 = vld [vmem:[#allocation10] ss:$8 sm:$0x3]  ;;  %vm6847_vm8 = vmmov %vm6839_vm1 }
 0x52a   : > { %2736 = vmatprep.subr.mxu0 %v2200_v61  ;;  %v5783_v44 = vrot.slane %v2095_v58, %v6785_v45  ;;  %v5786_v39 = vrot.slane %v2095_v58, %v6784_v3  ;;  %v6835_v61 = vld [vmem:[#allocation54_spill] sm:$0xff]  ;;  %vm6849_vm7 = vmmov %vm6839_vm1 }
 0x52b   : > { %2737 = vmatpush1.msra.mxu0 %v2199_v62  ;;  %v6836_v62 = vld [vmem:[#allocation63_spill] sm:$0xff]  ;;  %vm6852_vm14 = vmmov %vm6839_vm1 }
 0x52c   : > { %2738 = vmatprep.subr.mxu0 %v2198_v47  ;;  %v2084_v10 = vsel %vm6837_vm2, %v6836_v62, %v6835_v61  ;;  %v2093_v60 = vsel %vm6840_vm12, %v6835_v61, %v6836_v62  ;;  %v2120_v5 = vmul.f32 %v5786_v39, %v2083_v53  ;;  %v2081_v7 = vsel %vm6852_vm14, %v6851_v1, %v6850_v56  ;;  %vm6853_vm6 = vmmov %vm6839_vm1  ;;  %v6866_v61 = vld [vmem:[#allocation68_spill] sm:$0xff]  ;;  %v6867_v62 = vld [vmem:[#allocation75_spill] sm:$0xff] }
 0x52d   : > { %2739 = vmatpush1.msra.mxu0 %v2197_v23  ;;  %v2122_v6 = vmul.f32 %v5786_v39, %v2084_v10  ;;  %v2121_v16 = vmul.f32 %v5783_v44, %v2093_v60  ;;  %vm6856_vm9 = vmmov %vm6839_vm1  ;;  %v6871_v53 = vld [vmem:[#allocation77_spill] sm:$0xff]  ;;  %vm6872_vm12 = vcmp.lt.s32.totalorder %v6788_v57, 1 }
 0x52e   : > { %2740 = vmatprep.subr.mxu0 %v2196_v41  ;;  %v2092_v41 = vsel %vm6844_vm11, %v6841_v13, %v6842_v29  ;;  %vm6857_vm15 = vmmov %vm6839_vm1  ;;  %v5898_v13 = vrot.slane %v2347_v8, %v6785_v45  ;;  %v6870_v29 = vld [vmem:[#allocation70_spill] sm:$0xff] }
 0x52f   : > { %2741 = vmatpush1.msra.mxu0 %v2195_v27  ;;  %v2119_v0 = vmul.f32 %v5783_v44, %v2092_v41  ;;  %vm6860_vm3 = vmmov %vm6839_vm1  ;;  %v2333_v41 = vsel %vm6872_vm12, %v6871_v53, %v6870_v29 }
 0x530   : > { %2742 = vmatprep.subr.mxu0 %v2194_v35  ;;  %v2082_v35 = vsel %vm6847_vm8, %v6846_v24, %v6845_v30  ;;  %vm6873_vm5 = vmmov %vm6872_vm12  ;;  %vm6914_vm12 = vcmp.lt.s32.totalorder %v6788_v57, 16 }
 0x531   : > { %2743 = vmatpush1.msra.mxu0 %v2193_v2  ;;  %vm6876_vm11 = vmmov %vm6873_vm5 }
 0x532   : > { %2744 = vmatprep.subr.mxu0 %v2192_v43  ;;  %v2091_v43 = vsel %vm6849_vm7, %v6845_v30, %v6846_v24  ;;  %vm6877_vm8 = vmmov %vm6873_vm5 }
 0x533   : > { %2745 = vmatpush1.msra.mxu0 %v2191_v36  ;;  %vm6881_vm7 = vmmov %vm6873_vm5 }
 0x534   : > { %vm6884_vm14 = vmmov %vm6873_vm5 }
 0x5e6   : > { %v1980_v48 = vpop.f32.mrf.mxu0 }
 0x5e7   : > { %v5653_v52 = vsel %vm2032_vm0, %v1980_v48, 0.0 }
 0x5e8   : > { %v1982_v32 = vpop.f32.mrf.mxu0  ;;  %2057 = vrot.lane.b32.xlu0 %v5653_v52, %s3594_s22 }
 0x5e9   : > { %v5657_v50 = vsel %vm2033_vm4, %v1982_v32, 0.0  ;;  %3293 = vmatprep.subr.msk.mxu1 %vm2033_vm4, %v1982_v32  ;;  %v2118_v32 = vmul.f32 %v5786_v39, %v2082_v35  ;;  %v6874_v35 = vld [vmem:[#allocation73_spill] sm:$0xff] }
 0x5ea   : > { %2075 = vrot.lane.b32.xlu1 %v5657_v50, %s3594_s22  ;;  %3294 = vmatpush1.msk.msra.mxu1 %vm2032_vm0, %v1980_v48  ;;  %v2090_v48 = vsel %vm6853_vm6, %v6850_v56, %v6851_v1  ;;  %vm6861_vm0 = vmmov %vm6839_vm1  ;;  %s3599_s22 = smov [#allocation13]  }
 0x5eb   : > { %2811 = vmatprep.subr.mxu1 %v6819_v63  ;;  %vm6864_vm4 = vmmov %vm6861_vm0 }
 0x5ec   : > { %2463 = vrot.lane.b32.xlu0 %v6820_v11, %s6602_s25  ;;  %2812 = vmatpush1.msra.mxu1 %v6821_v14  ;;  %vm6865_vm2 = vmmov %vm6861_vm0 }
 0x5ed   : > { %2813 = vmatprep.subr.mxu1 %v6822_v38  ;;  %vm6885_vm6 = vmmov %vm6873_vm5 }
 0x5ee   : > { %2481 = vrot.lane.b32.xlu1 %v6823_v19, %s6602_s25  ;;  %2814 = vmatpush1.msra.mxu1 %v6824_v51 }
 0x5ef   : > { %2815 = vmatprep.subr.mxu1 %v6825_v54 }
 0x5f0   : > { %2225 = vrot.lane.b32.xlu0 %v5653_v52, %s3592_s27  ;;  %2816 = vmatpush1.msra.mxu1 %v6826_v20 }
 0x5f1   : > { %2817 = vmatprep.subr.mxu1 %v6827_v59 }
 0x5f2   : > { %2479 = vrot.lane.b32.xlu1 %v6828_v46, %s6602_s25  ;;  %2818 = vmatpush1.msra.mxu1 %v6829_v21 }
 0x5f3   : > { %2819 = vmatprep.subr.mxu1 %v6830_v22 }
 0x5f4   : > { %2309 = vrot.lane.b32.xlu0 %v5653_v52, %s3590_s11  ;;  %2820 = vmatpush1.msra.mxu1 %v6831_v42 }
 0x5f5   : > { %2821 = vmatprep.subr.mxu1 %v6832_v4 }
 0x5f6   : > { %2577 = vrot.lane.b32.xlu1 %v6819_v63, %s3586_s15  ;;  %2822 = vmatpush1.msra.mxu1 %v6833_v28 }
 0x5f7   : > { %2823 = vmatprep.subr.mxu1 %v6823_v19 }
 0x5f8   : > { %2141 = vrot.lane.b32.xlu0 %v5653_v52, %s3593_s24  ;;  %2824 = vmatpush1.msra.mxu1 %v6820_v11 }
 0x5f9   : > { %2825 = vmatprep.subr.mxu1 %v6828_v46 }
 0x5fa   : > { %2575 = vrot.lane.b32.xlu1 %v6822_v38, %s3586_s15  ;;  %2826 = vmatpush1.msra.mxu1 %v6834_v33 }
 0x5fc   : > { %2477 = vrot.lane.b32.xlu0 %v5653_v52, %s6602_s25 }
 0x5fe   : > { %2409 = vrot.lane.b32.xlu1 %v6819_v63, %s3589_s20  ;;  %v6854_v63 = vld [vmem:[#allocation62_spill] sm:$0xff] }
 0x600   : > { %2561 = vrot.lane.b32.xlu0 %v5653_v52, %s3586_s15 }
 0x602   : > { %2573 = vrot.lane.b32.xlu1 %v6825_v54, %s3586_s15 }
 0x604   : > { %2461 = vrot.lane.b32.xlu0 %v6834_v33, %s6602_s25  ;;  %v6863_v33 = vld [vmem:[#allocation74_spill] sm:$0xff] }
 0x606   : > { %2243 = vrot.lane.b32.xlu1 %v5657_v50, %s3592_s27  ;;  %s3500_s27 = scalar_lea.vmem %s2985_s17, 128 }
 0x607   : > { %p3501_p12 = scmp.ne.s32.totalorder %s2985_s17, %s3500_s27 }
 0x608   : > { %2559 = vrot.lane.b32.xlu0 %v6821_v14, %s3586_s15 }
 0x609   : > { %p3502_p9 = pnand %p3501_p12, %p6989_p3 }
 0x60a   : > { %2407 = vrot.lane.b32.xlu1 %v6822_v38, %s3589_s20 }
 0x60b   : > { %p3503_p13 = pneg %p3502_p9 }
 0x60c   : > { %2393 = vrot.lane.b32.xlu0 %v5653_v52, %s3589_s20 }
 0x60e   : > { %2571 = vrot.lane.b32.xlu1 %v6827_v59, %s3586_s15 }
 0x610   : > { %2557 = vrot.lane.b32.xlu0 %v6824_v51, %s3586_s15 }
 0x612   : > { %2405 = vrot.lane.b32.xlu1 %v6825_v54, %s3589_s20  ;;  %v2115_v54 = vmul.f32 %v5783_v44, %v2090_v48 }
 0x614   : > { %2391 = vrot.lane.b32.xlu0 %v6821_v14, %s3589_s20 }
 0x616   : > { %2327 = vrot.lane.b32.xlu1 %v5657_v50, %s3590_s11  ;;  %s3504_s11 = sshll.u32 %s3599_s22, 4  ;;  %s3505_s11 = int_to_ptr.vmem [resolvable:$false] %s3504_s11 }
 0x617   : > { %s3506_s13 = scalar_lea.vmem %s3505_s11, 256  ;;  %p3507_p5 = scmp.lt.s32.totalorder %s2985_s17, %s3505_s11 }
 0x618   : > { %2555 = vrot.lane.b32.xlu0 %v6826_v20, %s3586_s15  ;;  %p3508_p1 = scmp.lt.s32.totalorder %s3506_s13, %s3500_s27 }
 0x61a   : > { %2159 = vrot.lane.b32.xlu1 %v5657_v50, %s3593_s24  ;;  %p3509_p7 = por %p3508_p1, %p3507_p5 }
 0x61c   : > { %2389 = vrot.lane.b32.xlu0 %v6824_v51, %s3589_s20  ;;  %v2116_v51 = vmul.f32 %v5786_v39, %v2081_v7  ;;  %v6878_v7 = vld [vmem:[#allocation76_spill] sm:$0xff]  ;;  %p3510_p4 = pnand %p3509_p7, %p3503_p13 }
 0x61e   : > { %2495 = vrot.lane.b32.xlu1 %v5657_v50, %s6602_s25  ;;  %s2970_s25 = scalar_lea.sflag [#allocation7], %s3810_s29 }
 0x620   : > { %2553 = vrot.lane.b32.xlu0 %v6829_v21, %s3586_s15 }
 0x622   : > { %2569 = vrot.lane.b32.xlu1 %v6830_v22, %s3586_s15 }
 0x624   : > { %2387 = vrot.lane.b32.xlu0 %v6826_v20, %s3589_s20  ;;  %v6858_v20 = vld [vmem:[#allocation64_spill] sm:$0xff] }
 0x626   : > { %2403 = vrot.lane.b32.xlu1 %v6827_v59, %s3589_s20  ;;  %v6859_v59 = vld [vmem:[#allocation72_spill] sm:$0xff] }
 0x627   : > { %v2079_v46 = vsel %vm6860_vm3, %v6859_v59, %v6858_v20  ;;  %vm6892_vm3 = vcmp.lt.s32.totalorder %v6788_v57, 15 }
 0x628   : > { %2551 = vrot.lane.b32.xlu0 %v6831_v42, %s3586_s15 }
 0x62a   : > { %2567 = vrot.lane.b32.xlu1 %v6832_v4, %s3586_s15 }
 0x62c   : > { %2385 = vrot.lane.b32.xlu0 %v6829_v21, %s3589_s20  ;;  %v2088_v21 = vsel %vm6861_vm0, %v6858_v20, %v6859_v59 }
 0x62e   : > { %2579 = vrot.lane.b32.xlu1 %v5657_v50, %s3586_s15 }
 0x630   : > { %2549 = vrot.lane.b32.xlu0 %v6833_v28, %s3586_s15  ;;  %v6862_v28 = vld [vmem:[#allocation66_spill] sm:$0xff] }
 0x631   : > { %v2078_v18 = vsel %vm6864_vm4, %v6863_v33, %v6862_v28 }
 0x632   : > { %2411 = vrot.lane.b32.xlu1 %v5657_v50, %s3589_s20 }
 0x634   : > { %2383 = vrot.lane.b32.xlu0 %v6831_v42, %s3589_s20 }
 0x636   : > { %2401 = vrot.lane.b32.xlu1 %v6830_v22, %s3589_s20 }
 0x638   : > { %2547 = vrot.lane.b32.xlu0 %v6820_v11, %s3586_s15  ;;  %v6855_v11 = vld [vmem:[#allocation71_spill] sm:$0xff] }
 0x639   : > { %v2080_v14 = vsel %vm6856_vm9, %v6855_v11, %v6854_v63  ;;  %v2089_v38 = vsel %vm6857_vm15, %v6854_v63, %v6855_v11  ;;  %vm6888_vm9 = vmmov %vm6873_vm5 }
 0x63a   : > { %2565 = vrot.lane.b32.xlu1 %v6823_v19, %s3586_s15  ;;  %v2114_v42 = vmul.f32 %v5786_v39, %v2080_v14  ;;  %v2113_v4 = vmul.f32 %v5783_v44, %v2089_v38  ;;  %v6882_v14 = vld [vmem:[#allocation80_spill] sm:$0xff]  ;;  %v6883_v38 = vld [vmem:[#allocation85_spill] sm:$0xff]  ;;  %vm6889_vm15 = vmmov %vm6873_vm5 }
 0x63c   : > { %2645 = vrot.lane.b32.xlu0 %v5653_v52, %s6597_s21 }
 0x63e   : > { %2663 = vrot.lane.b32.xlu1 %v5657_v50, %s6597_s21  ;;  %v2117_v50 = vmul.f32 %v5783_v44, %v2091_v43  ;;  %v6875_v43 = vld [vmem:[#allocation81_spill] sm:$0xff]  ;;  %s2982_s21 = scalar_lea.hbm %s6360_s9, %s3292_s5 }
 0x640   : > { %2719 = vperm.xlu0 %3384, %v2716_v37   ;;  %v2087_v37 = vsel %vm6865_vm2, %v6862_v28, %v6863_v33  ;;  %v2263_v28 = vld [vmem:[#allocation10 + $0x2] ss:$8 sm:$0x3] }
 0x65a   : > { %v2058_v31 = vpop.permute.xlu0 %2057 }
 0x65c   : > { %v2076_v34 = vpop.permute.xlu1 %2075 }
 0x65d   : > { %v2085_v17 = vsel %vm6838_vm13, %v2058_v31, %v2076_v34  ;;  %v2094_v26 = vsel %vm6839_vm1, %v2076_v34, %v2058_v31  ;;  %v2112_v31 = vmul.f32 %v5786_v39, %v2079_v46  ;;  %v2111_v34 = vmul.f32 %v5783_v44, %v2088_v21  ;;  %vm6868_vm13 = vmmov %vm6861_vm0  ;;  %v6886_v21 = vld [vmem:[#allocation82_spill] sm:$0xff] }
 0x65e   : > { %v2123_v47 = vmul.f32 %v5783_v44, %v2094_v26  ;;  %v2124_v23 = vmul.f32 %v5786_v39, %v2085_v17  ;;  %v5802_v25 = vpop.permute.xlu0 %2463  ;;  %v2077_v10 = vsel %vm6868_vm13, %v6867_v62, %v6866_v61  ;;  %vm6869_vm1 = vmmov %vm6861_vm0  ;;  %v5891_v26 = vrot.slane %v2347_v8, %v6784_v3 }
 0x65f   : > { %v2086_v17 = vsel %vm6869_vm1, %v6866_v61, %v6867_v62  ;;  %v2108_v30 = vmul.f32 %v5786_v39, %v2077_v10  ;;  %vm6893_vm0 = vmmov %vm6892_vm3 }
 0x660   : > { %v5812_v27 = vpop.permute.xlu1 %2481  ;;  %2746 = vmatprep.subr.mxu0 %v2124_v23  ;;  %v2109_v23 = vmul.f32 %v5783_v44, %v2087_v37  ;;  %v2107_v24 = vmul.f32 %v5783_v44, %v2086_v17  ;;  %v2368_v1 = vmul.f32 %v5891_v26, %v2333_v41  ;;  %v6879_v44 = vld [vmem:[#allocation84_spill] sm:$0xff]  ;;  %v6890_v17 = vld [vmem:[#allocation83_spill] sm:$0xff]  ;;  %vm6894_vm4 = vmmov %vm6893_vm0 }
 0x661   : > { %v5824_v2 = vsel %vm6848_vm10, %v5802_v25, %v5812_v27  ;;  %2747 = vmatpush1.msra.mxu0 %v2123_v47  ;;  %v2110_v47 = vmul.f32 %v5786_v39, %v2078_v18  ;;  %vm6880_vm10 = vmmov %vm6873_vm5 }
 0x662   : > { %2748 = vmatprep.subr.mxu0 %v2122_v6  ;;  %v5830_v36 = vpop.permute.xlu0 %2225  ;;  %v2342_v6 = vsel %vm6873_vm5, %v6870_v29, %v6871_v53  ;;  %v2331_v48 = vsel %vm6880_vm10, %v6879_v44, %v6878_v7  ;;  %vm6895_vm2 = vmmov %vm6893_vm0  ;;  %vm6950_vm10 = vcmp.lt.s32.totalorder %v6788_v57, 111 }
 0x663   : > { %2749 = vmatpush1.msra.mxu0 %v2121_v16  ;;  %v2367_v39 = vmul.f32 %v5898_v13, %v2342_v6  ;;  %v2364_v59 = vmul.f32 %v5891_v26, %v2331_v48  ;;  %vm6908_vm13 = vmmov %vm6873_vm5 }
 0x664   : > { %v5842_v52 = vpop.permute.xlu1 %2479  ;;  %2750 = vmatprep.subr.mxu0 %v2120_v5  ;;  %v2332_v5 = vsel %vm6876_vm11, %v6875_v43, %v6874_v35  ;;  %vm6909_vm1 = vmmov %vm6873_vm5  ;;  %vm6926_vm11 = vcmp.lt.s32.totalorder %v6788_v57, 113 }
 0x665   : > { %2751 = vmatpush1.msra.mxu0 %v2119_v0  ;;  %v2341_v0 = vsel %vm6877_vm8, %v6874_v35, %v6875_v43  ;;  %v2366_v63 = vmul.f32 %v5891_v26, %v2332_v5  ;;  %vm6915_vm5 = vmmov %vm6914_vm12 }
 0x666   : > { %2752 = vmatprep.subr.mxu0 %v2118_v32  ;;  %v5854_v19 = vpop.permute.xlu0 %2309  ;;  %v2340_v32 = vsel %vm6881_vm7, %v6878_v7, %v6879_v44  ;;  %v2365_v11 = vmul.f32 %v5898_v13, %v2341_v0  ;;  %v6896_v0 = vld [vmem:[#allocation89_spill] sm:$0xff]  ;;  %v6898_v44 = vld [vmem:[#allocation92_spill] sm:$0xff]  ;;  %vm6929_vm8 = vmmov %vm6926_vm11 }
 0x667   : > { %2753 = vmatpush1.msra.mxu0 %v2117_v50  ;;  %v2363_v46 = vmul.f32 %v5898_v13, %v2340_v32  ;;  %vm6951_vm7 = vmmov %vm6950_vm10 }
 0x668   : > { %v5866_v22 = vpop.permute.xlu1 %2577  ;;  %2754 = vmatprep.subr.mxu0 %v2116_v51  ;;  %v2330_v51 = vsel %vm6884_vm14, %v6883_v38, %v6882_v14  ;;  %vm6953_vm14 = vmmov %vm6929_vm8 }
 0x669   : > { %2755 = vmatpush1.msra.mxu0 %v2115_v54  ;;  %v2339_v54 = vsel %vm6885_vm6, %v6882_v14, %v6883_v38  ;;  %v2362_v8 = vmul.f32 %v5891_v26, %v2330_v51  ;;  %v6900_v14 = vld [vmem:[#allocation96_spill] sm:$0xff]  ;;  %vm6954_vm6 = vmmov %vm6929_vm8 }
 0x66a   : > { %2756 = vmatprep.subr.mxu0 %v2114_v42  ;;  %v5878_v58 = vpop.permute.xlu0 %2141  ;;  %v6887_v42 = vld [vmem:[#allocation86_spill] sm:$0xff]  ;;  %v2361_v37 = vmul.f32 %v5898_v13, %v2339_v54  ;;  %v6901_v54 = vld [vmem:[#allocation97_spill] sm:$0xff] }
 0x66b   : > { %2757 = vmatpush1.msra.mxu0 %v2113_v4  ;;  %v2329_v4 = vsel %vm6888_vm9, %v6887_v42, %v6886_v21  ;;  %v2338_v33 = vsel %vm6889_vm15, %v6886_v21, %v6887_v42  ;;  %vm6956_vm9 = vmmov %vm6954_vm6  ;;  %vm6957_vm15 = vcmp.lt.s32.totalorder %v6788_v57, 112 }
 0x66c   : > { %v5893_v60 = vpop.permute.xlu1 %2575  ;;  %2758 = vmatprep.subr.mxu0 %v2112_v31  ;;  %v2268_v31 = vrot.slane %v2263_v28, %v6785_v45  ;;  %v2360_v62 = vmul.f32 %v5891_v26, %v2329_v4  ;;  %v2359_v10 = vmul.f32 %v5898_v13, %v2338_v33  ;;  %v6903_v4 = vld [vmem:[#allocation100_spill] sm:$0xff]  ;;  %v6904_v33 = vld [vmem:[#allocation102_spill] sm:$0xff] }
 0x66d   : > { %2759 = vmatpush1.msra.mxu0 %v2111_v34  ;;  %v2272_v34 = vrot.slane %v2263_v28, %v6784_v3 }
 0x66e   : > { %2760 = vmatprep.subr.mxu0 %v2110_v47  ;;  %v5908_v16 = vpop.permute.xlu0 %2477  ;;  %v6891_v47 = vld [vmem:[#allocation87_spill] sm:$0xff]  ;;  %v2281_v28 = vmul.f32 %v2268_v31, %v6903_v4 }
 0x66f   : > { %2761 = vmatpush1.msra.mxu0 %v2109_v23  ;;  %v2252_v23 = vsel %vm6892_vm3, %v6891_v47, %v6890_v17  ;;  %v2261_v41 = vsel %vm6895_vm2, %v6890_v17, %v6891_v47  ;;  %v2286_v48 = vmul.f32 %v2272_v34, %v6898_v44  ;;  %v2284_v38 = vmul.f32 %v2272_v34, %v6900_v14  ;;  %v2599_v47 = vld [vmem:[#allocation10 + $0x7] ss:$8 sm:$0x3]  ;;  %v6911_v44 = vld [vmem:[#allocation109_spill] sm:$0xff]  ;;  %vm6958_vm3 = vmmov %vm6957_vm15 }
 0x670   : > { %v5920_v56 = vpop.permute.xlu1 %2409  ;;  %2762 = vmatprep.subr.mxu0 %v2108_v30  ;;  %v2290_v43 = vmul.f32 %v2272_v34, %v2252_v23  ;;  %v2289_v5 = vmul.f32 %v2268_v31, %v2261_v41  ;;  %v2683_v23 = vld [vmem:[#allocation10 + $0x10] ss:$8 sm:$0x3]  ;;  %vm6961_vm2 = vcmp.lt.s32.totalorder %v6788_v57, 127 }
 0x671   : > { %2763 = vmatpush1.msra.mxu0 %v2107_v24 }
 0x672   : > { %2764 = vmatprep.subr.mxu0 %v2368_v1  ;;  %v5932_v50 = vpop.permute.xlu0 %2561 }
 0x673   : > { %2765 = vmatpush2.msra.mxu0 %v2367_v39  ;;  %v6897_v39 = vld [vmem:[#allocation90_spill] sm:$0xff] }
 0x674   : > { %v5944_v20 = vpop.permute.xlu1 %2573  ;;  %2766 = vmatprep.subr.mxu0 %v2366_v63  ;;  %v2287_v7 = vmul.f32 %v2268_v31, %v6897_v39  ;;  %v6899_v63 = vld [vmem:[#allocation93_spill] sm:$0xff] }
 0x675   : > { %2767 = vmatpush2.msra.mxu0 %v2365_v11  ;;  %v2285_v11 = vmul.f32 %v2268_v31, %v6899_v63  ;;  %v6017_v63 = vrot.slane %v2599_v47, %v6785_v45 }
 0x676   : > { %2768 = vmatprep.subr.mxu0 %v2364_v59  ;;  %v5956_v18 = vpop.permute.xlu0 %2461  ;;  %v2283_v59 = vmul.f32 %v2268_v31, %v6901_v54 }
 0x677   : > { %2769 = vmatpush2.msra.mxu0 %v2363_v46  ;;  %v6902_v46 = vld [vmem:[#allocation99_spill] sm:$0xff] }
 0x678   : > { %v2244_v61 = vpop.permute.xlu1 %2243  ;;  %2770 = vmatprep.subr.mxu0 %v2362_v8  ;;  %v2282_v21 = vmul.f32 %v2272_v34, %v6902_v46  ;;  %v2280_v8 = vmul.f32 %v2272_v34, %v6904_v33 }
 0x679   : > { %v2253_v29 = vsel %vm6893_vm0, %v5830_v36, %v2244_v61  ;;  %v2262_v53 = vsel %vm6894_vm4, %v2244_v61, %v5830_v36  ;;  %2771 = vmatpush2.msra.mxu0 %v2361_v37  ;;  %v2288_v36 = vmul.f32 %v2272_v34, %v6896_v0  ;;  %v6905_v61 = vld [vmem:[#allocation103_spill] sm:$0xff]  ;;  %vm6959_vm0 = vmmov %vm6958_vm3 }
 0x67a   : > { %v2291_v6 = vmul.f32 %v2268_v31, %v2262_v53  ;;  %v2292_v30 = vmul.f32 %v2272_v34, %v2253_v29  ;;  %2772 = vmatprep.subr.mxu0 %v2360_v62  ;;  %v5978_v24 = vpop.permute.xlu0 %2559  ;;  %v2279_v62 = vmul.f32 %v2268_v31, %v6905_v61  ;;  %v6907_v53 = vld [vmem:[#allocation106_spill] sm:$0xff]  ;;  %vm6960_vm4 = vmmov %vm6959_vm0 }
 0x67b   : > { %2773 = vmatpush2.msra.mxu0 %v2359_v10  ;;  %v6906_v10 = vld [vmem:[#allocation105_spill] sm:$0xff]  ;;  %v2277_v41 = vmul.f32 %v2268_v31, %v6907_v53 }
 0x67c   : > { %v5980_v35 = vpop.permute.xlu1 %2407  ;;  %2774 = vmatprep.subr.mxu0 %v2292_v30  ;;  %v2278_v17 = vmul.f32 %v2272_v34, %v6906_v10 }
 0x67d   : > { %2775 = vmatpush2.msra.mxu0 %v2291_v6  ;;  %v2515_v6 = vld [vmem:[#allocation10 + $0x6] ss:$8 sm:$0x3] }
 0x67e   : > { %2776 = vmatprep.subr.mxu0 %v2290_v43  ;;  %v5983_v1 = vpop.permute.xlu0 %2393  ;;  %v6031_v54 = vrot.slane %v2515_v6, %v6785_v45 }
 0x67f   : > { %2777 = vmatpush2.msra.mxu0 %v2289_v5  ;;  %v6910_v5 = vld [vmem:[#allocation108_spill] sm:$0xff] }
 0x680   : > { %v5987_v32 = vpop.permute.xlu1 %2571  ;;  %2778 = vmatprep.subr.mxu0 %v2288_v36  ;;  %v2276_v0 = vmul.f32 %v2272_v34, %v6910_v5  ;;  %v6912_v34 = vld [vmem:[#allocation111_spill] sm:$0xff] }
 0x681   : > { %2779 = vmatpush2.msra.mxu0 %v2287_v7  ;;  %v2374_v14 = vmul.f32 %v5891_v26, %v6912_v34  ;;  %v6922_v5 = vld [vmem:[#allocation123_spill] sm:$0xff] }
 0x682   : > { %2780 = vmatprep.subr.mxu0 %v2286_v48  ;;  %v5991_v51 = vpop.permute.xlu0 %2557  ;;  %v2275_v48 = vmul.f32 %v2268_v31, %v6911_v44 }
 0x683   : > { %2781 = vmatpush2.msra.mxu0 %v2285_v11  ;;  %v6020_v11 = vrot.slane %v2599_v47, %v6784_v3 }
 0x684   : > { %v5995_v42 = vpop.permute.xlu1 %2405  ;;  %2782 = vmatprep.subr.mxu0 %v2284_v38  ;;  %v6028_v38 = vrot.slane %v2683_v23, %v6784_v3 }
 0x685   : > { %2783 = vmatpush2.msra.mxu0 %v2283_v59  ;;  %v6913_v59 = vld [vmem:[#allocation112_spill] sm:$0xff] }
 0x686   : > { %2784 = vmatprep.subr.mxu0 %v2282_v21  ;;  %v5999_v37 = vpop.permute.xlu0 %2391  ;;  %v2373_v46 = vmul.f32 %v5898_v13, %v6913_v59 }
 0x687   : > { %2785 = vmatpush2.msra.mxu0 %v2281_v28  ;;  %v6916_v28 = vld [vmem:[#allocation114_spill] sm:$0xff] }
 0x688   : > { %v2328_v29 = vpop.permute.xlu1 %2327  ;;  %2786 = vmatprep.subr.mxu0 %v2280_v8  ;;  %v2372_v33 = vmul.f32 %v5891_v26, %v6916_v28  ;;  %v6044_v8 = vrot.slane %v2515_v6, %v6784_v3 }
 0x689   : > { %v2337_v30 = vsel %vm6908_vm13, %v5854_v19, %v2328_v29  ;;  %v2346_v43 = vsel %vm6909_vm1, %v2328_v29, %v5854_v19  ;;  %2787 = vmatpush2.msra.mxu0 %v2279_v62  ;;  %v6023_v19 = vrot.slane %v2683_v23, %v6785_v45  ;;  %v6918_v23 = vld [vmem:[#allocation118_spill] sm:$0xff]  ;;  %v6919_v29 = vld [vmem:[#allocation117_spill] sm:$0xff]  ;;  %vm6962_vm13 = vmmov %vm6961_vm2 }
 0x68a   : > { %v2375_v36 = vmul.f32 %v5898_v13, %v2346_v43  ;;  %v2376_v39 = vmul.f32 %v5891_v26, %v2337_v30  ;;  %2788 = vmatprep.subr.mxu0 %v2278_v17  ;;  %v6013_v7 = vpop.permute.xlu0 %2555  ;;  %v6917_v17 = vld [vmem:[#allocation115_spill] sm:$0xff]  ;;  %v2206_v53 = vmul.f32 %v5550_v12, %v6919_v29  ;;  %v6921_v30 = vld [vmem:[#allocation120_spill] sm:$0xff]  ;;  %vm6963_vm1 = vmmov %vm6959_vm0 }
 0x68b   : > { %2789 = vmatpush2.msra.mxu0 %v2277_v41  ;;  %v2371_v47 = vmul.f32 %v5898_v13, %v6917_v17  ;;  %v6920_v41 = vld [vmem:[#allocation121_spill] sm:$0xff]  ;;  %v2370_v43 = vmul.f32 %v5891_v26, %v6921_v30  ;;  %v6927_v26 = vld [vmem:[#allocation130_spill] sm:$0xff]  ;;  %v6934_v29 = vld [vmem:[#allocation139_spill] sm:$0xff] }
 0x68c   : > { %v2160_v31 = vpop.permute.xlu1 %2159  ;;  %2790 = vmatprep.subr.mxu0 %v2276_v0  ;;  %2827 = vmatprep.subr.mxu1 %v2376_v39  ;;  %v2369_v6 = vmul.f32 %v5898_v13, %v6920_v41  ;;  %v2611_v0 = vmul.f32 %v6017_v63, %v6922_v5  ;;  %v6935_v30 = vld [vmem:[#allocation140_spill] sm:$0xff]  ;;  %v6936_v5 = vld [vmem:[#allocation142_spill] sm:$0xff] }
 0x68d   : > { %v2169_v21 = vsel %vm6914_vm12, %v5878_v58, %v2160_v31  ;;  %v2178_v4 = vsel %vm6915_vm5, %v2160_v31, %v5878_v58  ;;  %2791 = vmatpush2.msra.mxu0 %v2275_v48  ;;  %2828 = vmatpush1.msra.mxu1 %v2375_v36  ;;  %v2205_v58 = vmul.f32 %v5556_v49, %v6918_v23  ;;  %v6923_v36 = vld [vmem:[#allocation124_spill] sm:$0xff]  ;;  %v6928_v31 = vld [vmem:[#allocation131_spill] sm:$0xff]  ;;  %vm6964_vm12 = vmmov %vm6959_vm0 }
 0x68e   : > { %v2207_v61 = vmul.f32 %v5556_v49, %v2178_v4  ;;  %v2208_v62 = vmul.f32 %v5550_v12, %v2169_v21  ;;  %2829 = vmatprep.subr.mxu1 %v2374_v14  ;;  %v6048_v10 = vpop.permute.xlu0 %2389  ;;  %v2612_v39 = vmul.f32 %v6020_v11, %v6923_v36  ;;  %v6924_v49 = vld [vmem:[#allocation126_spill] sm:$0xff]  ;;  %v6925_v12 = vld [vmem:[#allocation127_spill] sm:$0xff]  ;;  %v2707_v14 = vmul.f32 %v6023_v19, %v6927_v26  ;;  %v6930_v4 = vld [vmem:[#allocation133_spill] sm:$0xff] }
 0x68f   : > { %2830 = vmatpush1.msra.mxu1 %v2373_v46  ;;  %v2709_v48 = vmul.f32 %v6023_v19, %v6924_v49  ;;  %v2710_v34 = vmul.f32 %v6028_v38, %v6925_v12  ;;  %v2708_v59 = vmul.f32 %v6028_v38, %v6928_v31  ;;  %v2541_v28 = vmul.f32 %v6031_v54, %v6930_v4  ;;  %v6937_v36 = vld [vmem:[#allocation143_spill] sm:$0xff]  ;;  %v6938_v49 = vld [vmem:[#allocation145_spill] sm:$0xff]  ;;  %v6940_v26 = vld [vmem:[#allocation148_spill] sm:$0xff] }
 0x690   : > { %v2496_v44 = vpop.permute.xlu1 %2495  ;;  %2792 = vmatprep.subr.mxu0 %v2208_v62  ;;  %2831 = vmatprep.subr.mxu1 %v2372_v33  ;;  %v6931_v33 = vld [vmem:[#allocation134_spill] sm:$0xff]  ;;  %v6932_v62 = vld [vmem:[#allocation136_spill] sm:$0xff]  ;;  %v2537_v12 = vmul.f32 %v6031_v54, %v6938_v49  ;;  %v2701_v31 = vmul.f32 %v6023_v19, %v6940_v26  ;;  %v6941_v4 = vld [vmem:[#allocation149_spill] sm:$0xff] }
 0x691   : > { %v2514_v13 = vsel %vm6926_vm11, %v2496_v44, %v5908_v16  ;;  %2793 = vmatpush2.msra.mxu0 %v2207_v61  ;;  %2832 = vmatpush1.msra.mxu1 %v2371_v47  ;;  %v2505_v46 = vsel %vm6929_vm8, %v5908_v16, %v2496_v44  ;;  %v2542_v61 = vmul.f32 %v6044_v8, %v6931_v33  ;;  %v6933_v47 = vld [vmem:[#allocation137_spill] sm:$0xff]  ;;  %v6943_v33 = vld [vmem:[#allocation152_spill] sm:$0xff]  ;;  %v6947_v49 = vld [vmem:[#allocation158_spill] sm:$0xff] }
 0x692   : > { %2794 = vmatprep.subr.mxu0 %v2206_v53  ;;  %2833 = vmatprep.subr.mxu1 %v2370_v43  ;;  %v6078_v21 = vpop.permute.xlu0 %2553  ;;  %v2705_v17 = vmul.f32 %v6023_v19, %v6932_v62  ;;  %v2706_v23 = vmul.f32 %v6028_v38, %v6933_v47  ;;  %v2539_v16 = vmul.f32 %v6031_v54, %v6934_v29  ;;  %v6944_v47 = vld [vmem:[#allocation154_spill] sm:$0xff]  ;;  %v6945_v29 = vld [vmem:[#allocation155_spill] sm:$0xff]  ;;  %v6949_v26 = vld [vmem:[#allocation161_spill] sm:$0xff] }
 0x693   : > { %2795 = vmatpush2.msra.mxu0 %v2205_v58  ;;  %2834 = vmatpush1.msra.mxu1 %v2369_v6  ;;  %v2544_v53 = vmul.f32 %v6044_v8, %v2514_v13  ;;  %v2540_v43 = vmul.f32 %v6044_v8, %v6935_v30  ;;  %v2703_v58 = vmul.f32 %v6023_v19, %v6936_v5  ;;  %v6939_v13 = vld [vmem:[#allocation146_spill] sm:$0xff]  ;;  %v6946_v5 = vld [vmem:[#allocation157_spill] sm:$0xff]  ;;  %vm6967_vm5 = vmmov %vm6959_vm0 }
 0x694   : > { %v6091_v41 = vpop.permute.xlu1 %2569  ;;  %2797 = vmatmul.mubr.f32.vlgmr.msra.gmra.mxu0 %v5722_v55  ;;  %2835 = vmatprep.subr.mxu1 %v2612_v39  ;;  %v2543_v6 = vmul.f32 %v6031_v54, %v2505_v46  ;;  %v2704_v44 = vmul.f32 %v6028_v38, %v6937_v36  ;;  %v2538_v55 = vmul.f32 %v6044_v8, %v6939_v13  ;;  %vm6968_vm11 = vmmov %vm6959_vm0 }
 0x695   : > { %2874 = vmatprep.subr.mxu0 %v2710_v34  ;;  %2836 = vmatpush2.msra.mxu1 %v2611_v0  ;;  %v2702_v34 = vmul.f32 %v6028_v38, %v6941_v4  ;;  %v6942_v0 = vld [vmem:[#allocation151_spill] sm:$0xff]  ;;  %v2536_v62 = vmul.f32 %v6044_v8, %v6943_v33  ;;  %v2533_v36 = vmul.f32 %v6031_v54, %v6946_v5  ;;  %vm6969_vm8 = vmmov %vm6961_vm2 }
 0x696   : > { %2875 = vmatpush1.msra.mxu0 %v2709_v48  ;;  %2837 = vmatprep.subr.mxu1 %v2544_v53  ;;  %v6105_v39 = vpop.permute.xlu0 %2387  ;;  %v2535_v46 = vmul.f32 %v6031_v54, %v6942_v0  ;;  %v2699_v48 = vmul.f32 %v6023_v19, %v6944_v47  ;;  %v2700_v53 = vmul.f32 %v6028_v38, %v6945_v29 }
 0x697   : > { %2876 = vmatprep.subr.mxu0 %v2708_v59  ;;  %2838 = vmatpush2.msra.mxu1 %v2543_v6  ;;  %v2534_v59 = vmul.f32 %v6044_v8, %v6947_v49  ;;  %v6948_v6 = vld [vmem:[#allocation160_spill] sm:$0xff]  ;;  %v2698_v4 = vmul.f32 %v6028_v38, %v6949_v26  ;;  %v2507_v47 = vsel %vm6953_vm14, %v5812_v27, %v5802_v25  ;;  %vm6972_vm14 = vmmov %vm6961_vm2 }
 0x698   : > { %2877 = vmatpush1.msra.mxu0 %v2707_v14  ;;  %v6119_v30 = vpop.permute.xlu1 %2403  ;;  %2839 = vmatprep.subr.mxu1 %v2542_v61  ;;  %v2697_v13 = vmul.f32 %v6023_v19, %v6948_v6  ;;  %v2665_v14 = vsel %vm6950_vm10, %v5778_v9, %v5780_v15  ;;  %v2674_v61 = vsel %vm6951_vm7, %v5780_v15, %v5778_v9  ;;  %v6955_v15 = vld [vmem:[#allocation164_spill] sm:$0xff]  ;;  %vm6970_vm10 = vmmov %vm6961_vm2 }
 0x699   : > { %2878 = vmatprep.subr.mxu0 %v2706_v23  ;;  %2840 = vmatpush2.msra.mxu1 %v2541_v28  ;;  %v6142_v28 = vld [vmem:[%s6358_s7 + $0x10] sm:$0xff]  ;;  %v6952_v23 = vld [vmem:[#allocation163_spill] sm:$0xff]  ;;  %v2497_v9 = vsel %vm6954_vm6, %v5956_v18, %v5842_v52  ;;  %v2588_v25 = vsel %vm6957_vm15, %v5978_v24, %v5866_v22  ;;  %v2595_v6 = vsel %vm6968_vm11, %v5944_v20, %v6013_v7  ;;  %vm6971_vm7 = vmmov %vm6961_vm2 }
 0x69a   : > { %2879 = vmatpush1.msra.mxu0 %v2705_v17  ;;  %2841 = vmatprep.subr.mxu1 %v2540_v43  ;;  %v6137_v0 = vpop.permute.xlu0 %2551  ;;  %v2531_v33 = vmul.f32 %v6031_v54, %v6952_v23  ;;  %v2532_v17 = vmul.f32 %v6044_v8, %v6955_v15  ;;  %v2506_v43 = vsel %vm6956_vm9, %v5842_v52, %v5956_v18  ;;  %vm6973_vm6 = vmmov %vm6959_vm0 }
 0x69b   : > { %2880 = vmatprep.subr.mxu0 %v2704_v44  ;;  %2842 = vmatpush2.msra.mxu1 %v2539_v16  ;;  %v2695_v44 = vmul.f32 %v6023_v19, %v2665_v14  ;;  %v2696_v16 = vmul.f32 %v6028_v38, %v2674_v61  ;;  %v2727_v29 = vcombine.high %v6142_v28, %v6142_v28  ;;  %vm6974_vm9 = vmmov %vm6959_vm0 }
 0x69c   : > { %2881 = vmatpush1.msra.mxu0 %v2703_v58  ;;  %v6164_v27 = vpop.permute.xlu1 %2567  ;;  %2843 = vmatprep.subr.mxu1 %v2538_v55  ;;  %v2529_v52 = vmul.f32 %v6031_v54, %v5824_v2  ;;  %v2530_v18 = vmul.f32 %v6044_v8, %v2507_v47  ;;  %v2527_v5 = vmul.f32 %v6031_v54, %v2497_v9  ;;  %vm6975_vm15 = vmmov %vm6961_vm2 }
 0x69d   : > { %2882 = vmatprep.subr.mxu0 %v2702_v34  ;;  %2844 = vmatpush2.msra.mxu1 %v2537_v12  ;;  %v2528_v55 = vmul.f32 %v6044_v8, %v2506_v43  ;;  %v2597_v12 = vsel %vm6958_vm3, %v5866_v22, %v5978_v24  ;;  %v2625_v34 = vmul.f32 %v6017_v63, %v2588_v25  ;;  %vm6976_vm3 = vmmov %vm6961_vm2 }
 0x69e   : > { %2883 = vmatpush1.msra.mxu0 %v2701_v31  ;;  %2845 = vmatprep.subr.mxu1 %v2536_v62  ;;  %v6174_v58 = vpop.permute.xlu0 %2385  ;;  %v2587_v2 = vsel %vm6959_vm0, %v5991_v51, %v5893_v60  ;;  %v2596_v54 = vsel %vm6960_vm4, %v5893_v60, %v5991_v51  ;;  %v2420_v8 = vsel %vm6961_vm2, %v5999_v37, %v5920_v56  ;;  %vm6977_vm4 = vmmov %vm6959_vm0 }
 0x69f   : > { %2884 = vmatprep.subr.mxu0 %v2700_v53  ;;  %2846 = vmatpush2.msra.mxu1 %v2535_v46  ;;  %v2429_v24 = vsel %vm6962_vm13, %v5920_v56, %v5999_v37  ;;  %v2626_v51 = vmul.f32 %v6020_v11, %v2597_v12  ;;  %v2623_v56 = vmul.f32 %v6017_v63, %v2587_v2  ;;  %v6965_v53 = vld [vmem:[#allocation78_spill] sm:$0xff]  ;;  %vm6978_vm13 = vmmov %vm6961_vm2 }
 0x6a0   : > { %2885 = vmatpush1.msra.mxu0 %v2699_v48  ;;  %v2580_v22 = vpop.permute.xlu1 %2579  ;;  %2847 = vmatprep.subr.mxu1 %v2534_v59  ;;  %v2624_v37 = vmul.f32 %v6020_v11, %v2596_v54  ;;  %v2457_v49 = vmul.f32 %v6965_v53, %v2420_v8  ;;  %v2419_v26 = vsel %vm6969_vm8, %v6048_v10, %v5980_v35  ;;  %vm6982_vm11 = vmmov %vm6961_vm2 }
 0x6a1   : > { %v2589_v31 = vsel %vm6963_vm1, %v5932_v50, %v2580_v22  ;;  %v2598_v60 = vsel %vm6964_vm12, %v2580_v22, %v5932_v50  ;;  %2886 = vmatprep.subr.mxu0 %v2698_v4  ;;  %2848 = vmatpush2.msra.mxu1 %v2533_v36  ;;  %v6966_v50 = vld [vmem:[#allocation79_spill] sm:$0xff]  ;;  %v2586_v36 = vsel %vm6967_vm5, %v6013_v7, %v5944_v20  ;;  %vm6979_vm1 = vmmov %vm6959_vm0 }
 0x6a2   : > { %v2627_v46 = vmul.f32 %v6017_v63, %v2589_v31  ;;  %v2628_v62 = vmul.f32 %v6020_v11, %v2598_v60  ;;  %2887 = vmatpush1.msra.mxu0 %v2697_v13  ;;  %2849 = vmatprep.subr.mxu1 %v2532_v17  ;;  %v2550_v48 = vpop.permute.xlu0 %2549  ;;  %v2458_v59 = vmul.f32 %v6966_v50, %v2429_v24  ;;  %vm6980_vm12 = vmmov %vm6959_vm0 }
 0x6a3   : > { %2888 = vmatprep.subr.mxu0 %v2696_v16  ;;  %2850 = vmatpush2.msra.mxu1 %v2531_v33  ;;  %v2428_v20 = vsel %vm6972_vm14, %v5980_v35, %v6048_v10  ;;  %v2585_v33 = vsel %vm6973_vm6, %v6078_v21, %v5987_v32  ;;  %v2418_v35 = vsel %vm6975_vm15, %v6105_v39, %v5995_v42  ;;  %vm6981_vm5 = vmmov %vm6961_vm2  ;;  %vm6987_vm6 = vcmask 64512  }
 0x6a4   : > { %2889 = vmatpush1.msra.mxu0 %v2695_v44  ;;  %v2412_v13 = vpop.permute.xlu1 %2411  ;;  %2851 = vmatprep.subr.mxu1 %v2530_v18  ;;  %v2621_v10 = vmul.f32 %v6017_v63, %v2586_v36  ;;  %v2622_v47 = vmul.f32 %v6020_v11, %v2595_v6  ;;  %v2427_v9 = vsel %vm6976_vm3, %v5995_v42, %v6105_v39  ;;  %vm6983_vm8 = vmmov %vm6959_vm0 }
 0x6a5   : > { %v2421_v4 = vsel %vm6970_vm10, %v5983_v1, %v2412_v13  ;;  %v2430_v14 = vsel %vm6971_vm7, %v2412_v13, %v5983_v1  ;;  %2890 = vmatprep.subr.mxu0 %v2628_v62  ;;  %2852 = vmatpush2.msra.mxu1 %v2529_v52  ;;  %v2594_v1 = vsel %vm6974_vm9, %v5987_v32, %v6078_v21  ;;  %vm6984_vm10 = vmmov %vm6959_vm0  ;;  %vm6985_vm7 = vcmp.lt.s32.totalorder %v6788_v57, 111  ;;  %v2958_v13 = vld [vmem:[%s6988_s2] sm:$0xff] }
 0x6a6   : > { %v2459_v7 = vmul.f32 %v6965_v53, %v2421_v4  ;;  %v2460_v61 = vmul.f32 %v6966_v50, %v2430_v14  ;;  %2891 = vmatpush1.msra.mxu0 %v2627_v46  ;;  %2853 = vmatprep.subr.mxu1 %v2528_v55  ;;  %v2384_v23 = vpop.permute.xlu0 %2383  ;;  %v2455_v32 = vmul.f32 %v6965_v53, %v2419_v26  ;;  %vm6986_vm14 = vmmov %vm6985_vm7 }
 0x6a7   : > { %2892 = vmatprep.subr.mxu0 %v2626_v51  ;;  %2854 = vmatpush2.msra.mxu1 %v2527_v5  ;;  %v2456_v21 = vmul.f32 %v6966_v50, %v2428_v20  ;;  %v2593_v17 = vsel %vm6959_vm0, %v6091_v41, %v6137_v0  ;;  %v2619_v43 = vmul.f32 %v6017_v63, %v2585_v33 }
 0x6a8   : > { %2893 = vmatpush1.msra.mxu0 %v2625_v34  ;;  %v2402_v15 = vpop.permute.xlu1 %2401  ;;  %2855 = vmatprep.subr.mxu1 %v2460_v61  ;;  %v2620_v25 = vmul.f32 %v6020_v11, %v2594_v1  ;;  %v2453_v42 = vmul.f32 %v6965_v53, %v2418_v35  ;;  %v2454_v44 = vmul.f32 %v6966_v50, %v2427_v9 }
 0x6a9   : > { %2894 = vmatprep.subr.mxu0 %v2624_v37  ;;  %2856 = vmatpush2.msra.mxu1 %v2459_v7  ;;  %v2584_v16 = vsel %vm6977_vm4, %v6137_v0, %v6091_v41  ;;  %v2426_v52 = vsel %vm6961_vm2, %v6119_v30, %v6174_v58  ;;  %v2618_v18 = vmul.f32 %v6020_v11, %v2593_v17 }
 0x6aa   : > { %2895 = vmatpush1.msra.mxu0 %v2623_v56  ;;  %2857 = vmatprep.subr.mxu1 %v2458_v59  ;;  %v2548_v39 = vpop.permute.xlu0 %2547  ;;  %v2417_v5 = vsel %vm6978_vm13, %v6174_v58, %v6119_v30  ;;  %v2592_v55 = vsel %vm6979_vm1, %v6164_v27, %v2550_v48  ;;  %v2583_v0 = vsel %vm6980_vm12, %v2550_v48, %v6164_v27 }
 0x6ab   : > { %2896 = vmatprep.subr.mxu0 %v2622_v47  ;;  %2858 = vmatpush2.msra.mxu1 %v2457_v49  ;;  %v2416_v12 = vsel %vm6981_vm5, %v2384_v23, %v2402_v15  ;;  %v2425_v34 = vsel %vm6982_vm11, %v2402_v15, %v2384_v23  ;;  %v2617_v30 = vmul.f32 %v6017_v63, %v2584_v16 }
 0x6ac   : > { %2897 = vmatpush1.msra.mxu0 %v2621_v10  ;;  %v2566_v41 = vpop.permute.xlu1 %2565  ;;  %2859 = vmatprep.subr.mxu1 %v2456_v21  ;;  %v2452_v58 = vmul.f32 %v6966_v50, %v2426_v52  ;;  %v2451_v54 = vmul.f32 %v6965_v53, %v2417_v5  ;;  %v2616_v27 = vmul.f32 %v6020_v11, %v2592_v55 }
 0x6ad   : > { %2898 = vmatprep.subr.mxu0 %v2620_v25  ;;  %2860 = vmatpush2.msra.mxu1 %v2455_v32  ;;  %v2591_v2 = vsel %vm6983_vm8, %v2566_v41, %v2548_v39  ;;  %v2582_v8 = vsel %vm6984_vm10, %v2548_v39, %v2566_v41  ;;  %v2615_v22 = vmul.f32 %v6017_v63, %v2583_v0 }
 0x6ae   : > { %2899 = vmatpush1.msra.mxu0 %v2619_v43  ;;  %2861 = vmatprep.subr.mxu1 %v2454_v44  ;;  %v2449_v24 = vmul.f32 %v6965_v53, %v2416_v12  ;;  %v2450_v31 = vmul.f32 %v6966_v50, %v2425_v34  ;;  %v2646_v60 = vpop.permute.xlu0 %2645  ;;  %v2614_v46 = vmul.f32 %v6020_v11, %v2591_v2 }
 0x6af   : > { %2900 = vmatprep.subr.mxu0 %v2618_v18  ;;  %2862 = vmatpush2.msra.mxu1 %v2453_v42  ;;  %v2613_v56 = vmul.f32 %v6017_v63, %v2582_v8  ;;  %v2960_v7 = vcombine.high %v2958_v13, %v2958_v13 }
 0x6b0   : > { %2901 = vmatpush1.msra.mxu0 %v2617_v30  ;;  %v2664_v51 = vpop.permute.xlu1 %2663  ;;  %2863 = vmatprep.subr.mxu1 %v2452_v58 }
 0x6b1   : > { %v2673_v62 = vsel %vm6985_vm7, %v2646_v60, %v2664_v51  ;;  %v2682_v48 = vsel %vm6986_vm14, %v2664_v51, %v2646_v60  ;;  %2902 = vmatprep.subr.mxu0 %v2616_v27  ;;  %2864 = vmatpush2.msra.mxu1 %v2451_v54 }
 0x6b2   : > { %v2711_v37 = vmul.f32 %v6023_v19, %v2673_v62  ;;  %v2712_v53 = vmul.f32 %v6028_v38, %v2682_v48  ;;  %2903 = vmatpush1.msra.mxu0 %v2615_v22  ;;  %2865 = vmatprep.subr.mxu1 %v2450_v31 }
 0x6b3   : > { %2904 = vmatprep.subr.mxu0 %v2614_v46  ;;  %2866 = vmatpush2.msra.mxu1 %v2449_v24 }
 0x6b4   : > { %2905 = vmatpush1.msra.mxu0 %v2613_v56  ;;  %2868 = vmatmul.mubr.f32.vlgmr.msra.gmra.mxu1 %v5759_v40  ;;  %v2038_v40 = vld [vmem:[#allocation3] sm:$0x3] }
 0x6b5   : > { %2936 = vmatprep.subr.mxu0 %v2712_v53  ;;  %3284 = vmatprep.mubr.msk.f32.mxu0 %vm6987_vm6, %v2727_v29  ;;  %v2949_v29 = vrot.slane %v2038_v40, %v6785_v45  ;;  %v2953_v20 = vrot.slane %v2038_v40, %v6784_v3 }
 0x6b6   : > { %2937 = vmatpush2.msra.mxu0 %v2711_v37 }
 0x6b7   : > { %2939 = vmatmul.mubr.f32.vlgmr.msra.gmra.mxu0 %v6142_v28 }
 0x6bb   : > { %v2720_v63 = vpop.permute.xlu0 %2719 }
 0x754   : > { %v2798_v57 = vpop.f32.mrf.mxu0 }
 0x755   : > { %v2799_v19 = vadd.f32 %v2798_v57, %v2720_v63 }
 0x756   : > { %v2800_v11 = vpop.f32.mrf.mxu0 }
 0x757   : > { %v2801_v49 = vadd.f32 %v2800_v11, %v2720_v63 }
 0x774   : > { %v2869_v38 = vpop.f32.mrf.mxu1 }
 0x775   : > { %v2870_v50 = vadd.f32 %v2869_v38, %v2799_v19 }
 0x776   : > { %v2871_v59 = vpop.f32.mrf.mxu1 }
 0x777   : > { %v2872_v36 = vadd.f32 %v2871_v59, %v2801_v49  ;;  %v2940_v6 = vpop.f32.mrf.mxu0 }
 0x778   : > { %v2941_v26 = vadd.f32 %v2940_v6, %v2870_v50 }
 0x779   : > { %v2942_v28 = vpop.f32.mrf.mxu0 }
 0x77a   : > { %v2956_v4 = vmul.f32 %v2949_v29, %v2941_v26  ;;  %v2943_v14 = vadd.f32 %v2942_v28, %v2872_v36 }
 0x77c   : > { %v2957_v61 = vmul.f32 %v2953_v20, %v2943_v14  ;;  %v2962_v23 = vadd.f32 %v2958_v13, %v2956_v4 }
 0x77e   : > { %v2963_v33 = vadd.f32 %v2960_v7, %v2957_v61 }
 0x780   : > { %v2966_v1 = vcombine.low %v2962_v23, %v2963_v33 }
 0x782   : > { %2968 = vst [vmem:[%s415_s23] sm:$0xff] %v2966_v1 }
 0x783   : > { %3513 = shalt.err (!%p3510_p4)
}
 0x784   : > { %s3514_s16 = scalar_lea.hbm %s2982_s21, 128  ;;  %s3518_s28 = scalar_lea.hbm %s6360_s9, 256 }
 0x785   : > { %p3515_p10 = scmp.ne.s32.totalorder %s2982_s21, %s3514_s16  ;;  %p3519_p11 = scmp.lt.s32.totalorder %s2982_s21, %s6360_s9 }
 0x786   : > { %p3520_p2 = scmp.lt.s32.totalorder %s3518_s28, %s3514_s16 }
 0x787   : > { %p3516_p0 = pnand %p3515_p10, %p6989_p3 }
 0x788   : > { %p3521_p6 = por %p3520_p2, %p3519_p11 }
 0x789   : > { %p3517_p8 = pneg %p3516_p0 }
 0x78b   : > { %p3522_p12 = pnand %p3521_p6, %p3517_p8 }
 0x78d   : > { %3525 = shalt.err (!%p3522_p12)
}
 0x78e   : > { %3307 = dma.vmem_to_hbm [thread:$0]  (%p6989_p3), %s2985_s17, 128, %s2982_s21, %s2970_s25  }
 0x78f PF: > { %s6990_s20 = sld [smem:[#allocation20_spill]]  ;;  %s2996_s2 = sand.u32 1, %s3564_s30  }
 0x790   : > { %p6992_p13 = scmp.ge.s32.totalorder %s3576_s12, 2  ;;  %s2997_s5 = scalar_lea.sflag [#allocation7], %s2996_s2 }
 0x795   : > { %p6991_p9 = scmp.ne.s32.totalorder %s6990_s20, 0 }
 0x797   : > { %p3324_p5 = pnand %p6992_p13, %p6991_p9 }
 0x799   : > { %p3325_p1 = pneg %p3324_p5 }
 0x79b   : > { %3559 = dma.done.wait (%p3325_p1), %s2997_s5, 128  }
 0x79c   : > { %3561 = vsyncadd (%p3325_p1), %s2997_s5, 4294967168  ;;  %s6993_s12 = sld [smem:[#allocation21_spill]]  ;;  %s6996_s30 = smov %s3568_s10 }
 0x79d   : > { %s6994_s23 = sld [smem:[#allocation19_spill]] }
 0x79e   : > { %s6995_s11 = sld [smem:[#allocation22_spill]] }
 0x7a2   : > { %p26_p7 = scmp.ge.s32.totalorder %s6993_s12, 4  }
 0x7a3   : > { %s6997_s10 = smov %s6994_s23 }
 0x7a4   :  { %28 = sbr.rel (!%p26_p7) target bundleno = 11 (0xb), region = 129 }
 0x7a9   :  { %3002 = vsyncpa [#allocation6], 1 }
 0x7aa   :  { %3004 = vsyncpa [#allocation6 + $0x1], 1 }
 0x7ab   :  { %3005 = vsyncpa [#allocation9], 1 }
 0x7ac   :  { %3007 = vsyncpa [#allocation9 + $0x1], 1 }
 0x7ad   :  { %3008 = vsyncpa [#allocation12], 1 }
 0x7ae   :  { %3009 = vsyncpa [#allocation7], 1 }
 0x7af   :  { %3011 = vsyncpa [#allocation7 + $0x1], 1 }

</bundles_post_ra>
